<compile_context>
chip_gen: v6e
topology: v6e:2x2x1
jax: 0.10.0
libtpu: 0.0.40
codegen_flags: <defaults>
</compile_context>

<pallas_src>
import jax
import jax.numpy as jnp
from jax import lax
from jax.experimental import pallas as pl
from jax.experimental.pallas import tpu as pltpu


def _bigru_kernel(x2d_ref, mask_ref, wi_ref, bi_ref,
                  whf_ref, bhf_ref, whb_ref, bhb_ref,
                  of_ref, ob_ref, hf_ref, hb_ref,
                  gif_ref, gib_ref):
    """Fused bidirectional GRU, fully resident in VMEM.

    x2d_ref : [T*Bp, E]        mask_ref : [T, Bp, Hp]  (1.0 where t < length)
    wi_ref  : [E, 6*Hp]        bi_ref   : [1, 6*Hp]    (fwd gates | bwd gates)
    wh*_ref : [Hp, 3*Hp]       bh*_ref  : [1, 3*Hp]    ([0, 0, bhn])
    of/ob   : [T, Bp, Hp]      hf/hb    : [Bp, Hp]
    gif/gib : [T*Bp, 3*Hp] VMEM scratch (precomputed input projections)
    """
    T, Bp, Hp = of_ref.shape
    G = 3 * Hp

    # ---- hoisted input projection: one matmul for all timesteps, both directions ----
    gi_all = jnp.dot(x2d_ref[...], wi_ref[...],
                     preferred_element_type=jnp.float32) + bi_ref[...]
    gif_ref[...] = gi_all[:, :G]
    gib_ref[...] = gi_all[:, G:]

    # ---- hoisted hidden biases, broadcast once (not per iteration) ----
    bhf = jnp.broadcast_to(bhf_ref[...], (Bp, G))
    bhb = jnp.broadcast_to(bhb_ref[...], (Bp, G))

    def gru_update(gi, h, wh_ref, bh):
        # gi already contains Wi x + (bi + bh for r,z gates; bi for n gate)
        # gh = Wh h + [0, 0, bhn]  -> bhn stays inside r * (Whn h + bhn)
        gh = jnp.dot(h, wh_ref[...], preferred_element_type=jnp.float32) + bh
        r = jax.nn.sigmoid(gi[:, 0:Hp] + gh[:, 0:Hp])
        z = jax.nn.sigmoid(gi[:, Hp:2 * Hp] + gh[:, Hp:2 * Hp])
        n = jnp.tanh(gi[:, 2 * Hp:3 * Hp] + r * gh[:, 2 * Hp:3 * Hp])
        return (1.0 - z) * n + z * h

    h0 = jnp.zeros((Bp, Hp), jnp.float32)

    def body(t, carry):
        h_f, h_b = carry
        tb = T - 1 - t
        row_f = pl.multiple_of(t * Bp, Bp)
        row_b = pl.multiple_of(tb * Bp, Bp)
        gi_f = gif_ref[pl.ds(row_f, Bp), :]          # [Bp, 3Hp]
        gi_b = gib_ref[pl.ds(row_b, Bp), :]          # [Bp, 3Hp]
        hn_f = gru_update(gi_f, h_f, whf_ref, bhf)
        hn_b = gru_update(gi_b, h_b, whb_ref, bhb)
        m_f = mask_ref[t]                            # [Bp, Hp]
        m_b = mask_ref[tb]
        o_f = m_f * hn_f                             # padded outputs are zero
        o_b = m_b * hn_b
        of_ref[t] = o_f                              # lane-dense 128-wide stores
        ob_ref[tb] = o_b
        # packed-sequence semantics: no state update past the sequence length
        return (o_f + (1.0 - m_f) * h_f, o_b + (1.0 - m_b) * h_b)

    h_f, h_b = lax.fori_loop(0, T, body, (h0, h0), unroll=True)
    hf_ref[...] = h_f
    hb_ref[...] = h_b


def _prepare_packed_params(params, H, Hp):
    """Pad each gate's columns to Hp lanes (zeros), pad Wh rows to Hp, and
    pre-combine biases: input-side = [bir+bhr, biz+bhz, bin], hidden-side = [0,0,bhn]."""

    def pad_gate_cols(w):  # [in, 3H] -> [in, 3Hp]
        gates = [w[:, g * H:(g + 1) * H] for g in range(3)]
        return jnp.concatenate(
            [jnp.pad(g, ((0, 0), (0, Hp - H))) for g in gates], axis=1)

    def pack_dir(wi, wh, bi, bh):
        wi_p = pad_gate_cols(wi)                                        # [E, 3Hp]
        wh_p = jnp.pad(pad_gate_cols(wh), ((0, Hp - H), (0, 0)))        # [Hp, 3Hp]
        bi_comb = jnp.concatenate([bi[:, :2 * H] + bh[:, :2 * H],
                                   bi[:, 2 * H:]], axis=1)              # [1, 3H]
        bi_p = pad_gate_cols(bi_comb)                                   # [1, 3Hp]
        bh_n = jnp.concatenate([jnp.zeros((1, 2 * H), jnp.float32),
                                bh[:, 2 * H:]], axis=1)                 # [1, 3H]
        bh_p = pad_gate_cols(bh_n)                                      # [1, 3Hp]
        return wi_p, wh_p, bi_p, bh_p

    wif_p, whf_p, bif_p, bhf_p = pack_dir(params["wif"], params["whf"],
                                          params["bif"], params["bhf"])
    wib_p, whb_p, bib_p, bhb_p = pack_dir(params["wib"], params["whb"],
                                          params["bib"], params["bhb"])
    wi_all = jnp.concatenate([wif_p, wib_p], axis=1)   # [E, 6Hp]
    bi_all = jnp.concatenate([bif_p, bib_p], axis=1)   # [1, 6Hp]
    return wi_all, bi_all, whf_p, bhf_p, whb_p, bhb_p


def recurrent_encoder_forward(x, x_length, mask, params):
    """x: [B, T, E] float32, x_length: [B] int32 (sorted descending), mask: [B, T].

    Returns (output [B, T, 2H], hidden_concat [B, 2H]) matching
    RecurrentEncoder.forward (GRU, num_layers=1, bidirectional=True, dropout=0).
    """
    B, T, E = x.shape
    H = params["whf"].shape[0]
    Hp = ((H + 127) // 128) * 128          # lane-align each gate to a full 128-lane block
    Bp = max(8, ((B + 7) // 8) * 8)        # full sublane group

    # TODO(synk): dropout p>0 at train time has no deterministic equivalent here; p=0 -> identity.
    wi_all, bi_all, whf_p, bhf_p, whb_p, bhb_p = _prepare_packed_params(params, H, Hp)

    # time-major, batch-padded, flattened for the hoisted input projection
    x_tbe = jnp.transpose(x.astype(jnp.float32), (1, 0, 2))            # [T, B, E]
    x_tbe = jnp.pad(x_tbe, ((0, 0), (0, Bp - B), (0, 0)))              # [T, Bp, E]
    x_2d = jnp.reshape(x_tbe, (T * Bp, E))                             # [T*Bp, E]

    t_idx = jnp.arange(T, dtype=jnp.int32)[:, None]                    # [T, 1]
    valid = (t_idx < x_length[None, :].astype(jnp.int32)).astype(jnp.float32)   # [T, B]
    valid = jnp.pad(valid, ((0, 0), (0, Bp - B)))                      # padded rows masked out
    mask_tbh = jnp.broadcast_to(valid[:, :, None], (T, Bp, Hp))        # pre-broadcast mask

    vmem = pl.BlockSpec(memory_space=pltpu.MemorySpace.VMEM)

    out_shapes = (
        jax.ShapeDtypeStruct((T, Bp, Hp), jnp.float32),   # fwd outputs (lane-dense)
        jax.ShapeDtypeStruct((T, Bp, Hp), jnp.float32),   # bwd outputs (lane-dense)
        jax.ShapeDtypeStruct((Bp, Hp), jnp.float32),      # fwd final hidden
        jax.ShapeDtypeStruct((Bp, Hp), jnp.float32),      # bwd final hidden
    )

    of, ob, hf, hb = pl.pallas_call(
        _bigru_kernel,
        out_shape=out_shapes,
        in_specs=[vmem] * 8,
        out_specs=(vmem, vmem, vmem, vmem),
        scratch_shapes=[
            pltpu.VMEM((T * Bp, 3 * Hp), jnp.float32),    # fwd input projections
            pltpu.VMEM((T * Bp, 3 * Hp), jnp.float32),    # bwd input projections
        ],
    )(x_2d, mask_tbh, wi_all, bi_all, whf_p, bhf_p, whb_p, bhb_p)

    # strip batch / lane padding, concat fwd|bwd, back to batch-first
    output = jnp.concatenate([of[:, :B, :H], ob[:, :B, :H]], axis=-1)  # [T, B, 2H]
    output = jnp.transpose(output, (1, 0, 2))                          # [B, T, 2H]
    hidden_concat = jnp.concatenate([hf[:B, :H], hb[:B, :H]], axis=-1) # [B, 2H]
    return output, hidden_concat


def init_params(key, emb_size, hidden_size):
    """PyTorch nn.GRU init: U(-1/sqrt(H), 1/sqrt(H)). Weights stored transposed
    ([in, 3H]) so the kernel right-multiplies; gate order r|z|n along the 3H axis."""
    k = 1.0 / jnp.sqrt(hidden_size)
    keys = jax.random.split(key, 8)
    u = lambda kk, shape: jax.random.uniform(kk, shape, jnp.float32, -k, k)
    return {
        "wif": u(keys[0], (emb_size, 3 * hidden_size)),
        "whf": u(keys[1], (hidden_size, 3 * hidden_size)),
        "bif": u(keys[2], (1, 3 * hidden_size)),
        "bhf": u(keys[3], (1, 3 * hidden_size)),
        "wib": u(keys[4], (emb_size, 3 * hidden_size)),
        "whb": u(keys[5], (hidden_size, 3 * hidden_size)),
        "bib": u(keys[6], (1, 3 * hidden_size)),
        "bhb": u(keys[7], (1, 3 * hidden_size)),
    }


def _reference_forward(x, x_length, params, H):
    """Pure-JAX reference (same packed-GRU semantics) for a sanity check."""
    B, T, E = x.shape

    def cell(x_t, h, wi, wh, bi, bh):
        gi = x_t @ wi + bi
        gh = h @ wh + bh
        r = jax.nn.sigmoid(gi[:, :H] + gh[:, :H])
        z = jax.nn.sigmoid(gi[:, H:2 * H] + gh[:, H:2 * H])
        n = jnp.tanh(gi[:, 2 * H:] + r * gh[:, 2 * H:])
        return (1.0 - z) * n + z * h

    def run(direction):
        wi, wh, bi, bh = (params["wif"], params["whf"], params["bif"], params["bhf"]) \
            if direction == "f" else (params["wib"], params["whb"], params["bib"], params["bhb"])
        h = jnp.zeros((B, H), jnp.float32)
        outs = [None] * T
        ts = range(T) if direction == "f" else range(T - 1, -1, -1)
        for t in ts:
            m = (t < x_length).astype(jnp.float32)[:, None]
            h_new = cell(x[:, t, :], h, wi, wh, bi, bh)
            h = m * h_new + (1.0 - m) * h
            outs[t] = m * h_new
        return jnp.stack(outs, axis=1), h

    of, hf = run("f")
    ob, hb = run("b")
    return jnp.concatenate([of, ob], -1), jnp.concatenate([hf, hb], -1)


if __name__ == "__main__":
    B, T, E, H = 4, 8, 16, 32

    key = jax.random.PRNGKey(0)
    k_x, k_p = jax.random.split(key)
    x = jax.random.normal(k_x, (B, T, E), jnp.float32)
    x_length = jnp.array([8, 7, 5, 3], dtype=jnp.int32)          # sorted descending, as required
    mask = (jnp.arange(T)[None, :] < x_length[:, None])          # [B, T] (API parity; unused by forward)
    params = init_params(k_p, E, H)

    output, hidden_concat = jax.jit(
        lambda xx, ll, mm: recurrent_encoder_forward(xx, ll, mm, params)
    )(x, x_length, mask)
    jax.block_until_ready((output, hidden_concat))

    assert output.shape == (B, T, 2 * H)
    assert hidden_concat.shape == (B, 2 * H)

    ref_out, ref_hid = _reference_forward(x, x_length, params, H)
    assert jnp.allclose(output, ref_out, atol=2e-2, rtol=2e-2)
    assert jnp.allclose(hidden_concat, ref_hid, atol=2e-2, rtol=2e-2)

    print("KERNEL_OK")
</pallas_src>

<mosaic_0001>
module attributes {stable_mosaic.version = 11 : i64} {
  func.func @_bigru_kernel(%arg0: memref<64x16xf32, #tpu.memory_space<vmem>>, %arg1: memref<8x8x128xf32, #tpu.memory_space<vmem>>, %arg2: memref<16x768xf32, #tpu.memory_space<vmem>>, %arg3: memref<1x768xf32, #tpu.memory_space<vmem>>, %arg4: memref<128x384xf32, #tpu.memory_space<vmem>>, %arg5: memref<1x384xf32, #tpu.memory_space<vmem>>, %arg6: memref<128x384xf32, #tpu.memory_space<vmem>>, %arg7: memref<1x384xf32, #tpu.memory_space<vmem>>, %arg8: memref<8x8x128xf32, #tpu.memory_space<vmem>>, %arg9: memref<8x8x128xf32, #tpu.memory_space<vmem>>, %arg10: memref<8x128xf32, #tpu.memory_space<vmem>>, %arg11: memref<8x128xf32, #tpu.memory_space<vmem>>, %arg12: memref<64x384xf32, #tpu.memory_space<vmem>>, %arg13: memref<64x384xf32, #tpu.memory_space<vmem>>) attributes {dimension_semantics = [], scalar_prefetch = 0 : i64, scratch_operands = 2 : i64, tpu.core_type = #tpu.core_type<tc>} {
    %c0 = arith.constant 0 : index
    %c0_0 = arith.constant 0 : index
    %0 = vector.load %arg0[%c0, %c0_0] : memref<64x16xf32, #tpu.memory_space<vmem>>, vector<64x16xf32>
    %c0_1 = arith.constant 0 : index
    %c0_2 = arith.constant 0 : index
    %1 = vector.load %arg2[%c0_1, %c0_2] : memref<16x768xf32, #tpu.memory_space<vmem>>, vector<16x768xf32>
    %cst = arith.constant dense<0.000000e+00> : vector<64x768xf32>
    %2 = tpu.matmul %0, %1, %cst {dimension_numbers = #tpu.dot_dimension_numbers<[1], [0], [0], [1], [0, 0, 1, 1], [], []>} : vector<64x16xf32>, vector<16x768xf32>, vector<64x768xf32> -> vector<64x768xf32>
    %c0_3 = arith.constant 0 : index
    %c0_4 = arith.constant 0 : index
    %3 = vector.load %arg3[%c0_3, %c0_4] : memref<1x768xf32, #tpu.memory_space<vmem>>, vector<1x768xf32>
    %4 = vector.broadcast %3 : vector<1x768xf32> to vector<64x768xf32>
    %5 = arith.addf %2, %4 : vector<64x768xf32>
    %6 = vector.extract_strided_slice %5 {offsets = [0, 0], sizes = [64, 384], strides = [1, 1]} : vector<64x768xf32> to vector<64x384xf32>
    %c0_5 = arith.constant 0 : index
    %c0_6 = arith.constant 0 : index
    %7 = vector.load %arg12[%c0_5, %c0_6] : memref<64x384xf32, #tpu.memory_space<vmem>>, vector<64x384xf32>
    tpu.vector_store %arg12[%c0_5, %c0_6], %6 {strides = array<i32>} : memref<64x384xf32, #tpu.memory_space<vmem>>, vector<64x384xf32>,
    %8 = vector.extract_strided_slice %5 {offsets = [0, 384], sizes = [64, 384], strides = [1, 1]} : vector<64x768xf32> to vector<64x384xf32>
    %c0_7 = arith.constant 0 : index
    %c0_8 = arith.constant 0 : index
    %9 = vector.load %arg13[%c0_7, %c0_8] : memref<64x384xf32, #tpu.memory_space<vmem>>, vector<64x384xf32>
    tpu.vector_store %arg13[%c0_7, %c0_8], %8 {strides = array<i32>} : memref<64x384xf32, #tpu.memory_space<vmem>>, vector<64x384xf32>,
    %c0_9 = arith.constant 0 : index
    %c0_10 = arith.constant 0 : index
    %10 = vector.load %arg5[%c0_9, %c0_10] : memref<1x384xf32, #tpu.memory_space<vmem>>, vector<1x384xf32>
    %11 = vector.shape_cast %10 : vector<1x384xf32> to vector<1x384xf32>
    %12 = vector.broadcast %11 : vector<1x384xf32> to vector<8x384xf32>
    %c0_11 = arith.constant 0 : index
    %c0_12 = arith.constant 0 : index
    %13 = vector.load %arg7[%c0_11, %c0_12] : memref<1x384xf32, #tpu.memory_space<vmem>>, vector<1x384xf32>
    %14 = vector.shape_cast %13 : vector<1x384xf32> to vector<1x384xf32>
    %15 = vector.broadcast %14 : vector<1x384xf32> to vector<8x384xf32>
    %cst_13 = arith.constant 0.000000e+00 : f32
    %16 = vector.broadcast %cst_13 : f32 to vector<8x128xf32>
    %c0_i32 = arith.constant 0 : i32
    %c7_i32 = arith.constant 7 : i32
    %17 = arith.subi %c7_i32, %c0_i32 : i32
    %c8_i32 = arith.constant 8 : i32
    %18 = arith.muli %c0_i32, %c8_i32 : i32
    %19 = tpu.assume_multiple %18, 8 : i32
    %c8_i32_14 = arith.constant 8 : i32
    %20 = arith.muli %17, %c8_i32_14 : i32
    %21 = tpu.assume_multiple %20, 8 : i32
    %22 = arith.index_cast %19 : i32 to index
    %c0_15 = arith.constant 0 : index
    %23 = vector.load %arg12[%22, %c0_15] : memref<64x384xf32, #tpu.memory_space<vmem>>, vector<8x384xf32>
    %24 = arith.index_cast %21 : i32 to index
    %c0_16 = arith.constant 0 : index
    %25 = vector.load %arg13[%24, %c0_16] : memref<64x384xf32, #tpu.memory_space<vmem>>, vector<8x384xf32>
    %c0_17 = arith.constant 0 : index
    %c0_18 = arith.constant 0 : index
    %26 = vector.load %arg4[%c0_17, %c0_18] : memref<128x384xf32, #tpu.memory_space<vmem>>, vector<128x384xf32>
    %cst_19 = arith.constant dense<0.000000e+00> : vector<8x384xf32>
    %27 = tpu.matmul %16, %26, %cst_19 {dimension_numbers = #tpu.dot_dimension_numbers<[1], [0], [0], [1], [0, 0, 1, 1], [], []>} : vector<8x128xf32>, vector<128x384xf32>, vector<8x384xf32> -> vector<8x384xf32>
    %28 = arith.addf %27, %12 : vector<8x384xf32>
    %29 = vector.extract_strided_slice %23 {offsets = [0, 0], sizes = [8, 128], strides = [1, 1]} : vector<8x384xf32> to vector<8x128xf32>
    %30 = vector.extract_strided_slice %28 {offsets = [0, 0], sizes = [8, 128], strides = [1, 1]} : vector<8x384xf32> to vector<8x128xf32>
    %31 = arith.addf %29, %30 : vector<8x128xf32>
    %32 = arith.negf %31 : vector<8x128xf32>
    %33 = math.exp %32 : vector<8x128xf32>
    %cst_20 = arith.constant 1.000000e+00 : f32
    %34 = vector.broadcast %cst_20 : f32 to vector<8x128xf32>
    %35 = arith.addf %34, %33 : vector<8x128xf32>
    %36 = arith.divf %34, %35 : vector<8x128xf32>
    %37 = vector.extract_strided_slice %23 {offsets = [0, 128], sizes = [8, 128], strides = [1, 1]} : vector<8x384xf32> to vector<8x128xf32>
    %38 = vector.extract_strided_slice %28 {offsets = [0, 128], sizes = [8, 128], strides = [1, 1]} : vector<8x384xf32> to vector<8x128xf32>
    %39 = arith.addf %37, %38 : vector<8x128xf32>
    %40 = arith.negf %39 : vector<8x128xf32>
    %41 = math.exp %40 : vector<8x128xf32>
    %cst_21 = arith.constant 1.000000e+00 : f32
    %42 = vector.broadcast %cst_21 : f32 to vector<8x128xf32>
    %43 = arith.addf %42, %41 : vector<8x128xf32>
    %44 = arith.divf %42, %43 : vector<8x128xf32>
    %45 = vector.extract_strided_slice %23 {offsets = [0, 256], sizes = [8, 128], strides = [1, 1]} : vector<8x384xf32> to vector<8x128xf32>
    %46 = vector.extract_strided_slice %28 {offsets = [0, 256], sizes = [8, 128], strides = [1, 1]} : vector<8x384xf32> to vector<8x128xf32>
    %47 = arith.mulf %36, %46 : vector<8x128xf32>
    %48 = arith.addf %45, %47 : vector<8x128xf32>
    %49 = math.tanh %48 : vector<8x128xf32>
    %cst_22 = arith.constant 1.000000e+00 : f32
    %50 = vector.broadcast %cst_22 : f32 to vector<8x128xf32>
    %51 = arith.subf %50, %44 : vector<8x128xf32>
    %52 = arith.mulf %51, %49 : vector<8x128xf32>
    %53 = arith.mulf %44, %16 : vector<8x128xf32>
    %54 = arith.addf %52, %53 : vector<8x128xf32>
    %c0_23 = arith.constant 0 : index
    %c0_24 = arith.constant 0 : index
    %55 = vector.load %arg6[%c0_23, %c0_24] : memref<128x384xf32, #tpu.memory_space<vmem>>, vector<128x384xf32>
    %cst_25 = arith.constant dense<0.000000e+00> : vector<8x384xf32>
    %56 = tpu.matmul %16, %55, %cst_25 {dimension_numbers = #tpu.dot_dimension_numbers<[1], [0], [0], [1], [0, 0, 1, 1], [], []>} : vector<8x128xf32>, vector<128x384xf32>, vector<8x384xf32> -> vector<8x384xf32>
    %57 = arith.addf %56, %15 : vector<8x384xf32>
    %58 = vector.extract_strided_slice %25 {offsets = [0, 0], sizes = [8, 128], strides = [1, 1]} : vector<8x384xf32> to vector<8x128xf32>
    %59 = vector.extract_strided_slice %57 {offsets = [0, 0], sizes = [8, 128], strides = [1, 1]} : vector<8x384xf32> to vector<8x128xf32>
    %60 = arith.addf %58, %59 : vector<8x128xf32>
    %61 = arith.negf %60 : vector<8x128xf32>
    %62 = math.exp %61 : vector<8x128xf32>
    %cst_26 = arith.constant 1.000000e+00 : f32
    %63 = vector.broadcast %cst_26 : f32 to vector<8x128xf32>
    %64 = arith.addf %63, %62 : vector<8x128xf32>
    %65 = arith.divf %63, %64 : vector<8x128xf32>
    %66 = vector.extract_strided_slice %25 {offsets = [0, 128], sizes = [8, 128], strides = [1, 1]} : vector<8x384xf32> to vector<8x128xf32>
    %67 = vector.extract_strided_slice %57 {offsets = [0, 128], sizes = [8, 128], strides = [1, 1]} : vector<8x384xf32> to vector<8x128xf32>
    %68 = arith.addf %66, %67 : vector<8x128xf32>
    %69 = arith.negf %68 : vector<8x128xf32>
    %70 = math.exp %69 : vector<8x128xf32>
    %cst_27 = arith.constant 1.000000e+00 : f32
    %71 = vector.broadcast %cst_27 : f32 to vector<8x128xf32>
    %72 = arith.addf %71, %70 : vector<8x128xf32>
    %73 = arith.divf %71, %72 : vector<8x128xf32>
    %74 = vector.extract_strided_slice %25 {offsets = [0, 256], sizes = [8, 128], strides = [1, 1]} : vector<8x384xf32> to vector<8x128xf32>
    %75 = vector.extract_strided_slice %57 {offsets = [0, 256], sizes = [8, 128], strides = [1, 1]} : vector<8x384xf32> to vector<8x128xf32>
    %76 = arith.mulf %65, %75 : vector<8x128xf32>
    %77 = arith.addf %74, %76 : vector<8x128xf32>
    %78 = math.tanh %77 : vector<8x128xf32>
    %cst_28 = arith.constant 1.000000e+00 : f32
    %79 = vector.broadcast %cst_28 : f32 to vector<8x128xf32>
    %80 = arith.subf %79, %73 : vector<8x128xf32>
    %81 = arith.mulf %80, %78 : vector<8x128xf32>
    %82 = arith.mulf %73, %16 : vector<8x128xf32>
    %83 = arith.addf %81, %82 : vector<8x128xf32>
    %84 = arith.index_cast %c0_i32 : i32 to index
    %c0_29 = arith.constant 0 : index
    %c0_30 = arith.constant 0 : index
    %85 = vector.load %arg1[%84, %c0_29, %c0_30] : memref<8x8x128xf32, #tpu.memory_space<vmem>>, vector<1x8x128xf32>
    %86 = vector.shape_cast %85 : vector<1x8x128xf32> to vector<8x128xf32>
    %87 = arith.index_cast %17 : i32 to index
    %c0_31 = arith.constant 0 : index
    %c0_32 = arith.constant 0 : index
    %88 = vector.load %arg1[%87, %c0_31, %c0_32] : memref<8x8x128xf32, #tpu.memory_space<vmem>>, vector<1x8x128xf32>
    %89 = vector.shape_cast %88 : vector<1x8x128xf32> to vector<8x128xf32>
    %90 = arith.mulf %86, %54 : vector<8x128xf32>
    %91 = arith.mulf %89, %83 : vector<8x128xf32>
    %92 = arith.index_cast %c0_i32 : i32 to index
    %c0_33 = arith.constant 0 : index
    %c0_34 = arith.constant 0 : index
    %93 = vector.load %arg8[%92, %c0_33, %c0_34] : memref<8x8x128xf32, #tpu.memory_space<vmem>>, vector<1x8x128xf32>
    %94 = vector.shape_cast %93 : vector<1x8x128xf32> to vector<8x128xf32>
    %95 = vector.shape_cast %90 : vector<8x128xf32> to vector<1x8x128xf32>
    tpu.vector_store %arg8[%92, %c0_33, %c0_34], %95 {strides = array<i32>} : memref<8x8x128xf32, #tpu.memory_space<vmem>>, vector<1x8x128xf32>,
    %96 = arith.index_cast %17 : i32 to index
    %c0_35 = arith.constant 0 : index
    %c0_36 = arith.constant 0 : index
    %97 = vector.load %arg9[%96, %c0_35, %c0_36] : memref<8x8x128xf32, #tpu.memory_space<vmem>>, vector<1x8x128xf32>
    %98 = vector.shape_cast %97 : vector<1x8x128xf32> to vector<8x128xf32>
    %99 = vector.shape_cast %91 : vector<8x128xf32> to vector<1x8x128xf32>
    tpu.vector_store %arg9[%96, %c0_35, %c0_36], %99 {strides = array<i32>} : memref<8x8x128xf32, #tpu.memory_space<vmem>>, vector<1x8x128xf32>,
    %cst_37 = arith.constant 1.000000e+00 : f32
    %100 = vector.broadcast %cst_37 : f32 to vector<8x128xf32>
    %101 = arith.subf %100, %86 : vector<8x128xf32>
    %102 = arith.mulf %101, %16 : vector<8x128xf32>
    %103 = arith.addf %90, %102 : vector<8x128xf32>
    %cst_38 = arith.constant 1.000000e+00 : f32
    %104 = vector.broadcast %cst_38 : f32 to vector<8x128xf32>
    %105 = arith.subf %104, %89 : vector<8x128xf32>
    %106 = arith.mulf %105, %16 : vector<8x128xf32>
    %107 = arith.addf %91, %106 : vector<8x128xf32>
    %c1_i32 = arith.constant 1 : i32
    %c7_i32_39 = arith.constant 7 : i32
    %108 = arith.subi %c7_i32_39, %c1_i32 : i32
    %c8_i32_40 = arith.constant 8 : i32
    %109 = arith.muli %c1_i32, %c8_i32_40 : i32
    %110 = tpu.assume_multiple %109, 8 : i32
    %c8_i32_41 = arith.constant 8 : i32
    %111 = arith.muli %108, %c8_i32_41 : i32
    %112 = tpu.assume_multiple %111, 8 : i32
    %113 = arith.index_cast %110 : i32 to index
    %c0_42 = arith.constant 0 : index
    %114 = vector.load %arg12[%113, %c0_42] : memref<64x384xf32, #tpu.memory_space<vmem>>, vector<8x384xf32>
    %115 = arith.index_cast %112 : i32 to index
    %c0_43 = arith.constant 0 : index
    %116 = vector.load %arg13[%115, %c0_43] : memref<64x384xf32, #tpu.memory_space<vmem>>, vector<8x384xf32>
    %c0_44 = arith.constant 0 : index
    %c0_45 = arith.constant 0 : index
    %117 = vector.load %arg4[%c0_44, %c0_45] : memref<128x384xf32, #tpu.memory_space<vmem>>, vector<128x384xf32>
    %cst_46 = arith.constant dense<0.000000e+00> : vector<8x384xf32>
    %118 = tpu.matmul %103, %117, %cst_46 {dimension_numbers = #tpu.dot_dimension_numbers<[1], [0], [0], [1], [0, 0, 1, 1], [], []>} : vector<8x128xf32>, vector<128x384xf32>, vector<8x384xf32> -> vector<8x384xf32>
    %119 = arith.addf %118, %12 : vector<8x384xf32>
    %120 = vector.extract_strided_slice %114 {offsets = [0, 0], sizes = [8, 128], strides = [1, 1]} : vector<8x384xf32> to vector<8x128xf32>
    %121 = vector.extract_strided_slice %119 {offsets = [0, 0], sizes = [8, 128], strides = [1, 1]} : vector<8x384xf32> to vector<8x128xf32>
    %122 = arith.addf %120, %121 : vector<8x128xf32>
    %123 = arith.negf %122 : vector<8x128xf32>
    %124 = math.exp %123 : vector<8x128xf32>
    %cst_47 = arith.constant 1.000000e+00 : f32
    %125 = vector.broadcast %cst_47 : f32 to vector<8x128xf32>
    %126 = arith.addf %125, %124 : vector<8x128xf32>
    %127 = arith.divf %125, %126 : vector<8x128xf32>
    %128 = vector.extract_strided_slice %114 {offsets = [0, 128], sizes = [8, 128], strides = [1, 1]} : vector<8x384xf32> to vector<8x128xf32>
    %129 = vector.extract_strided_slice %119 {offsets = [0, 128], sizes = [8, 128], strides = [1, 1]} : vector<8x384xf32> to vector<8x128xf32>
    %130 = arith.addf %128, %129 : vector<8x128xf32>
    %131 = arith.negf %130 : vector<8x128xf32>
    %132 = math.exp %131 : vector<8x128xf32>
    %cst_48 = arith.constant 1.000000e+00 : f32
    %133 = vector.broadcast %cst_48 : f32 to vector<8x128xf32>
    %134 = arith.addf %133, %132 : vector<8x128xf32>
    %135 = arith.divf %133, %134 : vector<8x128xf32>
    %136 = vector.extract_strided_slice %114 {offsets = [0, 256], sizes = [8, 128], strides = [1, 1]} : vector<8x384xf32> to vector<8x128xf32>
    %137 = vector.extract_strided_slice %119 {offsets = [0, 256], sizes = [8, 128], strides = [1, 1]} : vector<8x384xf32> to vector<8x128xf32>
    %138 = arith.mulf %127, %137 : vector<8x128xf32>
    %139 = arith.addf %136, %138 : vector<8x128xf32>
    %140 = math.tanh %139 : vector<8x128xf32>
    %cst_49 = arith.constant 1.000000e+00 : f32
    %141 = vector.broadcast %cst_49 : f32 to vector<8x128xf32>
    %142 = arith.subf %141, %135 : vector<8x128xf32>
    %143 = arith.mulf %142, %140 : vector<8x128xf32>
    %144 = arith.mulf %135, %103 : vector<8x128xf32>
    %145 = arith.addf %143, %144 : vector<8x128xf32>
    %c0_50 = arith.constant 0 : index
    %c0_51 = arith.constant 0 : index
    %146 = vector.load %arg6[%c0_50, %c0_51] : memref<128x384xf32, #tpu.memory_space<vmem>>, vector<128x384xf32>
    %cst_52 = arith.constant dense<0.000000e+00> : vector<8x384xf32>
    %147 = tpu.matmul %107, %146, %cst_52 {dimension_numbers = #tpu.dot_dimension_numbers<[1], [0], [0], [1], [0, 0, 1, 1], [], []>} : vector<8x128xf32>, vector<128x384xf32>, vector<8x384xf32> -> vector<8x384xf32>
    %148 = arith.addf %147, %15 : vector<8x384xf32>
    %149 = vector.extract_strided_slice %116 {offsets = [0, 0], sizes = [8, 128], strides = [1, 1]} : vector<8x384xf32> to vector<8x128xf32>
    %150 = vector.extract_strided_slice %148 {offsets = [0, 0], sizes = [8, 128], strides = [1, 1]} : vector<8x384xf32> to vector<8x128xf32>
    %151 = arith.addf %149, %150 : vector<8x128xf32>
    %152 = arith.negf %151 : vector<8x128xf32>
    %153 = math.exp %152 : vector<8x128xf32>
    %cst_53 = arith.constant 1.000000e+00 : f32
    %154 = vector.broadcast %cst_53 : f32 to vector<8x128xf32>
    %155 = arith.addf %154, %153 : vector<8x128xf32>
    %156 = arith.divf %154, %155 : vector<8x128xf32>
    %157 = vector.extract_strided_slice %116 {offsets = [0, 128], sizes = [8, 128], strides = [1, 1]} : vector<8x384xf32> to vector<8x128xf32>
    %158 = vector.extract_strided_slice %148 {offsets = [0, 128], sizes = [8, 128], strides = [1, 1]} : vector<8x384xf32> to vector<8x128xf32>
    %159 = arith.addf %157, %158 : vector<8x128xf32>
    %160 = arith.negf %159 : vector<8x128xf32>
    %161 = math.exp %160 : vector<8x128xf32>
    %cst_54 = arith.constant 1.000000e+00 : f32
    %162 = vector.broadcast %cst_54 : f32 to vector<8x128xf32>
    %163 = arith.addf %162, %161 : vector<8x128xf32>
    %164 = arith.divf %162, %163 : vector<8x128xf32>
    %165 = vector.extract_strided_slice %116 {offsets = [0, 256], sizes = [8, 128], strides = [1, 1]} : vector<8x384xf32> to vector<8x128xf32>
    %166 = vector.extract_strided_slice %148 {offsets = [0, 256], sizes = [8, 128], strides = [1, 1]} : vector<8x384xf32> to vector<8x128xf32>
    %167 = arith.mulf %156, %166 : vector<8x128xf32>
    %168 = arith.addf %165, %167 : vector<8x128xf32>
    %169 = math.tanh %168 : vector<8x128xf32>
    %cst_55 = arith.constant 1.000000e+00 : f32
    %170 = vector.broadcast %cst_55 : f32 to vector<8x128xf32>
    %171 = arith.subf %170, %164 : vector<8x128xf32>
    %172 = arith.mulf %171, %169 : vector<8x128xf32>
    %173 = arith.mulf %164, %107 : vector<8x128xf32>
    %174 = arith.addf %172, %173 : vector<8x128xf32>
    %175 = arith.index_cast %c1_i32 : i32 to index
    %c0_56 = arith.constant 0 : index
    %c0_57 = arith.constant 0 : index
    %176 = vector.load %arg1[%175, %c0_56, %c0_57] : memref<8x8x128xf32, #tpu.memory_space<vmem>>, vector<1x8x128xf32>
    %177 = vector.shape_cast %176 : vector<1x8x128xf32> to vector<8x128xf32>
    %178 = arith.index_cast %108 : i32 to index
    %c0_58 = arith.constant 0 : index
    %c0_59 = arith.constant 0 : index
    %179 = vector.load %arg1[%178, %c0_58, %c0_59] : memref<8x8x128xf32, #tpu.memory_space<vmem>>, vector<1x8x128xf32>
    %180 = vector.shape_cast %179 : vector<1x8x128xf32> to vector<8x128xf32>
    %181 = arith.mulf %177, %145 : vector<8x128xf32>
    %182 = arith.mulf %180, %174 : vector<8x128xf32>
    %183 = arith.index_cast %c1_i32 : i32 to index
    %c0_60 = arith.constant 0 : index
    %c0_61 = arith.constant 0 : index
    %184 = vector.load %arg8[%183, %c0_60, %c0_61] : memref<8x8x128xf32, #tpu.memory_space<vmem>>, vector<1x8x128xf32>
    %185 = vector.shape_cast %184 : vector<1x8x128xf32> to vector<8x128xf32>
    %186 = vector.shape_cast %181 : vector<8x128xf32> to vector<1x8x128xf32>
    tpu.vector_store %arg8[%183, %c0_60, %c0_61], %186 {strides = array<i32>} : memref<8x8x128xf32, #tpu.memory_space<vmem>>, vector<1x8x128xf32>,
    %187 = arith.index_cast %108 : i32 to index
    %c0_62 = arith.constant 0 : index
    %c0_63 = arith.constant 0 : index
    %188 = vector.load %arg9[%187, %c0_62, %c0_63] : memref<8x8x128xf32, #tpu.memory_space<vmem>>, vector<1x8x128xf32>
    %189 = vector.shape_cast %188 : vector<1x8x128xf32> to vector<8x128xf32>
    %190 = vector.shape_cast %182 : vector<8x128xf32> to vector<1x8x128xf32>
    tpu.vector_store %arg9[%187, %c0_62, %c0_63], %190 {strides = array<i32>} : memref<8x8x128xf32, #tpu.memory_space<vmem>>, vector<1x8x128xf32>,
    %cst_64 = arith.constant 1.000000e+00 : f32
    %191 = vector.broadcast %cst_64 : f32 to vector<8x128xf32>
    %192 = arith.subf %191, %177 : vector<8x128xf32>
    %193 = arith.mulf %192, %103 : vector<8x128xf32>
    %194 = arith.addf %181, %193 : vector<8x128xf32>
    %cst_65 = arith.constant 1.000000e+00 : f32
    %195 = vector.broadcast %cst_65 : f32 to vector<8x128xf32>
    %196 = arith.subf %195, %180 : vector<8x128xf32>
    %197 = arith.mulf %196, %107 : vector<8x128xf32>
    %198 = arith.addf %182, %197 : vector<8x128xf32>
    %c2_i32 = arith.constant 2 : i32
    %c7_i32_66 = arith.constant 7 : i32
    %199 = arith.subi %c7_i32_66, %c2_i32 : i32
    %c8_i32_67 = arith.constant 8 : i32
    %200 = arith.muli %c2_i32, %c8_i32_67 : i32
    %201 = tpu.assume_multiple %200, 8 : i32
    %c8_i32_68 = arith.constant 8 : i32
    %202 = arith.muli %199, %c8_i32_68 : i32
    %203 = tpu.assume_multiple %202, 8 : i32
    %204 = arith.index_cast %201 : i32 to index
    %c0_69 = arith.constant 0 : index
    %205 = vector.load %arg12[%204, %c0_69] : memref<64x384xf32, #tpu.memory_space<vmem>>, vector<8x384xf32>
    %206 = arith.index_cast %203 : i32 to index
    %c0_70 = arith.constant 0 : index
    %207 = vector.load %arg13[%206, %c0_70] : memref<64x384xf32, #tpu.memory_space<vmem>>, vector<8x384xf32>
    %c0_71 = arith.constant 0 : index
    %c0_72 = arith.constant 0 : index
    %208 = vector.load %arg4[%c0_71, %c0_72] : memref<128x384xf32, #tpu.memory_space<vmem>>, vector<128x384xf32>
    %cst_73 = arith.constant dense<0.000000e+00> : vector<8x384xf32>
    %209 = tpu.matmul %194, %208, %cst_73 {dimension_numbers = #tpu.dot_dimension_numbers<[1], [0], [0], [1], [0, 0, 1, 1], [], []>} : vector<8x128xf32>, vector<128x384xf32>, vector<8x384xf32> -> vector<8x384xf32>
    %210 = arith.addf %209, %12 : vector<8x384xf32>
    %211 = vector.extract_strided_slice %205 {offsets = [0, 0], sizes = [8, 128], strides = [1, 1]} : vector<8x384xf32> to vector<8x128xf32>
    %212 = vector.extract_strided_slice %210 {offsets = [0, 0], sizes = [8, 128], strides = [1, 1]} : vector<8x384xf32> to vector<8x128xf32>
    %213 = arith.addf %211, %212 : vector<8x128xf32>
    %214 = arith.negf %213 : vector<8x128xf32>
    %215 = math.exp %214 : vector<8x128xf32>
    %cst_74 = arith.constant 1.000000e+00 : f32
    %216 = vector.broadcast %cst_74 : f32 to vector<8x128xf32>
    %217 = arith.addf %216, %215 : vector<8x128xf32>
    %218 = arith.divf %216, %217 : vector<8x128xf32>
    %219 = vector.extract_strided_slice %205 {offsets = [0, 128], sizes = [8, 128], strides = [1, 1]} : vector<8x384xf32> to vector<8x128xf32>
    %220 = vector.extract_strided_slice %210 {offsets = [0, 128], sizes = [8, 128], strides = [1, 1]} : vector<8x384xf32> to vector<8x128xf32>
    %221 = arith.addf %219, %220 : vector<8x128xf32>
    %222 = arith.negf %221 : vector<8x128xf32>
    %223 = math.exp %222 : vector<8x128xf32>
    %cst_75 = arith.constant 1.000000e+00 : f32
    %224 = vector.broadcast %cst_75 : f32 to vector<8x128xf32>
    %225 = arith.addf %224, %223 : vector<8x128xf32>
    %226 = arith.divf %224, %225 : vector<8x128xf32>
    %227 = vector.extract_strided_slice %205 {offsets = [0, 256], sizes = [8, 128], strides = [1, 1]} : vector<8x384xf32> to vector<8x128xf32>
    %228 = vector.extract_strided_slice %210 {offsets = [0, 256], sizes = [8, 128], strides = [1, 1]} : vector<8x384xf32> to vector<8x128xf32>
    %229 = arith.mulf %218, %228 : vector<8x128xf32>
    %230 = arith.addf %227, %229 : vector<8x128xf32>
    %231 = math.tanh %230 : vector<8x128xf32>
    %cst_76 = arith.constant 1.000000e+00 : f32
    %232 = vector.broadcast %cst_76 : f32 to vector<8x128xf32>
    %233 = arith.subf %232, %226 : vector<8x128xf32>
    %234 = arith.mulf %233, %231 : vector<8x128xf32>
    %235 = arith.mulf %226, %194 : vector<8x128xf32>
    %236 = arith.addf %234, %235 : vector<8x128xf32>
    %c0_77 = arith.constant 0 : index
    %c0_78 = arith.constant 0 : index
    %237 = vector.load %arg6[%c0_77, %c0_78] : memref<128x384xf32, #tpu.memory_space<vmem>>, vector<128x384xf32>
    %cst_79 = arith.constant dense<0.000000e+00> : vector<8x384xf32>
    %238 = tpu.matmul %198, %237, %cst_79 {dimension_numbers = #tpu.dot_dimension_numbers<[1], [0], [0], [1], [0, 0, 1, 1], [], []>} : vector<8x128xf32>, vector<128x384xf32>, vector<8x384xf32> -> vector<8x384xf32>
    %239 = arith.addf %238, %15 : vector<8x384xf32>
    %240 = vector.extract_strided_slice %207 {offsets = [0, 0], sizes = [8, 128], strides = [1, 1]} : vector<8x384xf32> to vector<8x128xf32>
    %241 = vector.extract_strided_slice %239 {offsets = [0, 0], sizes = [8, 128], strides = [1, 1]} : vector<8x384xf32> to vector<8x128xf32>
    %242 = arith.addf %240, %241 : vector<8x128xf32>
    %243 = arith.negf %242 : vector<8x128xf32>
    %244 = math.exp %243 : vector<8x128xf32>
    %cst_80 = arith.constant 1.000000e+00 : f32
    %245 = vector.broadcast %cst_80 : f32 to vector<8x128xf32>
    %246 = arith.addf %245, %244 : vector<8x128xf32>
    %247 = arith.divf %245, %246 : vector<8x128xf32>
    %248 = vector.extract_strided_slice %207 {offsets = [0, 128], sizes = [8, 128], strides = [1, 1]} : vector<8x384xf32> to vector<8x128xf32>
    %249 = vector.extract_strided_slice %239 {offsets = [0, 128], sizes = [8, 128], strides = [1, 1]} : vector<8x384xf32> to vector<8x128xf32>
    %250 = arith.addf %248, %249 : vector<8x128xf32>
    %251 = arith.negf %250 : vector<8x128xf32>
    %252 = math.exp %251 : vector<8x128xf32>
    %cst_81 = arith.constant 1.000000e+00 : f32
    %253 = vector.broadcast %cst_81 : f32 to vector<8x128xf32>
    %254 = arith.addf %253, %252 : vector<8x128xf32>
    %255 = arith.divf %253, %254 : vector<8x128xf32>
    %256 = vector.extract_strided_slice %207 {offsets = [0, 256], sizes = [8, 128], strides = [1, 1]} : vector<8x384xf32> to vector<8x128xf32>
    %257 = vector.extract_strided_slice %239 {offsets = [0, 256], sizes = [8, 128], strides = [1, 1]} : vector<8x384xf32> to vector<8x128xf32>
    %258 = arith.mulf %247, %257 : vector<8x128xf32>
    %259 = arith.addf %256, %258 : vector<8x128xf32>
    %260 = math.tanh %259 : vector<8x128xf32>
    %cst_82 = arith.constant 1.000000e+00 : f32
    %261 = vector.broadcast %cst_82 : f32 to vector<8x128xf32>
    %262 = arith.subf %261, %255 : vector<8x128xf32>
    %263 = arith.mulf %262, %260 : vector<8x128xf32>
    %264 = arith.mulf %255, %198 : vector<8x128xf32>
    %265 = arith.addf %263, %264 : vector<8x128xf32>
    %266 = arith.index_cast %c2_i32 : i32 to index
    %c0_83 = arith.constant 0 : index
    %c0_84 = arith.constant 0 : index
    %267 = vector.load %arg1[%266, %c0_83, %c0_84] : memref<8x8x128xf32, #tpu.memory_space<vmem>>, vector<1x8x128xf32>
    %268 = vector.shape_cast %267 : vector<1x8x128xf32> to vector<8x128xf32>
    %269 = arith.index_cast %199 : i32 to index
    %c0_85 = arith.constant 0 : index
    %c0_86 = arith.constant 0 : index
    %270 = vector.load %arg1[%269, %c0_85, %c0_86] : memref<8x8x128xf32, #tpu.memory_space<vmem>>, vector<1x8x128xf32>
    %271 = vector.shape_cast %270 : vector<1x8x128xf32> to vector<8x128xf32>
    %272 = arith.mulf %268, %236 : vector<8x128xf32>
    %273 = arith.mulf %271, %265 : vector<8x128xf32>
    %274 = arith.index_cast %c2_i32 : i32 to index
    %c0_87 = arith.constant 0 : index
    %c0_88 = arith.constant 0 : index
    %275 = vector.load %arg8[%274, %c0_87, %c0_88] : memref<8x8x128xf32, #tpu.memory_space<vmem>>, vector<1x8x128xf32>
    %276 = vector.shape_cast %275 : vector<1x8x128xf32> to vector<8x128xf32>
    %277 = vector.shape_cast %272 : vector<8x128xf32> to vector<1x8x128xf32>
    tpu.vector_store %arg8[%274, %c0_87, %c0_88], %277 {strides = array<i32>} : memref<8x8x128xf32, #tpu.memory_space<vmem>>, vector<1x8x128xf32>,
    %278 = arith.index_cast %199 : i32 to index
    %c0_89 = arith.constant 0 : index
    %c0_90 = arith.constant 0 : index
    %279 = vector.load %arg9[%278, %c0_89, %c0_90] : memref<8x8x128xf32, #tpu.memory_space<vmem>>, vector<1x8x128xf32>
    %280 = vector.shape_cast %279 : vector<1x8x128xf32> to vector<8x128xf32>
    %281 = vector.shape_cast %273 : vector<8x128xf32> to vector<1x8x128xf32>
    tpu.vector_store %arg9[%278, %c0_89, %c0_90], %281 {strides = array<i32>} : memref<8x8x128xf32, #tpu.memory_space<vmem>>, vector<1x8x128xf32>,
    %cst_91 = arith.constant 1.000000e+00 : f32
    %282 = vector.broadcast %cst_91 : f32 to vector<8x128xf32>
    %283 = arith.subf %282, %268 : vector<8x128xf32>
    %284 = arith.mulf %283, %194 : vector<8x128xf32>
    %285 = arith.addf %272, %284 : vector<8x128xf32>
    %cst_92 = arith.constant 1.000000e+00 : f32
    %286 = vector.broadcast %cst_92 : f32 to vector<8x128xf32>
    %287 = arith.subf %286, %271 : vector<8x128xf32>
    %288 = arith.mulf %287, %198 : vector<8x128xf32>
    %289 = arith.addf %273, %288 : vector<8x128xf32>
    %c3_i32 = arith.constant 3 : i32
    %c7_i32_93 = arith.constant 7 : i32
    %290 = arith.subi %c7_i32_93, %c3_i32 : i32
    %c8_i32_94 = arith.constant 8 : i32
    %291 = arith.muli %c3_i32, %c8_i32_94 : i32
    %292 = tpu.assume_multiple %291, 8 : i32
    %c8_i32_95 = arith.constant 8 : i32
    %293 = arith.muli %290, %c8_i32_95 : i32
    %294 = tpu.assume_multiple %293, 8 : i32
    %295 = arith.index_cast %292 : i32 to index
    %c0_96 = arith.constant 0 : index
    %296 = vector.load %arg12[%295, %c0_96] : memref<64x384xf32, #tpu.memory_space<vmem>>, vector<8x384xf32>
    %297 = arith.index_cast %294 : i32 to index
    %c0_97 = arith.constant 0 : index
    %298 = vector.load %arg13[%297, %c0_97] : memref<64x384xf32, #tpu.memory_space<vmem>>, vector<8x384xf32>
    %c0_98 = arith.constant 0 : index
    %c0_99 = arith.constant 0 : index
    %299 = vector.load %arg4[%c0_98, %c0_99] : memref<128x384xf32, #tpu.memory_space<vmem>>, vector<128x384xf32>
    %cst_100 = arith.constant dense<0.000000e+00> : vector<8x384xf32>
    %300 = tpu.matmul %285, %299, %cst_100 {dimension_numbers = #tpu.dot_dimension_numbers<[1], [0], [0], [1], [0, 0, 1, 1], [], []>} : vector<8x128xf32>, vector<128x384xf32>, vector<8x384xf32> -> vector<8x384xf32>
    %301 = arith.addf %300, %12 : vector<8x384xf32>
    %302 = vector.extract_strided_slice %296 {offsets = [0, 0], sizes = [8, 128], strides = [1, 1]} : vector<8x384xf32> to vector<8x128xf32>
    %303 = vector.extract_strided_slice %301 {offsets = [0, 0], sizes = [8, 128], strides = [1, 1]} : vector<8x384xf32> to vector<8x128xf32>
    %304 = arith.addf %302, %303 : vector<8x128xf32>
    %305 = arith.negf %304 : vector<8x128xf32>
    %306 = math.exp %305 : vector<8x128xf32>
    %cst_101 = arith.constant 1.000000e+00 : f32
    %307 = vector.broadcast %cst_101 : f32 to vector<8x128xf32>
    %308 = arith.addf %307, %306 : vector<8x128xf32>
    %309 = arith.divf %307, %308 : vector<8x128xf32>
    %310 = vector.extract_strided_slice %296 {offsets = [0, 128], sizes = [8, 128], strides = [1, 1]} : vector<8x384xf32> to vector<8x128xf32>
    %311 = vector.extract_strided_slice %301 {offsets = [0, 128], sizes = [8, 128], strides = [1, 1]} : vector<8x384xf32> to vector<8x128xf32>
    %312 = arith.addf %310, %311 : vector<8x128xf32>
    %313 = arith.negf %312 : vector<8x128xf32>
    %314 = math.exp %313 : vector<8x128xf32>
    %cst_102 = arith.constant 1.000000e+00 : f32
    %315 = vector.broadcast %cst_102 : f32 to vector<8x128xf32>
    %316 = arith.addf %315, %314 : vector<8x128xf32>
    %317 = arith.divf %315, %316 : vector<8x128xf32>
    %318 = vector.extract_strided_slice %296 {offsets = [0, 256], sizes = [8, 128], strides = [1, 1]} : vector<8x384xf32> to vector<8x128xf32>
    %319 = vector.extract_strided_slice %301 {offsets = [0, 256], sizes = [8, 128], strides = [1, 1]} : vector<8x384xf32> to vector<8x128xf32>
    %320 = arith.mulf %309, %319 : vector<8x128xf32>
    %321 = arith.addf %318, %320 : vector<8x128xf32>
    %322 = math.tanh %321 : vector<8x128xf32>
    %cst_103 = arith.constant 1.000000e+00 : f32
    %323 = vector.broadcast %cst_103 : f32 to vector<8x128xf32>
    %324 = arith.subf %323, %317 : vector<8x128xf32>
    %325 = arith.mulf %324, %322 : vector<8x128xf32>
    %326 = arith.mulf %317, %285 : vector<8x128xf32>
    %327 = arith.addf %325, %326 : vector<8x128xf32>
    %c0_104 = arith.constant 0 : index
    %c0_105 = arith.constant 0 : index
    %328 = vector.load %arg6[%c0_104, %c0_105] : memref<128x384xf32, #tpu.memory_space<vmem>>, vector<128x384xf32>
    %cst_106 = arith.constant dense<0.000000e+00> : vector<8x384xf32>
    %329 = tpu.matmul %289, %328, %cst_106 {dimension_numbers = #tpu.dot_dimension_numbers<[1], [0], [0], [1], [0, 0, 1, 1], [], []>} : vector<8x128xf32>, vector<128x384xf32>, vector<8x384xf32> -> vector<8x384xf32>
    %330 = arith.addf %329, %15 : vector<8x384xf32>
    %331 = vector.extract_strided_slice %298 {offsets = [0, 0], sizes = [8, 128], strides = [1, 1]} : vector<8x384xf32> to vector<8x128xf32>
    %332 = vector.extract_strided_slice %330 {offsets = [0, 0], sizes = [8, 128], strides = [1, 1]} : vector<8x384xf32> to vector<8x128xf32>
    %333 = arith.addf %331, %332 : vector<8x128xf32>
    %334 = arith.negf %333 : vector<8x128xf32>
    %335 = math.exp %334 : vector<8x128xf32>
    %cst_107 = arith.constant 1.000000e+00 : f32
    %336 = vector.broadcast %cst_107 : f32 to vector<8x128xf32>
    %337 = arith.addf %336, %335 : vector<8x128xf32>
    %338 = arith.divf %336, %337 : vector<8x128xf32>
    %339 = vector.extract_strided_slice %298 {offsets = [0, 128], sizes = [8, 128], strides = [1, 1]} : vector<8x384xf32> to vector<8x128xf32>
    %340 = vector.extract_strided_slice %330 {offsets = [0, 128], sizes = [8, 128], strides = [1, 1]} : vector<8x384xf32> to vector<8x128xf32>
    %341 = arith.addf %339, %340 : vector<8x128xf32>
    %342 = arith.negf %341 : vector<8x128xf32>
    %343 = math.exp %342 : vector<8x128xf32>
    %cst_108 = arith.constant 1.000000e+00 : f32
    %344 = vector.broadcast %cst_108 : f32 to vector<8x128xf32>
    %345 = arith.addf %344, %343 : vector<8x128xf32>
    %346 = arith.divf %344, %345 : vector<8x128xf32>
    %347 = vector.extract_strided_slice %298 {offsets = [0, 256], sizes = [8, 128], strides = [1, 1]} : vector<8x384xf32> to vector<8x128xf32>
    %348 = vector.extract_strided_slice %330 {offsets = [0, 256], sizes = [8, 128], strides = [1, 1]} : vector<8x384xf32> to vector<8x128xf32>
    %349 = arith.mulf %338, %348 : vector<8x128xf32>
    %350 = arith.addf %347, %349 : vector<8x128xf32>
    %351 = math.tanh %350 : vector<8x128xf32>
    %cst_109 = arith.constant 1.000000e+00 : f32
    %352 = vector.broadcast %cst_109 : f32 to vector<8x128xf32>
    %353 = arith.subf %352, %346 : vector<8x128xf32>
    %354 = arith.mulf %353, %351 : vector<8x128xf32>
    %355 = arith.mulf %346, %289 : vector<8x128xf32>
    %356 = arith.addf %354, %355 : vector<8x128xf32>
    %357 = arith.index_cast %c3_i32 : i32 to index
    %c0_110 = arith.constant 0 : index
    %c0_111 = arith.constant 0 : index
    %358 = vector.load %arg1[%357, %c0_110, %c0_111] : memref<8x8x128xf32, #tpu.memory_space<vmem>>, vector<1x8x128xf32>
    %359 = vector.shape_cast %358 : vector<1x8x128xf32> to vector<8x128xf32>
    %360 = arith.index_cast %290 : i32 to index
    %c0_112 = arith.constant 0 : index
    %c0_113 = arith.constant 0 : index
    %361 = vector.load %arg1[%360, %c0_112, %c0_113] : memref<8x8x128xf32, #tpu.memory_space<vmem>>, vector<1x8x128xf32>
    %362 = vector.shape_cast %361 : vector<1x8x128xf32> to vector<8x128xf32>
    %363 = arith.mulf %359, %327 : vector<8x128xf32>
    %364 = arith.mulf %362, %356 : vector<8x128xf32>
    %365 = arith.index_cast %c3_i32 : i32 to index
    %c0_114 = arith.constant 0 : index
    %c0_115 = arith.constant 0 : index
    %366 = vector.load %arg8[%365, %c0_114, %c0_115] : memref<8x8x128xf32, #tpu.memory_space<vmem>>, vector<1x8x128xf32>
    %367 = vector.shape_cast %366 : vector<1x8x128xf32> to vector<8x128xf32>
    %368 = vector.shape_cast %363 : vector<8x128xf32> to vector<1x8x128xf32>
    tpu.vector_store %arg8[%365, %c0_114, %c0_115], %368 {strides = array<i32>} : memref<8x8x128xf32, #tpu.memory_space<vmem>>, vector<1x8x128xf32>,
    %369 = arith.index_cast %290 : i32 to index
    %c0_116 = arith.constant 0 : index
    %c0_117 = arith.constant 0 : index
    %370 = vector.load %arg9[%369, %c0_116, %c0_117] : memref<8x8x128xf32, #tpu.memory_space<vmem>>, vector<1x8x128xf32>
    %371 = vector.shape_cast %370 : vector<1x8x128xf32> to vector<8x128xf32>
    %372 = vector.shape_cast %364 : vector<8x128xf32> to vector<1x8x128xf32>
    tpu.vector_store %arg9[%369, %c0_116, %c0_117], %372 {strides = array<i32>} : memref<8x8x128xf32, #tpu.memory_space<vmem>>, vector<1x8x128xf32>,
    %cst_118 = arith.constant 1.000000e+00 : f32
    %373 = vector.broadcast %cst_118 : f32 to vector<8x128xf32>
    %374 = arith.subf %373, %359 : vector<8x128xf32>
    %375 = arith.mulf %374, %285 : vector<8x128xf32>
    %376 = arith.addf %363, %375 : vector<8x128xf32>
    %cst_119 = arith.constant 1.000000e+00 : f32
    %377 = vector.broadcast %cst_119 : f32 to vector<8x128xf32>
    %378 = arith.subf %377, %362 : vector<8x128xf32>
    %379 = arith.mulf %378, %289 : vector<8x128xf32>
    %380 = arith.addf %364, %379 : vector<8x128xf32>
    %c4_i32 = arith.constant 4 : i32
    %c7_i32_120 = arith.constant 7 : i32
    %381 = arith.subi %c7_i32_120, %c4_i32 : i32
    %c8_i32_121 = arith.constant 8 : i32
    %382 = arith.muli %c4_i32, %c8_i32_121 : i32
    %383 = tpu.assume_multiple %382, 8 : i32
    %c8_i32_122 = arith.constant 8 : i32
    %384 = arith.muli %381, %c8_i32_122 : i32
    %385 = tpu.assume_multiple %384, 8 : i32
    %386 = arith.index_cast %383 : i32 to index
    %c0_123 = arith.constant 0 : index
    %387 = vector.load %arg12[%386, %c0_123] : memref<64x384xf32, #tpu.memory_space<vmem>>, vector<8x384xf32>
    %388 = arith.index_cast %385 : i32 to index
    %c0_124 = arith.constant 0 : index
    %389 = vector.load %arg13[%388, %c0_124] : memref<64x384xf32, #tpu.memory_space<vmem>>, vector<8x384xf32>
    %c0_125 = arith.constant 0 : index
    %c0_126 = arith.constant 0 : index
    %390 = vector.load %arg4[%c0_125, %c0_126] : memref<128x384xf32, #tpu.memory_space<vmem>>, vector<128x384xf32>
    %cst_127 = arith.constant dense<0.000000e+00> : vector<8x384xf32>
    %391 = tpu.matmul %376, %390, %cst_127 {dimension_numbers = #tpu.dot_dimension_numbers<[1], [0], [0], [1], [0, 0, 1, 1], [], []>} : vector<8x128xf32>, vector<128x384xf32>, vector<8x384xf32> -> vector<8x384xf32>
    %392 = arith.addf %391, %12 : vector<8x384xf32>
    %393 = vector.extract_strided_slice %387 {offsets = [0, 0], sizes = [8, 128], strides = [1, 1]} : vector<8x384xf32> to vector<8x128xf32>
    %394 = vector.extract_strided_slice %392 {offsets = [0, 0], sizes = [8, 128], strides = [1, 1]} : vector<8x384xf32> to vector<8x128xf32>
    %395 = arith.addf %393, %394 : vector<8x128xf32>
    %396 = arith.negf %395 : vector<8x128xf32>
    %397 = math.exp %396 : vector<8x128xf32>
    %cst_128 = arith.constant 1.000000e+00 : f32
    %398 = vector.broadcast %cst_128 : f32 to vector<8x128xf32>
    %399 = arith.addf %398, %397 : vector<8x128xf32>
    %400 = arith.divf %398, %399 : vector<8x128xf32>
    %401 = vector.extract_strided_slice %387 {offsets = [0, 128], sizes = [8, 128], strides = [1, 1]} : vector<8x384xf32> to vector<8x128xf32>
    %402 = vector.extract_strided_slice %392 {offsets = [0, 128], sizes = [8, 128], strides = [1, 1]} : vector<8x384xf32> to vector<8x128xf32>
    %403 = arith.addf %401, %402 : vector<8x128xf32>
    %404 = arith.negf %403 : vector<8x128xf32>
    %405 = math.exp %404 : vector<8x128xf32>
    %cst_129 = arith.constant 1.000000e+00 : f32
    %406 = vector.broadcast %cst_129 : f32 to vector<8x128xf32>
    %407 = arith.addf %406, %405 : vector<8x128xf32>
    %408 = arith.divf %406, %407 : vector<8x128xf32>
    %409 = vector.extract_strided_slice %387 {offsets = [0, 256], sizes = [8, 128], strides = [1, 1]} : vector<8x384xf32> to vector<8x128xf32>
    %410 = vector.extract_strided_slice %392 {offsets = [0, 256], sizes = [8, 128], strides = [1, 1]} : vector<8x384xf32> to vector<8x128xf32>
    %411 = arith.mulf %400, %410 : vector<8x128xf32>
    %412 = arith.addf %409, %411 : vector<8x128xf32>
    %413 = math.tanh %412 : vector<8x128xf32>
    %cst_130 = arith.constant 1.000000e+00 : f32
    %414 = vector.broadcast %cst_130 : f32 to vector<8x128xf32>
    %415 = arith.subf %414, %408 : vector<8x128xf32>
    %416 = arith.mulf %415, %413 : vector<8x128xf32>
    %417 = arith.mulf %408, %376 : vector<8x128xf32>
    %418 = arith.addf %416, %417 : vector<8x128xf32>
    %c0_131 = arith.constant 0 : index
    %c0_132 = arith.constant 0 : index
    %419 = vector.load %arg6[%c0_131, %c0_132] : memref<128x384xf32, #tpu.memory_space<vmem>>, vector<128x384xf32>
    %cst_133 = arith.constant dense<0.000000e+00> : vector<8x384xf32>
    %420 = tpu.matmul %380, %419, %cst_133 {dimension_numbers = #tpu.dot_dimension_numbers<[1], [0], [0], [1], [0, 0, 1, 1], [], []>} : vector<8x128xf32>, vector<128x384xf32>, vector<8x384xf32> -> vector<8x384xf32>
    %421 = arith.addf %420, %15 : vector<8x384xf32>
    %422 = vector.extract_strided_slice %389 {offsets = [0, 0], sizes = [8, 128], strides = [1, 1]} : vector<8x384xf32> to vector<8x128xf32>
    %423 = vector.extract_strided_slice %421 {offsets = [0, 0], sizes = [8, 128], strides = [1, 1]} : vector<8x384xf32> to vector<8x128xf32>
    %424 = arith.addf %422, %423 : vector<8x128xf32>
    %425 = arith.negf %424 : vector<8x128xf32>
    %426 = math.exp %425 : vector<8x128xf32>
    %cst_134 = arith.constant 1.000000e+00 : f32
    %427 = vector.broadcast %cst_134 : f32 to vector<8x128xf32>
    %428 = arith.addf %427, %426 : vector<8x128xf32>
    %429 = arith.divf %427, %428 : vector<8x128xf32>
    %430 = vector.extract_strided_slice %389 {offsets = [0, 128], sizes = [8, 128], strides = [1, 1]} : vector<8x384xf32> to vector<8x128xf32>
    %431 = vector.extract_strided_slice %421 {offsets = [0, 128], sizes = [8, 128], strides = [1, 1]} : vector<8x384xf32> to vector<8x128xf32>
    %432 = arith.addf %430, %431 : vector<8x128xf32>
    %433 = arith.negf %432 : vector<8x128xf32>
    %434 = math.exp %433 : vector<8x128xf32>
    %cst_135 = arith.constant 1.000000e+00 : f32
    %435 = vector.broadcast %cst_135 : f32 to vector<8x128xf32>
    %436 = arith.addf %435, %434 : vector<8x128xf32>
    %437 = arith.divf %435, %436 : vector<8x128xf32>
    %438 = vector.extract_strided_slice %389 {offsets = [0, 256], sizes = [8, 128], strides = [1, 1]} : vector<8x384xf32> to vector<8x128xf32>
    %439 = vector.extract_strided_slice %421 {offsets = [0, 256], sizes = [8, 128], strides = [1, 1]} : vector<8x384xf32> to vector<8x128xf32>
    %440 = arith.mulf %429, %439 : vector<8x128xf32>
    %441 = arith.addf %438, %440 : vector<8x128xf32>
    %442 = math.tanh %441 : vector<8x128xf32>
    %cst_136 = arith.constant 1.000000e+00 : f32
    %443 = vector.broadcast %cst_136 : f32 to vector<8x128xf32>
    %444 = arith.subf %443, %437 : vector<8x128xf32>
    %445 = arith.mulf %444, %442 : vector<8x128xf32>
    %446 = arith.mulf %437, %380 : vector<8x128xf32>
    %447 = arith.addf %445, %446 : vector<8x128xf32>
    %448 = arith.index_cast %c4_i32 : i32 to index
    %c0_137 = arith.constant 0 : index
    %c0_138 = arith.constant 0 : index
    %449 = vector.load %arg1[%448, %c0_137, %c0_138] : memref<8x8x128xf32, #tpu.memory_space<vmem>>, vector<1x8x128xf32>
    %450 = vector.shape_cast %449 : vector<1x8x128xf32> to vector<8x128xf32>
    %451 = arith.index_cast %381 : i32 to index
    %c0_139 = arith.constant 0 : index
    %c0_140 = arith.constant 0 : index
    %452 = vector.load %arg1[%451, %c0_139, %c0_140] : memref<8x8x128xf32, #tpu.memory_space<vmem>>, vector<1x8x128xf32>
    %453 = vector.shape_cast %452 : vector<1x8x128xf32> to vector<8x128xf32>
    %454 = arith.mulf %450, %418 : vector<8x128xf32>
    %455 = arith.mulf %453, %447 : vector<8x128xf32>
    %456 = arith.index_cast %c4_i32 : i32 to index
    %c0_141 = arith.constant 0 : index
    %c0_142 = arith.constant 0 : index
    %457 = vector.load %arg8[%456, %c0_141, %c0_142] : memref<8x8x128xf32, #tpu.memory_space<vmem>>, vector<1x8x128xf32>
    %458 = vector.shape_cast %457 : vector<1x8x128xf32> to vector<8x128xf32>
    %459 = vector.shape_cast %454 : vector<8x128xf32> to vector<1x8x128xf32>
    tpu.vector_store %arg8[%456, %c0_141, %c0_142], %459 {strides = array<i32>} : memref<8x8x128xf32, #tpu.memory_space<vmem>>, vector<1x8x128xf32>,
    %460 = arith.index_cast %381 : i32 to index
    %c0_143 = arith.constant 0 : index
    %c0_144 = arith.constant 0 : index
    %461 = vector.load %arg9[%460, %c0_143, %c0_144] : memref<8x8x128xf32, #tpu.memory_space<vmem>>, vector<1x8x128xf32>
    %462 = vector.shape_cast %461 : vector<1x8x128xf32> to vector<8x128xf32>
    %463 = vector.shape_cast %455 : vector<8x128xf32> to vector<1x8x128xf32>
    tpu.vector_store %arg9[%460, %c0_143, %c0_144], %463 {strides = array<i32>} : memref<8x8x128xf32, #tpu.memory_space<vmem>>, vector<1x8x128xf32>,
    %cst_145 = arith.constant 1.000000e+00 : f32
    %464 = vector.broadcast %cst_145 : f32 to vector<8x128xf32>
    %465 = arith.subf %464, %450 : vector<8x128xf32>
    %466 = arith.mulf %465, %376 : vector<8x128xf32>
    %467 = arith.addf %454, %466 : vector<8x128xf32>
    %cst_146 = arith.constant 1.000000e+00 : f32
    %468 = vector.broadcast %cst_146 : f32 to vector<8x128xf32>
    %469 = arith.subf %468, %453 : vector<8x128xf32>
    %470 = arith.mulf %469, %380 : vector<8x128xf32>
    %471 = arith.addf %455, %470 : vector<8x128xf32>
    %c5_i32 = arith.constant 5 : i32
    %c7_i32_147 = arith.constant 7 : i32
    %472 = arith.subi %c7_i32_147, %c5_i32 : i32
    %c8_i32_148 = arith.constant 8 : i32
    %473 = arith.muli %c5_i32, %c8_i32_148 : i32
    %474 = tpu.assume_multiple %473, 8 : i32
    %c8_i32_149 = arith.constant 8 : i32
    %475 = arith.muli %472, %c8_i32_149 : i32
    %476 = tpu.assume_multiple %475, 8 : i32
    %477 = arith.index_cast %474 : i32 to index
    %c0_150 = arith.constant 0 : index
    %478 = vector.load %arg12[%477, %c0_150] : memref<64x384xf32, #tpu.memory_space<vmem>>, vector<8x384xf32>
    %479 = arith.index_cast %476 : i32 to index
    %c0_151 = arith.constant 0 : index
    %480 = vector.load %arg13[%479, %c0_151] : memref<64x384xf32, #tpu.memory_space<vmem>>, vector<8x384xf32>
    %c0_152 = arith.constant 0 : index
    %c0_153 = arith.constant 0 : index
    %481 = vector.load %arg4[%c0_152, %c0_153] : memref<128x384xf32, #tpu.memory_space<vmem>>, vector<128x384xf32>
    %cst_154 = arith.constant dense<0.000000e+00> : vector<8x384xf32>
    %482 = tpu.matmul %467, %481, %cst_154 {dimension_numbers = #tpu.dot_dimension_numbers<[1], [0], [0], [1], [0, 0, 1, 1], [], []>} : vector<8x128xf32>, vector<128x384xf32>, vector<8x384xf32> -> vector<8x384xf32>
    %483 = arith.addf %482, %12 : vector<8x384xf32>
    %484 = vector.extract_strided_slice %478 {offsets = [0, 0], sizes = [8, 128], strides = [1, 1]} : vector<8x384xf32> to vector<8x128xf32>
    %485 = vector.extract_strided_slice %483 {offsets = [0, 0], sizes = [8, 128], strides = [1, 1]} : vector<8x384xf32> to vector<8x128xf32>
    %486 = arith.addf %484, %485 : vector<8x128xf32>
    %487 = arith.negf %486 : vector<8x128xf32>
    %488 = math.exp %487 : vector<8x128xf32>
    %cst_155 = arith.constant 1.000000e+00 : f32
    %489 = vector.broadcast %cst_155 : f32 to vector<8x128xf32>
    %490 = arith.addf %489, %488 : vector<8x128xf32>
    %491 = arith.divf %489, %490 : vector<8x128xf32>
    %492 = vector.extract_strided_slice %478 {offsets = [0, 128], sizes = [8, 128], strides = [1, 1]} : vector<8x384xf32> to vector<8x128xf32>
    %493 = vector.extract_strided_slice %483 {offsets = [0, 128], sizes = [8, 128], strides = [1, 1]} : vector<8x384xf32> to vector<8x128xf32>
    %494 = arith.addf %492, %493 : vector<8x128xf32>
    %495 = arith.negf %494 : vector<8x128xf32>
    %496 = math.exp %495 : vector<8x128xf32>
    %cst_156 = arith.constant 1.000000e+00 : f32
    %497 = vector.broadcast %cst_156 : f32 to vector<8x128xf32>
    %498 = arith.addf %497, %496 : vector<8x128xf32>
    %499 = arith.divf %497, %498 : vector<8x128xf32>
    %500 = vector.extract_strided_slice %478 {offsets = [0, 256], sizes = [8, 128], strides = [1, 1]} : vector<8x384xf32> to vector<8x128xf32>
    %501 = vector.extract_strided_slice %483 {offsets = [0, 256], sizes = [8, 128], strides = [1, 1]} : vector<8x384xf32> to vector<8x128xf32>
    %502 = arith.mulf %491, %501 : vector<8x128xf32>
    %503 = arith.addf %500, %502 : vector<8x128xf32>
    %504 = math.tanh %503 : vector<8x128xf32>
    %cst_157 = arith.constant 1.000000e+00 : f32
    %505 = vector.broadcast %cst_157 : f32 to vector<8x128xf32>
    %506 = arith.subf %505, %499 : vector<8x128xf32>
    %507 = arith.mulf %506, %504 : vector<8x128xf32>
    %508 = arith.mulf %499, %467 : vector<8x128xf32>
    %509 = arith.addf %507, %508 : vector<8x128xf32>
    %c0_158 = arith.constant 0 : index
    %c0_159 = arith.constant 0 : index
    %510 = vector.load %arg6[%c0_158, %c0_159] : memref<128x384xf32, #tpu.memory_space<vmem>>, vector<128x384xf32>
    %cst_160 = arith.constant dense<0.000000e+00> : vector<8x384xf32>
    %511 = tpu.matmul %471, %510, %cst_160 {dimension_numbers = #tpu.dot_dimension_numbers<[1], [0], [0], [1], [0, 0, 1, 1], [], []>} : vector<8x128xf32>, vector<128x384xf32>, vector<8x384xf32> -> vector<8x384xf32>
    %512 = arith.addf %511, %15 : vector<8x384xf32>
    %513 = vector.extract_strided_slice %480 {offsets = [0, 0], sizes = [8, 128], strides = [1, 1]} : vector<8x384xf32> to vector<8x128xf32>
    %514 = vector.extract_strided_slice %512 {offsets = [0, 0], sizes = [8, 128], strides = [1, 1]} : vector<8x384xf32> to vector<8x128xf32>
    %515 = arith.addf %513, %514 : vector<8x128xf32>
    %516 = arith.negf %515 : vector<8x128xf32>
    %517 = math.exp %516 : vector<8x128xf32>
    %cst_161 = arith.constant 1.000000e+00 : f32
    %518 = vector.broadcast %cst_161 : f32 to vector<8x128xf32>
    %519 = arith.addf %518, %517 : vector<8x128xf32>
    %520 = arith.divf %518, %519 : vector<8x128xf32>
    %521 = vector.extract_strided_slice %480 {offsets = [0, 128], sizes = [8, 128], strides = [1, 1]} : vector<8x384xf32> to vector<8x128xf32>
    %522 = vector.extract_strided_slice %512 {offsets = [0, 128], sizes = [8, 128], strides = [1, 1]} : vector<8x384xf32> to vector<8x128xf32>
    %523 = arith.addf %521, %522 : vector<8x128xf32>
    %524 = arith.negf %523 : vector<8x128xf32>
    %525 = math.exp %524 : vector<8x128xf32>
    %cst_162 = arith.constant 1.000000e+00 : f32
    %526 = vector.broadcast %cst_162 : f32 to vector<8x128xf32>
    %527 = arith.addf %526, %525 : vector<8x128xf32>
    %528 = arith.divf %526, %527 : vector<8x128xf32>
    %529 = vector.extract_strided_slice %480 {offsets = [0, 256], sizes = [8, 128], strides = [1, 1]} : vector<8x384xf32> to vector<8x128xf32>
    %530 = vector.extract_strided_slice %512 {offsets = [0, 256], sizes = [8, 128], strides = [1, 1]} : vector<8x384xf32> to vector<8x128xf32>
    %531 = arith.mulf %520, %530 : vector<8x128xf32>
    %532 = arith.addf %529, %531 : vector<8x128xf32>
    %533 = math.tanh %532 : vector<8x128xf32>
    %cst_163 = arith.constant 1.000000e+00 : f32
    %534 = vector.broadcast %cst_163 : f32 to vector<8x128xf32>
    %535 = arith.subf %534, %528 : vector<8x128xf32>
    %536 = arith.mulf %535, %533 : vector<8x128xf32>
    %537 = arith.mulf %528, %471 : vector<8x128xf32>
    %538 = arith.addf %536, %537 : vector<8x128xf32>
    %539 = arith.index_cast %c5_i32 : i32 to index
    %c0_164 = arith.constant 0 : index
    %c0_165 = arith.constant 0 : index
    %540 = vector.load %arg1[%539, %c0_164, %c0_165] : memref<8x8x128xf32, #tpu.memory_space<vmem>>, vector<1x8x128xf32>
    %541 = vector.shape_cast %540 : vector<1x8x128xf32> to vector<8x128xf32>
    %542 = arith.index_cast %472 : i32 to index
    %c0_166 = arith.constant 0 : index
    %c0_167 = arith.constant 0 : index
    %543 = vector.load %arg1[%542, %c0_166, %c0_167] : memref<8x8x128xf32, #tpu.memory_space<vmem>>, vector<1x8x128xf32>
    %544 = vector.shape_cast %543 : vector<1x8x128xf32> to vector<8x128xf32>
    %545 = arith.mulf %541, %509 : vector<8x128xf32>
    %546 = arith.mulf %544, %538 : vector<8x128xf32>
    %547 = arith.index_cast %c5_i32 : i32 to index
    %c0_168 = arith.constant 0 : index
    %c0_169 = arith.constant 0 : index
    %548 = vector.load %arg8[%547, %c0_168, %c0_169] : memref<8x8x128xf32, #tpu.memory_space<vmem>>, vector<1x8x128xf32>
    %549 = vector.shape_cast %548 : vector<1x8x128xf32> to vector<8x128xf32>
    %550 = vector.shape_cast %545 : vector<8x128xf32> to vector<1x8x128xf32>
    tpu.vector_store %arg8[%547, %c0_168, %c0_169], %550 {strides = array<i32>} : memref<8x8x128xf32, #tpu.memory_space<vmem>>, vector<1x8x128xf32>,
    %551 = arith.index_cast %472 : i32 to index
    %c0_170 = arith.constant 0 : index
    %c0_171 = arith.constant 0 : index
    %552 = vector.load %arg9[%551, %c0_170, %c0_171] : memref<8x8x128xf32, #tpu.memory_space<vmem>>, vector<1x8x128xf32>
    %553 = vector.shape_cast %552 : vector<1x8x128xf32> to vector<8x128xf32>
    %554 = vector.shape_cast %546 : vector<8x128xf32> to vector<1x8x128xf32>
    tpu.vector_store %arg9[%551, %c0_170, %c0_171], %554 {strides = array<i32>} : memref<8x8x128xf32, #tpu.memory_space<vmem>>, vector<1x8x128xf32>,
    %cst_172 = arith.constant 1.000000e+00 : f32
    %555 = vector.broadcast %cst_172 : f32 to vector<8x128xf32>
    %556 = arith.subf %555, %541 : vector<8x128xf32>
    %557 = arith.mulf %556, %467 : vector<8x128xf32>
    %558 = arith.addf %545, %557 : vector<8x128xf32>
    %cst_173 = arith.constant 1.000000e+00 : f32
    %559 = vector.broadcast %cst_173 : f32 to vector<8x128xf32>
    %560 = arith.subf %559, %544 : vector<8x128xf32>
    %561 = arith.mulf %560, %471 : vector<8x128xf32>
    %562 = arith.addf %546, %561 : vector<8x128xf32>
    %c6_i32 = arith.constant 6 : i32
    %c7_i32_174 = arith.constant 7 : i32
    %563 = arith.subi %c7_i32_174, %c6_i32 : i32
    %c8_i32_175 = arith.constant 8 : i32
    %564 = arith.muli %c6_i32, %c8_i32_175 : i32
    %565 = tpu.assume_multiple %564, 8 : i32
    %c8_i32_176 = arith.constant 8 : i32
    %566 = arith.muli %563, %c8_i32_176 : i32
    %567 = tpu.assume_multiple %566, 8 : i32
    %568 = arith.index_cast %565 : i32 to index
    %c0_177 = arith.constant 0 : index
    %569 = vector.load %arg12[%568, %c0_177] : memref<64x384xf32, #tpu.memory_space<vmem>>, vector<8x384xf32>
    %570 = arith.index_cast %567 : i32 to index
    %c0_178 = arith.constant 0 : index
    %571 = vector.load %arg13[%570, %c0_178] : memref<64x384xf32, #tpu.memory_space<vmem>>, vector<8x384xf32>
    %c0_179 = arith.constant 0 : index
    %c0_180 = arith.constant 0 : index
    %572 = vector.load %arg4[%c0_179, %c0_180] : memref<128x384xf32, #tpu.memory_space<vmem>>, vector<128x384xf32>
    %cst_181 = arith.constant dense<0.000000e+00> : vector<8x384xf32>
    %573 = tpu.matmul %558, %572, %cst_181 {dimension_numbers = #tpu.dot_dimension_numbers<[1], [0], [0], [1], [0, 0, 1, 1], [], []>} : vector<8x128xf32>, vector<128x384xf32>, vector<8x384xf32> -> vector<8x384xf32>
    %574 = arith.addf %573, %12 : vector<8x384xf32>
    %575 = vector.extract_strided_slice %569 {offsets = [0, 0], sizes = [8, 128], strides = [1, 1]} : vector<8x384xf32> to vector<8x128xf32>
    %576 = vector.extract_strided_slice %574 {offsets = [0, 0], sizes = [8, 128], strides = [1, 1]} : vector<8x384xf32> to vector<8x128xf32>
    %577 = arith.addf %575, %576 : vector<8x128xf32>
    %578 = arith.negf %577 : vector<8x128xf32>
    %579 = math.exp %578 : vector<8x128xf32>
    %cst_182 = arith.constant 1.000000e+00 : f32
    %580 = vector.broadcast %cst_182 : f32 to vector<8x128xf32>
    %581 = arith.addf %580, %579 : vector<8x128xf32>
    %582 = arith.divf %580, %581 : vector<8x128xf32>
    %583 = vector.extract_strided_slice %569 {offsets = [0, 128], sizes = [8, 128], strides = [1, 1]} : vector<8x384xf32> to vector<8x128xf32>
    %584 = vector.extract_strided_slice %574 {offsets = [0, 128], sizes = [8, 128], strides = [1, 1]} : vector<8x384xf32> to vector<8x128xf32>
    %585 = arith.addf %583, %584 : vector<8x128xf32>
    %586 = arith.negf %585 : vector<8x128xf32>
    %587 = math.exp %586 : vector<8x128xf32>
    %cst_183 = arith.constant 1.000000e+00 : f32
    %588 = vector.broadcast %cst_183 : f32 to vector<8x128xf32>
    %589 = arith.addf %588, %587 : vector<8x128xf32>
    %590 = arith.divf %588, %589 : vector<8x128xf32>
    %591 = vector.extract_strided_slice %569 {offsets = [0, 256], sizes = [8, 128], strides = [1, 1]} : vector<8x384xf32> to vector<8x128xf32>
    %592 = vector.extract_strided_slice %574 {offsets = [0, 256], sizes = [8, 128], strides = [1, 1]} : vector<8x384xf32> to vector<8x128xf32>
    %593 = arith.mulf %582, %592 : vector<8x128xf32>
    %594 = arith.addf %591, %593 : vector<8x128xf32>
    %595 = math.tanh %594 : vector<8x128xf32>
    %cst_184 = arith.constant 1.000000e+00 : f32
    %596 = vector.broadcast %cst_184 : f32 to vector<8x128xf32>
    %597 = arith.subf %596, %590 : vector<8x128xf32>
    %598 = arith.mulf %597, %595 : vector<8x128xf32>
    %599 = arith.mulf %590, %558 : vector<8x128xf32>
    %600 = arith.addf %598, %599 : vector<8x128xf32>
    %c0_185 = arith.constant 0 : index
    %c0_186 = arith.constant 0 : index
    %601 = vector.load %arg6[%c0_185, %c0_186] : memref<128x384xf32, #tpu.memory_space<vmem>>, vector<128x384xf32>
    %cst_187 = arith.constant dense<0.000000e+00> : vector<8x384xf32>
    %602 = tpu.matmul %562, %601, %cst_187 {dimension_numbers = #tpu.dot_dimension_numbers<[1], [0], [0], [1], [0, 0, 1, 1], [], []>} : vector<8x128xf32>, vector<128x384xf32>, vector<8x384xf32> -> vector<8x384xf32>
    %603 = arith.addf %602, %15 : vector<8x384xf32>
    %604 = vector.extract_strided_slice %571 {offsets = [0, 0], sizes = [8, 128], strides = [1, 1]} : vector<8x384xf32> to vector<8x128xf32>
    %605 = vector.extract_strided_slice %603 {offsets = [0, 0], sizes = [8, 128], strides = [1, 1]} : vector<8x384xf32> to vector<8x128xf32>
    %606 = arith.addf %604, %605 : vector<8x128xf32>
    %607 = arith.negf %606 : vector<8x128xf32>
    %608 = math.exp %607 : vector<8x128xf32>
    %cst_188 = arith.constant 1.000000e+00 : f32
    %609 = vector.broadcast %cst_188 : f32 to vector<8x128xf32>
    %610 = arith.addf %609, %608 : vector<8x128xf32>
    %611 = arith.divf %609, %610 : vector<8x128xf32>
    %612 = vector.extract_strided_slice %571 {offsets = [0, 128], sizes = [8, 128], strides = [1, 1]} : vector<8x384xf32> to vector<8x128xf32>
    %613 = vector.extract_strided_slice %603 {offsets = [0, 128], sizes = [8, 128], strides = [1, 1]} : vector<8x384xf32> to vector<8x128xf32>
    %614 = arith.addf %612, %613 : vector<8x128xf32>
    %615 = arith.negf %614 : vector<8x128xf32>
    %616 = math.exp %615 : vector<8x128xf32>
    %cst_189 = arith.constant 1.000000e+00 : f32
    %617 = vector.broadcast %cst_189 : f32 to vector<8x128xf32>
    %618 = arith.addf %617, %616 : vector<8x128xf32>
    %619 = arith.divf %617, %618 : vector<8x128xf32>
    %620 = vector.extract_strided_slice %571 {offsets = [0, 256], sizes = [8, 128], strides = [1, 1]} : vector<8x384xf32> to vector<8x128xf32>
    %621 = vector.extract_strided_slice %603 {offsets = [0, 256], sizes = [8, 128], strides = [1, 1]} : vector<8x384xf32> to vector<8x128xf32>
    %622 = arith.mulf %611, %621 : vector<8x128xf32>
    %623 = arith.addf %620, %622 : vector<8x128xf32>
    %624 = math.tanh %623 : vector<8x128xf32>
    %cst_190 = arith.constant 1.000000e+00 : f32
    %625 = vector.broadcast %cst_190 : f32 to vector<8x128xf32>
    %626 = arith.subf %625, %619 : vector<8x128xf32>
    %627 = arith.mulf %626, %624 : vector<8x128xf32>
    %628 = arith.mulf %619, %562 : vector<8x128xf32>
    %629 = arith.addf %627, %628 : vector<8x128xf32>
    %630 = arith.index_cast %c6_i32 : i32 to index
    %c0_191 = arith.constant 0 : index
    %c0_192 = arith.constant 0 : index
    %631 = vector.load %arg1[%630, %c0_191, %c0_192] : memref<8x8x128xf32, #tpu.memory_space<vmem>>, vector<1x8x128xf32>
    %632 = vector.shape_cast %631 : vector<1x8x128xf32> to vector<8x128xf32>
    %633 = arith.index_cast %563 : i32 to index
    %c0_193 = arith.constant 0 : index
    %c0_194 = arith.constant 0 : index
    %634 = vector.load %arg1[%633, %c0_193, %c0_194] : memref<8x8x128xf32, #tpu.memory_space<vmem>>, vector<1x8x128xf32>
    %635 = vector.shape_cast %634 : vector<1x8x128xf32> to vector<8x128xf32>
    %636 = arith.mulf %632, %600 : vector<8x128xf32>
    %637 = arith.mulf %635, %629 : vector<8x128xf32>
    %638 = arith.index_cast %c6_i32 : i32 to index
    %c0_195 = arith.constant 0 : index
    %c0_196 = arith.constant 0 : index
    %639 = vector.load %arg8[%638, %c0_195, %c0_196] : memref<8x8x128xf32, #tpu.memory_space<vmem>>, vector<1x8x128xf32>
    %640 = vector.shape_cast %639 : vector<1x8x128xf32> to vector<8x128xf32>
    %641 = vector.shape_cast %636 : vector<8x128xf32> to vector<1x8x128xf32>
    tpu.vector_store %arg8[%638, %c0_195, %c0_196], %641 {strides = array<i32>} : memref<8x8x128xf32, #tpu.memory_space<vmem>>, vector<1x8x128xf32>,
    %642 = arith.index_cast %563 : i32 to index
    %c0_197 = arith.constant 0 : index
    %c0_198 = arith.constant 0 : index
    %643 = vector.load %arg9[%642, %c0_197, %c0_198] : memref<8x8x128xf32, #tpu.memory_space<vmem>>, vector<1x8x128xf32>
    %644 = vector.shape_cast %643 : vector<1x8x128xf32> to vector<8x128xf32>
    %645 = vector.shape_cast %637 : vector<8x128xf32> to vector<1x8x128xf32>
    tpu.vector_store %arg9[%642, %c0_197, %c0_198], %645 {strides = array<i32>} : memref<8x8x128xf32, #tpu.memory_space<vmem>>, vector<1x8x128xf32>,
    %cst_199 = arith.constant 1.000000e+00 : f32
    %646 = vector.broadcast %cst_199 : f32 to vector<8x128xf32>
    %647 = arith.subf %646, %632 : vector<8x128xf32>
    %648 = arith.mulf %647, %558 : vector<8x128xf32>
    %649 = arith.addf %636, %648 : vector<8x128xf32>
    %cst_200 = arith.constant 1.000000e+00 : f32
    %650 = vector.broadcast %cst_200 : f32 to vector<8x128xf32>
    %651 = arith.subf %650, %635 : vector<8x128xf32>
    %652 = arith.mulf %651, %562 : vector<8x128xf32>
    %653 = arith.addf %637, %652 : vector<8x128xf32>
    %c7_i32_201 = arith.constant 7 : i32
    %c7_i32_202 = arith.constant 7 : i32
    %654 = arith.subi %c7_i32_202, %c7_i32_201 : i32
    %c8_i32_203 = arith.constant 8 : i32
    %655 = arith.muli %c7_i32_201, %c8_i32_203 : i32
    %656 = tpu.assume_multiple %655, 8 : i32
    %c8_i32_204 = arith.constant 8 : i32
    %657 = arith.muli %654, %c8_i32_204 : i32
    %658 = tpu.assume_multiple %657, 8 : i32
    %659 = arith.index_cast %656 : i32 to index
    %c0_205 = arith.constant 0 : index
    %660 = vector.load %arg12[%659, %c0_205] : memref<64x384xf32, #tpu.memory_space<vmem>>, vector<8x384xf32>
    %661 = arith.index_cast %658 : i32 to index
    %c0_206 = arith.constant 0 : index
    %662 = vector.load %arg13[%661, %c0_206] : memref<64x384xf32, #tpu.memory_space<vmem>>, vector<8x384xf32>
    %c0_207 = arith.constant 0 : index
    %c0_208 = arith.constant 0 : index
    %663 = vector.load %arg4[%c0_207, %c0_208] : memref<128x384xf32, #tpu.memory_space<vmem>>, vector<128x384xf32>
    %cst_209 = arith.constant dense<0.000000e+00> : vector<8x384xf32>
    %664 = tpu.matmul %649, %663, %cst_209 {dimension_numbers = #tpu.dot_dimension_numbers<[1], [0], [0], [1], [0, 0, 1, 1], [], []>} : vector<8x128xf32>, vector<128x384xf32>, vector<8x384xf32> -> vector<8x384xf32>
    %665 = arith.addf %664, %12 : vector<8x384xf32>
    %666 = vector.extract_strided_slice %660 {offsets = [0, 0], sizes = [8, 128], strides = [1, 1]} : vector<8x384xf32> to vector<8x128xf32>
    %667 = vector.extract_strided_slice %665 {offsets = [0, 0], sizes = [8, 128], strides = [1, 1]} : vector<8x384xf32> to vector<8x128xf32>
    %668 = arith.addf %666, %667 : vector<8x128xf32>
    %669 = arith.negf %668 : vector<8x128xf32>
    %670 = math.exp %669 : vector<8x128xf32>
    %cst_210 = arith.constant 1.000000e+00 : f32
    %671 = vector.broadcast %cst_210 : f32 to vector<8x128xf32>
    %672 = arith.addf %671, %670 : vector<8x128xf32>
    %673 = arith.divf %671, %672 : vector<8x128xf32>
    %674 = vector.extract_strided_slice %660 {offsets = [0, 128], sizes = [8, 128], strides = [1, 1]} : vector<8x384xf32> to vector<8x128xf32>
    %675 = vector.extract_strided_slice %665 {offsets = [0, 128], sizes = [8, 128], strides = [1, 1]} : vector<8x384xf32> to vector<8x128xf32>
    %676 = arith.addf %674, %675 : vector<8x128xf32>
    %677 = arith.negf %676 : vector<8x128xf32>
    %678 = math.exp %677 : vector<8x128xf32>
    %cst_211 = arith.constant 1.000000e+00 : f32
    %679 = vector.broadcast %cst_211 : f32 to vector<8x128xf32>
    %680 = arith.addf %679, %678 : vector<8x128xf32>
    %681 = arith.divf %679, %680 : vector<8x128xf32>
    %682 = vector.extract_strided_slice %660 {offsets = [0, 256], sizes = [8, 128], strides = [1, 1]} : vector<8x384xf32> to vector<8x128xf32>
    %683 = vector.extract_strided_slice %665 {offsets = [0, 256], sizes = [8, 128], strides = [1, 1]} : vector<8x384xf32> to vector<8x128xf32>
    %684 = arith.mulf %673, %683 : vector<8x128xf32>
    %685 = arith.addf %682, %684 : vector<8x128xf32>
    %686 = math.tanh %685 : vector<8x128xf32>
    %cst_212 = arith.constant 1.000000e+00 : f32
    %687 = vector.broadcast %cst_212 : f32 to vector<8x128xf32>
    %688 = arith.subf %687, %681 : vector<8x128xf32>
    %689 = arith.mulf %688, %686 : vector<8x128xf32>
    %690 = arith.mulf %681, %649 : vector<8x128xf32>
    %691 = arith.addf %689, %690 : vector<8x128xf32>
    %c0_213 = arith.constant 0 : index
    %c0_214 = arith.constant 0 : index
    %692 = vector.load %arg6[%c0_213, %c0_214] : memref<128x384xf32, #tpu.memory_space<vmem>>, vector<128x384xf32>
    %cst_215 = arith.constant dense<0.000000e+00> : vector<8x384xf32>
    %693 = tpu.matmul %653, %692, %cst_215 {dimension_numbers = #tpu.dot_dimension_numbers<[1], [0], [0], [1], [0, 0, 1, 1], [], []>} : vector<8x128xf32>, vector<128x384xf32>, vector<8x384xf32> -> vector<8x384xf32>
    %694 = arith.addf %693, %15 : vector<8x384xf32>
    %695 = vector.extract_strided_slice %662 {offsets = [0, 0], sizes = [8, 128], strides = [1, 1]} : vector<8x384xf32> to vector<8x128xf32>
    %696 = vector.extract_strided_slice %694 {offsets = [0, 0], sizes = [8, 128], strides = [1, 1]} : vector<8x384xf32> to vector<8x128xf32>
    %697 = arith.addf %695, %696 : vector<8x128xf32>
    %698 = arith.negf %697 : vector<8x128xf32>
    %699 = math.exp %698 : vector<8x128xf32>
    %cst_216 = arith.constant 1.000000e+00 : f32
    %700 = vector.broadcast %cst_216 : f32 to vector<8x128xf32>
    %701 = arith.addf %700, %699 : vector<8x128xf32>
    %702 = arith.divf %700, %701 : vector<8x128xf32>
    %703 = vector.extract_strided_slice %662 {offsets = [0, 128], sizes = [8, 128], strides = [1, 1]} : vector<8x384xf32> to vector<8x128xf32>
    %704 = vector.extract_strided_slice %694 {offsets = [0, 128], sizes = [8, 128], strides = [1, 1]} : vector<8x384xf32> to vector<8x128xf32>
    %705 = arith.addf %703, %704 : vector<8x128xf32>
    %706 = arith.negf %705 : vector<8x128xf32>
    %707 = math.exp %706 : vector<8x128xf32>
    %cst_217 = arith.constant 1.000000e+00 : f32
    %708 = vector.broadcast %cst_217 : f32 to vector<8x128xf32>
    %709 = arith.addf %708, %707 : vector<8x128xf32>
    %710 = arith.divf %708, %709 : vector<8x128xf32>
    %711 = vector.extract_strided_slice %662 {offsets = [0, 256], sizes = [8, 128], strides = [1, 1]} : vector<8x384xf32> to vector<8x128xf32>
    %712 = vector.extract_strided_slice %694 {offsets = [0, 256], sizes = [8, 128], strides = [1, 1]} : vector<8x384xf32> to vector<8x128xf32>
    %713 = arith.mulf %702, %712 : vector<8x128xf32>
    %714 = arith.addf %711, %713 : vector<8x128xf32>
    %715 = math.tanh %714 : vector<8x128xf32>
    %cst_218 = arith.constant 1.000000e+00 : f32
    %716 = vector.broadcast %cst_218 : f32 to vector<8x128xf32>
    %717 = arith.subf %716, %710 : vector<8x128xf32>
    %718 = arith.mulf %717, %715 : vector<8x128xf32>
    %719 = arith.mulf %710, %653 : vector<8x128xf32>
    %720 = arith.addf %718, %719 : vector<8x128xf32>
    %721 = arith.index_cast %c7_i32_201 : i32 to index
    %c0_219 = arith.constant 0 : index
    %c0_220 = arith.constant 0 : index
    %722 = vector.load %arg1[%721, %c0_219, %c0_220] : memref<8x8x128xf32, #tpu.memory_space<vmem>>, vector<1x8x128xf32>
    %723 = vector.shape_cast %722 : vector<1x8x128xf32> to vector<8x128xf32>
    %724 = arith.index_cast %654 : i32 to index
    %c0_221 = arith.constant 0 : index
    %c0_222 = arith.constant 0 : index
    %725 = vector.load %arg1[%724, %c0_221, %c0_222] : memref<8x8x128xf32, #tpu.memory_space<vmem>>, vector<1x8x128xf32>
    %726 = vector.shape_cast %725 : vector<1x8x128xf32> to vector<8x128xf32>
    %727 = arith.mulf %723, %691 : vector<8x128xf32>
    %728 = arith.mulf %726, %720 : vector<8x128xf32>
    %729 = arith.index_cast %c7_i32_201 : i32 to index
    %c0_223 = arith.constant 0 : index
    %c0_224 = arith.constant 0 : index
    %730 = vector.load %arg8[%729, %c0_223, %c0_224] : memref<8x8x128xf32, #tpu.memory_space<vmem>>, vector<1x8x128xf32>
    %731 = vector.shape_cast %730 : vector<1x8x128xf32> to vector<8x128xf32>
    %732 = vector.shape_cast %727 : vector<8x128xf32> to vector<1x8x128xf32>
    tpu.vector_store %arg8[%729, %c0_223, %c0_224], %732 {strides = array<i32>} : memref<8x8x128xf32, #tpu.memory_space<vmem>>, vector<1x8x128xf32>,
    %733 = arith.index_cast %654 : i32 to index
    %c0_225 = arith.constant 0 : index
    %c0_226 = arith.constant 0 : index
    %734 = vector.load %arg9[%733, %c0_225, %c0_226] : memref<8x8x128xf32, #tpu.memory_space<vmem>>, vector<1x8x128xf32>
    %735 = vector.shape_cast %734 : vector<1x8x128xf32> to vector<8x128xf32>
    %736 = vector.shape_cast %728 : vector<8x128xf32> to vector<1x8x128xf32>
    tpu.vector_store %arg9[%733, %c0_225, %c0_226], %736 {strides = array<i32>} : memref<8x8x128xf32, #tpu.memory_space<vmem>>, vector<1x8x128xf32>,
    %cst_227 = arith.constant 1.000000e+00 : f32
    %737 = vector.broadcast %cst_227 : f32 to vector<8x128xf32>
    %738 = arith.subf %737, %723 : vector<8x128xf32>
    %739 = arith.mulf %738, %649 : vector<8x128xf32>
    %740 = arith.addf %727, %739 : vector<8x128xf32>
    %cst_228 = arith.constant 1.000000e+00 : f32
    %741 = vector.broadcast %cst_228 : f32 to vector<8x128xf32>
    %742 = arith.subf %741, %726 : vector<8x128xf32>
    %743 = arith.mulf %742, %653 : vector<8x128xf32>
    %744 = arith.addf %728, %743 : vector<8x128xf32>
    %c8_i32_229 = arith.constant 8 : i32
    %c0_230 = arith.constant 0 : index
    %c0_231 = arith.constant 0 : index
    %745 = vector.load %arg10[%c0_230, %c0_231] : memref<8x128xf32, #tpu.memory_space<vmem>>, vector<8x128xf32>
    tpu.vector_store %arg10[%c0_230, %c0_231], %740 {strides = array<i32>} : memref<8x128xf32, #tpu.memory_space<vmem>>, vector<8x128xf32>,
    %c0_232 = arith.constant 0 : index
    %c0_233 = arith.constant 0 : index
    %746 = vector.load %arg11[%c0_232, %c0_233] : memref<8x128xf32, #tpu.memory_space<vmem>>, vector<8x128xf32>
    tpu.vector_store %arg11[%c0_232, %c0_233], %744 {strides = array<i32>} : memref<8x128xf32, #tpu.memory_space<vmem>>, vector<8x128xf32>,
    return
  }
}

</mosaic_0001>

<bundles_post_ra>
// kernel: _lambda_.1
= control target key start
LH: loop header
LB: loop body
LE: loop exit
PB: predicated region body
PF: predicated region fallthrough
CT: control target
= control target key end

     0   :  { %17 = vsyncpa [#allocation5], 0  ;;  %s7824_s0 = inlined_call_operand.vmem [shape: f32[64,16], index: 0, kind: input, shape index: {}]   ;;  %s7825_s1 = inlined_call_operand.vmem [shape: f32[8,8,128], index: 1, kind: input, shape index: {}]   ;;  %s7826_s2 = inlined_call_operand.vmem [shape: f32[16,768], index: 2, kind: input, shape index: {}]   ;;  %s7827_s3 = inlined_call_operand.vmem [shape: f32[1,768], index: 3, kind: input, shape index: {}]   ;;  %s7828_s4 = inlined_call_operand.hbm [shape: f32[128,384], index: 4, kind: input, shape index: {}]   ;;  %s7829_s5 = inlined_call_operand.vmem [shape: f32[1,384], index: 5, kind: input, shape index: {}]   ;;  %s7830_s6 = inlined_call_operand.hbm [shape: f32[128,384], index: 6, kind: input, shape index: {}]   ;;  %s7831_s7 = inlined_call_operand.vmem [shape: f32[1,384], index: 7, kind: input, shape index: {}]   ;;  %s7832_s8 = inlined_call_operand.vmem [shape: f32[8,8,128], index: 8, kind: output, shape index: {0}]   ;;  %s7833_s9 = inlined_call_operand.vmem [shape: f32[8,8,128], index: 9, kind: output, shape index: {1}]   ;;  %s7834_s10 = inlined_call_operand.vmem [shape: f32[8,128], index: 10, kind: output, shape index: {2}]   ;;  %s7835_s11 = inlined_call_operand.vmem [shape: f32[8,128], index: 11, kind: output, shape index: {3}]  }
   0x1   :  { %18 = vsyncpa [#allocation7], 0  ;;  %s5288_s17 = smov [#allocation4]  }
   0x2   :  { %s32_s18 = sshll.u32 %s5288_s17, 4  ;;  %s33_s18 = int_to_ptr.vmem [resolvable:$true] %s32_s18 }
   0x3   :  { %s5252_s19 = scalar_lea.vmem %s33_s18, 6144  ;;  %p5257_p1 = scmp.lt.s32.totalorder %s33_s18, %s33_s18 }
   0x4   :  { %p5253_p0 = scmp.ne.s32.totalorder %s33_s18, %s5252_s19  ;;  %p5258_p2 = scmp.lt.s32.totalorder %s5252_s19, %s5252_s19 }
   0x6   :  { %p5259_p3 = por %p5258_p2, %p5257_p1 }
   0x8   :  { %p5260_p4 = pnand %p5259_p3, %p5253_p0 }
   0xa   :  { %5263 = shalt.err (!%p5260_p4)
}
   0xb   :  { %s5289_s20 = smov 384   ;;  %s5290_s21 = smov 24  }
   0xc   :  { %38 = dma.hbm_to_vmem [thread:$0]  %s7828_s4, 6144, %s33_s18, [#allocation5], %s5289_s20, %s5289_s20, %s5290_s21  }
   0xd   :  { %s5291_s24 = smov [#allocation6]  }
   0xe   :  { %s46_s25 = sshll.u32 %s5291_s24, 4  ;;  %s47_s25 = int_to_ptr.vmem [resolvable:$true] %s46_s25 }
   0xf   :  { %s5272_s26 = scalar_lea.vmem %s47_s25, 6144  ;;  %p5277_p6 = scmp.lt.s32.totalorder %s47_s25, %s47_s25 }
  0x10   :  { %p5273_p5 = scmp.ne.s32.totalorder %s47_s25, %s5272_s26  ;;  %p5278_p7 = scmp.lt.s32.totalorder %s5272_s26, %s5272_s26 }
  0x12   :  { %p5279_p8 = por %p5278_p7, %p5277_p6 }
  0x14   :  { %p5280_p9 = pnand %p5279_p8, %p5273_p5 }
  0x16   :  { %5283 = shalt.err (!%p5280_p9)
}
  0x17   :  { %52 = dma.hbm_to_vmem [thread:$0]  %s7830_s6, 6144, %s47_s25, [#allocation7], %s5289_s20, %s5289_s20, %s5290_s21  }
  0x18   :  { %5284 = dma.done.wait [#allocation5], 6144  }
  0x19   :  { %5285 = vsyncadd [#allocation5], 4294961152 }
  0x1a   :  { %5286 = dma.done.wait [#allocation7], 6144  }
  0x1b   :  { %5287 = vsyncadd [#allocation7], 4294961152  ;;  %v7858_v0 = vmov 0.0   ;;  %v76_v1 = vld [vmem:[%s7826_s2 + $0x38] sm:$0xff]  ;;  %v75_v2 = vld [vmem:[%s7826_s2 + $0x30] sm:$0xff]  ;;  %vm113_vm0 = vcmask 130048  }
  0x1c   :  { %226 = vmatprep.mubr.f32.mxu1 %v7858_v0  ;;  %202 = vmatprep.mubr.f32.mxu0 %v7858_v0  ;;  %v70_v3 = vld [vmem:[%s7826_s2 + $0x8] sm:$0xff]  ;;  %v69_v4 = vld [vmem:[%s7826_s2] sm:$0xff]  ;;  %v72_v8 = vld [vmem:[%s7826_s2 + $0x18] sm:$0xff]  ;;  %vm5293_vm1 = vmmov 0  }
  0x1d   :  { %5074 = vmatprep.subr.mxu1 %v76_v1  ;;  %166 = vmatprep.subr.mxu0 %v76_v1  ;;  %v5377_v5 = vld [vmem:[%s7824_s0 + $0x20] sm:$0xff]  ;;  %v78_v6 = vld [vmem:[%s7826_s2 + $0x48] sm:$0xff]  ;;  %v71_v9 = vld [vmem:[%s7826_s2 + $0x10] sm:$0xff] }
  0x1e   :  { %5076 = vmatpush1.msra.mxu1 %v75_v2  ;;  %167 = vmatpush1.msra.mxu0 %v75_v2  ;;  %v77_v7 = vld [vmem:[%s7826_s2 + $0x40] sm:$0xff]  ;;  %v5397_v10 = vld [vmem:[%s7824_s0 + $0x28] sm:$0xff]  ;;  %v5399_v11 = vld [vmem:[#allocation4 + $0x170] sm:$0xff] }
  0x1f   :  { %5075 = vmatprep.subr.mxu1 %v70_v3  ;;  %168 = vmatprep.subr.mxu0 %v70_v3  ;;  %v61_v12 = vld [vmem:[%s7824_s0] sm:$0xff]  ;;  %v5413_v13 = vld [vmem:[%s7824_s0 + $0x30] sm:$0xff]  ;;  %v5418_v14 = vld [vmem:[%s7824_s0 + $0x8] sm:$0xff] }
  0x20   :  { %5077 = vmatpush1.msra.mxu1 %v69_v4  ;;  %169 = vmatpush1.msra.mxu0 %v69_v4  ;;  %v80_v15 = vld [vmem:[%s7826_s2 + $0x58] sm:$0xff]  ;;  %v79_v16 = vld [vmem:[%s7826_s2 + $0x50] sm:$0xff]  ;;  %v74_v19 = vld [vmem:[%s7826_s2 + $0x28] sm:$0xff] }
  0x21   :  { %4162 = vmatmul.mubr.msk.f32.vlgmr.msra.gmra.mxu1 %vm113_vm0, %v5377_v5  ;;  %279 = vmatprep.subr.mxu1 %v78_v6  ;;  %v5435_v17 = vld [vmem:[%s7824_s0 + $0x38] sm:$0xff]  ;;  %v5440_v18 = vld [vmem:[%s7824_s0 + $0x10] sm:$0xff]  ;;  %v73_v20 = vld [vmem:[%s7826_s2 + $0x20] sm:$0xff] }
  0x22   :  { %280 = vmatpush1.msra.mxu1 %v77_v7  ;;  %232 = vmatprep.mubr.f32.mxu1 %v7858_v0  ;;  %v5457_v21 = vld [vmem:[%s7824_s0 + $0x18] sm:$0xff]  ;;  %v5460_v22 = vld [vmem:[#allocation4 + $0x168] sm:$0xff]  ;;  %v5468_v24 = vld [vmem:[#allocation4 + $0x150] sm:$0xff] }
  0x23   :  { %281 = vmatprep.subr.mxu1 %v72_v8  ;;  %4158 = vmatmul.mubr.msk.f32.vlgmr.msra.gmra.mxu0 %vm113_vm0, %v61_v12  ;;  %v5464_v23 = vld [vmem:[#allocation4 + $0x158] sm:$0xff]  ;;  %v5474_v26 = vld [vmem:[#allocation4 + $0x140] sm:$0xff]  ;;  %v5481_v28 = vld [vmem:[#allocation4 + $0x128] sm:$0xff] }
  0x24   :  { %282 = vmatpush1.msra.mxu1 %v71_v9  ;;  %208 = vmatprep.mubr.f32.mxu0 %v7858_v0  ;;  %v5470_v25 = vld [vmem:[#allocation4 + $0x178] sm:$0xff]  ;;  %v5487_v29 = vld [vmem:[#allocation4 + $0x120] sm:$0xff]  ;;  %v5493_v31 = vld [vmem:[#allocation4 + $0x110] sm:$0xff] }
  0x25   :  { %4163 = vmatmul.mubr.msk.f32.gmra.mxu1 %vm113_vm0, %v5397_v10  ;;  %619 = vmatprep.subr.mxu1 %v5399_v11  ;;  %v5477_v27 = vld [vmem:[#allocation4 + $0x138] sm:$0xff]  ;;  %v5489_v30 = vld [vmem:[#allocation4 + $0x160] sm:$0xff]  ;;  %v5496_v32 = vld [vmem:[#allocation4 + $0x108] sm:$0xff] }
  0x26   :  { %238 = vmatprep.mubr.f32.mxu1 %v7858_v0  ;;  %392 = vmatprep.subr.mxu0 %v80_v15  ;;  %v5500_v33 = vld [vmem:[#allocation4 + $0xf8] sm:$0xff]  ;;  %v5506_v34 = vld [vmem:[#allocation4 + $0xf0] sm:$0xff]  ;;  %v5510_v35 = vld [vmem:[#allocation4 + $0xe0] sm:$0xff] }
  0x27   :  { %4159 = vmatmul.mubr.msk.f32.gmra.mxu0 %vm113_vm0, %v5418_v14  ;;  %v5513_v36 = vld [vmem:[#allocation4 + $0xd8] sm:$0xff]  ;;  %v5517_v37 = vld [vmem:[#allocation4 + $0xc8] sm:$0xff]  ;;  %v5523_v38 = vld [vmem:[#allocation4 + $0xc0] sm:$0xff] }
  0x28   :  { %214 = vmatprep.mubr.f32.mxu0 %v7858_v0  ;;  %393 = vmatpush1.msra.mxu0 %v79_v16  ;;  %v5525_v39 = vld [vmem:[#allocation4 + $0x148] sm:$0xff]  ;;  %v5529_v40 = vld [vmem:[#allocation4 + $0xb0] sm:$0xff]  ;;  %v5537_v42 = vld [vmem:[#allocation4 + $0x98] sm:$0xff] }
  0x29   :  { %4164 = vmatmul.mubr.msk.f32.gmra.mxu1 %vm113_vm0, %v5413_v13  ;;  %394 = vmatprep.subr.mxu0 %v74_v19  ;;  %v5532_v41 = vld [vmem:[#allocation4 + $0xa8] sm:$0xff]  ;;  %v5543_v43 = vld [vmem:[#allocation4 + $0x90] sm:$0xff]  ;;  %v5549_v45 = vld [vmem:[#allocation4 + $0x80] sm:$0xff] }
  0x2a   :  { %244 = vmatprep.mubr.f32.mxu1 %v7858_v0  ;;  %395 = vmatpush1.msra.mxu0 %v73_v20  ;;  %v5545_v44 = vld [vmem:[#allocation4 + $0x130] sm:$0xff]  ;;  %v5552_v46 = vld [vmem:[#allocation4 + $0x78] sm:$0xff]  ;;  %v5556_v47 = vld [vmem:[#allocation4 + $0x68] sm:$0xff] }
  0x2b   :  { %4160 = vmatmul.mubr.msk.f32.gmra.mxu0 %vm113_vm0, %v5440_v18  ;;  %4514 = vmatprep.subr.mxu0 %v7858_v0  ;;  %v5562_v48 = vld [vmem:[#allocation4 + $0x60] sm:$0xff]  ;;  %v5566_v49 = vld [vmem:[#allocation4 + $0x50] sm:$0xff]  ;;  %v5569_v50 = vld [vmem:[#allocation4 + $0x48] sm:$0xff] }
  0x2c   :  { %220 = vmatprep.mubr.f32.mxu0 %v7858_v0  ;;  %v5573_v51 = vld [vmem:[#allocation4 + $0x38] sm:$0xff]  ;;  %v5579_v52 = vld [vmem:[#allocation4 + $0x30] sm:$0xff]  ;;  %v5585_v54 = vld [vmem:[#allocation4 + $0x20] sm:$0xff] }
  0x2d   :  { %4165 = vmatmul.mubr.msk.f32.gmra.mxu1 %vm113_vm0, %v5435_v17  ;;  %v5581_v53 = vld [vmem:[#allocation4 + $0x118] sm:$0xff]  ;;  %v5593_v56 = vld [vmem:[#allocation4 + $0x8] sm:$0xff]  ;;  %v5599_v57 = vld [vmem:[#allocation4] sm:$0xff] }
  0x2e   :  { %315 = vmatprep.mubr.f32.mxu1 %v7858_v0  ;;  %v5588_v55 = vld [vmem:[#allocation4 + $0x18] sm:$0xff]  ;;  %v5601_v58 = vld [vmem:[#allocation4 + $0x100] sm:$0xff]  ;;  %v5605_v59 = vld [vmem:[#allocation6 + $0x170] sm:$0xff] }
  0x2f   :  { %4161 = vmatmul.mubr.msk.f32.gmra.mxu0 %vm113_vm0, %v5457_v21  ;;  %v5608_v60 = vld [vmem:[#allocation6 + $0x168] sm:$0xff]  ;;  %v5612_v61 = vld [vmem:[#allocation6 + $0x158] sm:$0xff]  ;;  %v5617_v62 = vld [vmem:[#allocation6 + $0x150] sm:$0xff] }
  0x30   :  { %428 = vmatprep.mubr.f32.mxu0 %v7858_v0  ;;  %v5620_v63 = vld [vmem:[#allocation6 + $0x140] sm:$0xff]  ;;  %v5623_v1 = vld [vmem:[#allocation4 + $0xe8] sm:$0xff]  ;;  %v5626_v2 = vld [vmem:[#allocation6 + $0x138] sm:$0xff] }
  0x31   :  { %4166 = vmatmul.mubr.msk.f32.vlgmr.msra.gmra.mxu1 %vm113_vm0, %v61_v12  ;;  %v5630_v3 = vld [vmem:[#allocation6 + $0x128] sm:$0xff]  ;;  %v5634_v4 = vld [vmem:[#allocation4 + $0xd0] sm:$0xff]  ;;  %v5637_v6 = vld [vmem:[#allocation6 + $0x120] sm:$0xff] }
  0x32   :  { %620 = vmatpush1.msra.mxu1 %v5460_v22  ;;  %321 = vmatprep.mubr.f32.mxu1 %v7858_v0  ;;  %v5641_v7 = vld [vmem:[#allocation6 + $0x110] sm:$0xff]  ;;  %v5645_v8 = vld [vmem:[#allocation6 + $0x108] sm:$0xff]  ;;  %v5649_v9 = vld [vmem:[#allocation6 + $0xf8] sm:$0xff] }
  0x33   :  { %621 = vmatprep.subr.mxu1 %v5464_v23  ;;  %4174 = vmatmul.mubr.msk.f32.vlgmr.msra.gmra.mxu0 %vm113_vm0, %v61_v12  ;;  %8009 = vst [vmem:[#allocation10_spill] sm:$0xff] %v5641_v7  ;;  %8010 = vst [vmem:[#allocation11_spill] sm:$0xff] %v5645_v8  ;;  %v5652_v12 = vld [vmem:[#allocation4 + $0xb8] sm:$0xff]  ;;  %v5659_v15 = vld [vmem:[#allocation6 + $0xe0] sm:$0xff] }
  0x34   :  { %622 = vmatpush1.msra.mxu1 %v5468_v24  ;;  %4515 = vmatpush3.msra.mxu0 %v5470_v25  ;;  %8011 = vst [vmem:[#allocation12_spill] sm:$0xff] %v5649_v9  ;;  %8013 = vst [vmem:[#allocation14_spill] sm:$0xff] %v5659_v15  ;;  %v5663_v16 = vld [vmem:[#allocation4 + $0xa0] sm:$0xff]  ;;  %v5670_v19 = vld [vmem:[#allocation6 + $0xc8] sm:$0xff] }
  0x35   :  { %623 = vmatprep.subr.mxu1 %v5474_v26  ;;  %4167 = vmatmul.mubr.msk.f32.gmra.mxu1 %vm113_vm0, %v5418_v14  ;;  %8015 = vst [vmem:[#allocation16_spill] sm:$0xff] %v5670_v19  ;;  %v5674_v20 = vld [vmem:[#allocation6 + $0xc0] sm:$0xff] }
  0x36   :  { %624 = vmatpush1.msra.mxu1 %v5477_v27  ;;  %327 = vmatprep.mubr.f32.mxu1 %v7858_v0  ;;  %8016 = vst [vmem:[#allocation17_spill] sm:$0xff] %v5674_v20 }
  0x37   :  { %625 = vmatprep.subr.mxu1 %v5481_v28  ;;  %4516 = vmatprep.subr.mxu0 %v7858_v0 }
  0x38   :  { %626 = vmatpush1.msra.mxu1 %v5487_v29  ;;  %4517 = vmatpush3.msra.mxu0 %v5489_v30 }
  0x39   :  { %627 = vmatprep.subr.mxu1 %v5493_v31  ;;  %4168 = vmatmul.mubr.msk.f32.gmra.mxu1 %vm113_vm0, %v5440_v18 }
  0x3a   :  { %628 = vmatpush1.msra.mxu1 %v5496_v32  ;;  %333 = vmatprep.mubr.f32.mxu1 %v7858_v0 }
  0x3b   :  { %629 = vmatprep.subr.mxu1 %v5500_v33  ;;  %434 = vmatprep.mubr.f32.mxu0 %v7858_v0 }
  0x3c   :  { %630 = vmatpush1.msra.mxu1 %v5506_v34  ;;  %4518 = vmatprep.subr.mxu0 %v7858_v0 }
  0x3d   :  { %631 = vmatprep.subr.mxu1 %v5510_v35  ;;  %4169 = vmatmul.mubr.msk.f32.gmra.mxu1 %vm113_vm0, %v5457_v21 }
  0x3e   :  { %632 = vmatpush1.msra.mxu1 %v5513_v36  ;;  %339 = vmatprep.mubr.f32.mxu1 %v7858_v0 }
  0x3f   :  { %633 = vmatprep.subr.mxu1 %v5517_v37  ;;  %4175 = vmatmul.mubr.msk.f32.gmra.mxu0 %vm113_vm0, %v5418_v14  ;;  %v5655_v14 = vld [vmem:[#allocation6 + $0xf0] sm:$0xff] }
  0x40   :  { %634 = vmatpush1.msra.mxu1 %v5523_v38  ;;  %4519 = vmatpush3.msra.mxu0 %v5525_v39  ;;  %8012 = vst [vmem:[#allocation13_spill] sm:$0xff] %v5655_v14 }
  0x41   :  { %635 = vmatprep.subr.mxu1 %v5529_v40  ;;  %4170 = vmatmul.mubr.msk.f32.gmra.mxu1 %vm113_vm0, %v5377_v5 }
  0x42   :  { %636 = vmatpush1.msra.mxu1 %v5532_v41  ;;  %345 = vmatprep.mubr.f32.mxu1 %v7858_v0 }
  0x43   :  { %637 = vmatprep.subr.mxu1 %v5537_v42  ;;  %4520 = vmatprep.subr.mxu0 %v7858_v0 }
  0x44   :  { %638 = vmatpush1.msra.mxu1 %v5543_v43  ;;  %4521 = vmatpush3.msra.mxu0 %v5545_v44 }
  0x45   :  { %639 = vmatprep.subr.mxu1 %v5549_v45  ;;  %4171 = vmatmul.mubr.msk.f32.gmra.mxu1 %vm113_vm0, %v5397_v10 }
  0x46   :  { %640 = vmatpush1.msra.mxu1 %v5552_v46  ;;  %351 = vmatprep.mubr.f32.mxu1 %v7858_v0 }
  0x47   :  { %641 = vmatprep.subr.mxu1 %v5556_v47  ;;  %440 = vmatprep.mubr.f32.mxu0 %v7858_v0 }
  0x48   :  { %642 = vmatpush1.msra.mxu1 %v5562_v48  ;;  %4522 = vmatprep.subr.mxu0 %v7858_v0 }
  0x49   :  { %643 = vmatprep.subr.mxu1 %v5566_v49  ;;  %4172 = vmatmul.mubr.msk.f32.gmra.mxu1 %vm113_vm0, %v5413_v13 }
  0x4a   :  { %644 = vmatpush1.msra.mxu1 %v5569_v50  ;;  %357 = vmatprep.mubr.f32.mxu1 %v7858_v0 }
  0x4b   :  { %645 = vmatprep.subr.mxu1 %v5573_v51  ;;  %4176 = vmatmul.mubr.msk.f32.gmra.mxu0 %vm113_vm0, %v5440_v18  ;;  %v5666_v18 = vld [vmem:[#allocation6 + $0xd8] sm:$0xff] }
  0x4c   :  { %646 = vmatpush1.msra.mxu1 %v5579_v52  ;;  %4523 = vmatpush3.msra.mxu0 %v5581_v53  ;;  %8014 = vst [vmem:[#allocation15_spill] sm:$0xff] %v5666_v18 }
  0x4d   :  { %647 = vmatprep.subr.mxu1 %v5585_v54  ;;  %4173 = vmatmul.mubr.msk.f32.gmra.mxu1 %vm113_vm0, %v5435_v17 }
  0x4e   :  { %648 = vmatpush1.msra.mxu1 %v5588_v55  ;;  %683 = vmatprep.mubr.f32.mxu1 %v7858_v0 }
  0x4f   :  { %649 = vmatprep.subr.mxu1 %v5593_v56  ;;  %4524 = vmatprep.subr.mxu0 %v7858_v0 }
  0x50   :  { %650 = vmatpush1.msra.mxu1 %v5599_v57  ;;  %4525 = vmatpush3.msra.mxu0 %v5601_v58 }
  0x51   :  { %829 = vmatprep.subr.mxu1 %v5605_v59  ;;  %684 = vmatmul.mubr.f32.vlgmr.msra.gmra.mxu1 %v7858_v0 }
  0x52   :  { %830 = vmatpush1.msra.mxu1 %v5608_v60  ;;  %446 = vmatprep.mubr.f32.mxu0 %v7858_v0 }
  0x53   :  { %831 = vmatprep.subr.mxu1 %v5612_v61  ;;  %4526 = vmatprep.subr.mxu0 %v7858_v0 }
  0x54   :  { %832 = vmatpush1.msra.mxu1 %v5617_v62  ;;  %4177 = vmatmul.mubr.msk.f32.gmra.mxu0 %vm113_vm0, %v5457_v21  ;;  %v5681_v21 = vld [vmem:[#allocation4 + $0x88] sm:$0xff] }
  0x55   :  { %833 = vmatprep.subr.mxu1 %v5620_v63  ;;  %4527 = vmatpush3.msra.mxu0 %v5623_v1 }
  0x56   :  { %834 = vmatpush1.msra.mxu1 %v5626_v2  ;;  %4528 = vmatprep.subr.mxu0 %v7858_v0 }
  0x57   :  { %835 = vmatprep.subr.mxu1 %v5630_v3  ;;  %4529 = vmatpush3.msra.mxu0 %v5634_v4 }
  0x58   :  { %836 = vmatpush1.msra.mxu1 %v5637_v6  ;;  %452 = vmatprep.mubr.f32.mxu0 %v7858_v0 }
  0x59   :  { %837 = vmatprep.subr.mxu1 %v5641_v7  ;;  %4530 = vmatprep.subr.mxu0 %v7858_v0  ;;  %v5754_v7 = vld [vmem:[#allocation4 + $0x10] sm:$0xff] }
  0x5a   :  { %838 = vmatpush1.msra.mxu1 %v5645_v8  ;;  %4178 = vmatmul.mubr.msk.f32.gmra.mxu0 %vm113_vm0, %v5377_v5  ;;  %v5678_v5 = vld [vmem:[#allocation6 + $0xb0] sm:$0xff]  ;;  %v5724_v8 = vld [vmem:[#allocation6 + $0x48] sm:$0xff] }
  0x5b   :  { %839 = vmatprep.subr.mxu1 %v5649_v9  ;;  %4531 = vmatpush3.msra.mxu0 %v5652_v12  ;;  %8017 = vst [vmem:[#allocation18_spill] sm:$0xff] %v5678_v5  ;;  %v5695_v9 = vld [vmem:[#allocation6 + $0x90] sm:$0xff]  ;;  %8026 = vst [vmem:[#allocation27_spill] sm:$0xff] %v5724_v8 }
  0x5c   :  { %840 = vmatpush1.msra.mxu1 %v5655_v14  ;;  %4532 = vmatprep.subr.mxu0 %v7858_v0  ;;  %v5684_v14 = vld [vmem:[#allocation6 + $0xa8] sm:$0xff]  ;;  %8020 = vst [vmem:[#allocation21_spill] sm:$0xff] %v5695_v9 }
  0x5d   :  { %841 = vmatprep.subr.mxu1 %v5659_v15  ;;  %4533 = vmatpush3.msra.mxu0 %v5663_v16  ;;  %8018 = vst [vmem:[#allocation19_spill] sm:$0xff] %v5684_v14  ;;  %v5688_v15 = vld [vmem:[#allocation6 + $0x98] sm:$0xff] }
  0x5e   :  { %842 = vmatpush1.msra.mxu1 %v5666_v18  ;;  %458 = vmatprep.mubr.f32.mxu0 %v7858_v0  ;;  %8019 = vst [vmem:[#allocation20_spill] sm:$0xff] %v5688_v15  ;;  %v5692_v18 = vld [vmem:[#allocation4 + $0x70] sm:$0xff] }
  0x5f   :  { %843 = vmatprep.subr.mxu1 %v5670_v19  ;;  %4534 = vmatprep.subr.mxu0 %v7858_v0  ;;  %v5699_v19 = vld [vmem:[#allocation6 + $0x80] sm:$0xff] }
  0x60   :  { %844 = vmatpush1.msra.mxu1 %v5674_v20  ;;  %4179 = vmatmul.mubr.msk.f32.gmra.mxu0 %vm113_vm0, %v5397_v10  ;;  %8021 = vst [vmem:[#allocation22_spill] sm:$0xff] %v5699_v19  ;;  %v5703_v20 = vld [vmem:[#allocation6 + $0x78] sm:$0xff]  ;;  %v5707_v10 = vld [vmem:[#allocation6 + $0x68] sm:$0xff] }
  0x61   :  { %845 = vmatprep.subr.mxu1 %v5678_v5  ;;  %4535 = vmatpush3.msra.mxu0 %v5681_v21  ;;  %8022 = vst [vmem:[#allocation23_spill] sm:$0xff] %v5703_v20  ;;  %8023 = vst [vmem:[#allocation24_spill] sm:$0xff] %v5707_v10  ;;  %v5710_v5 = vld [vmem:[#allocation4 + $0x58] sm:$0xff] }
  0x62   :  { %846 = vmatpush1.msra.mxu1 %v5684_v14  ;;  %4536 = vmatprep.subr.mxu0 %v7858_v0  ;;  %v5713_v14 = vld [vmem:[#allocation6 + $0x60] sm:$0xff] }
  0x63   :  { %847 = vmatprep.subr.mxu1 %v5688_v15  ;;  %4537 = vmatpush3.msra.mxu0 %v5692_v18  ;;  %8024 = vst [vmem:[#allocation25_spill] sm:$0xff] %v5713_v14  ;;  %v5717_v15 = vld [vmem:[#allocation6 + $0x50] sm:$0xff] }
  0x64   :  { %848 = vmatpush1.msra.mxu1 %v5695_v9  ;;  %464 = vmatprep.mubr.f32.mxu0 %v7858_v0  ;;  %8025 = vst [vmem:[#allocation26_spill] sm:$0xff] %v5717_v15  ;;  %v5721_v9 = vld [vmem:[#allocation4 + $0x40] sm:$0xff] }
  0x65   :  { %849 = vmatprep.subr.mxu1 %v5699_v19  ;;  %4538 = vmatprep.subr.mxu0 %v7858_v0  ;;  %v5728_v19 = vld [vmem:[#allocation6 + $0x38] sm:$0xff] }
  0x66   :  { %850 = vmatpush1.msra.mxu1 %v5703_v20  ;;  %4180 = vmatmul.mubr.msk.f32.gmra.mxu0 %vm113_vm0, %v5413_v13  ;;  %v5732_v20 = vld [vmem:[#allocation6 + $0x30] sm:$0xff]  ;;  %v5736_v13 = vld [vmem:[#allocation6 + $0x20] sm:$0xff] }
  0x67   :  { %851 = vmatprep.subr.mxu1 %v5707_v10  ;;  %4539 = vmatpush3.msra.mxu0 %v5710_v5  ;;  %8027 = vst [vmem:[#allocation28_spill] sm:$0xff] %v5736_v13  ;;  %v5739_v10 = vld [vmem:[#allocation4 + $0x28] sm:$0xff] }
  0x68   :  { %852 = vmatpush1.msra.mxu1 %v5713_v14  ;;  %4540 = vmatprep.subr.mxu0 %v7858_v0  ;;  %v5743_v14 = vld [vmem:[#allocation6 + $0x18] sm:$0xff] }
  0x69   :  { %853 = vmatprep.subr.mxu1 %v5717_v15  ;;  %4541 = vmatpush3.msra.mxu0 %v5721_v9  ;;  %8028 = vst [vmem:[#allocation29_spill] sm:$0xff] %v5743_v14  ;;  %v5748_v15 = vld [vmem:[#allocation6 + $0x8] sm:$0xff] }
  0x6a   :  { %854 = vmatpush1.msra.mxu1 %v5724_v8  ;;  %470 = vmatprep.mubr.f32.mxu0 %v7858_v0  ;;  %8029 = vst [vmem:[#allocation30_spill] sm:$0xff] %v5748_v15  ;;  %v5752_v8 = vld [vmem:[#allocation6] sm:$0xff] }
  0x6b   :  { %855 = vmatprep.subr.mxu1 %v5728_v19  ;;  %4542 = vmatprep.subr.mxu0 %v7858_v0  ;;  %8030 = vst [vmem:[#allocation31_spill] sm:$0xff] %v5752_v8 }
  0x6c   :  { %856 = vmatpush1.msra.mxu1 %v5732_v20  ;;  %4181 = vmatmul.mubr.msk.f32.gmra.mxu0 %vm113_vm0, %v5435_v17  ;;  %v5762_v17 = vld [vmem:[#allocation6 + $0x178] sm:$0xff] }
  0x6d   :  { %857 = vmatprep.subr.mxu1 %v5736_v13  ;;  %4543 = vmatpush3.msra.mxu0 %v5739_v10  ;;  %v5787_v13 = vld [vmem:[#allocation6 + $0x118] sm:$0xff] }
  0x6e   :  { %858 = vmatpush1.msra.mxu1 %v5743_v14  ;;  %4544 = vmatprep.subr.mxu0 %v7858_v0  ;;  %v5769_v14 = vld [vmem:[#allocation6 + $0x160] sm:$0xff] }
  0x6f   :  { %859 = vmatprep.subr.mxu1 %v5748_v15  ;;  %893 = vmatprep.mubr.f32.mxu1 %v7858_v0  ;;  %v5781_v15 = vld [vmem:[#allocation6 + $0x130] sm:$0xff] }
  0x70   :  { %860 = vmatpush1.msra.mxu1 %v5752_v8  ;;  %4545 = vmatpush3.msra.mxu0 %v5754_v7  ;;  %v5775_v8 = vld [vmem:[#allocation6 + $0x148] sm:$0xff] }
  0x71   :  { %894 = vmatmul.mubr.f32.vlgmr.msra.gmra.mxu1 %v7858_v0  ;;  %4546 = vmatprep.mubr.msk.f32.mxu0 %vm5293_vm1, %v7858_v0 }
  0x72   :  { %4549 = vmatprep.subr.mxu0 %v7858_v0  ;;  %4547 = vmatmul.mubr.f32.vlgmr.msra.gmra.mxu0 %v7858_v0 }
  0x73   :  { %4550 = vmatpush3.msra.mxu0 %v5762_v17  ;;  %4581 = vmatprep.mubr.msk.f32.mxu0 %vm5293_vm1, %v7858_v0 }
  0x74   :  { %4551 = vmatprep.subr.mxu0 %v7858_v0  ;;  %1065 = vmatprep.subr.mxu1 %v5399_v11  ;;  %v5793_v11 = vld [vmem:[#allocation6 + $0x100] sm:$0xff] }
  0x75   :  { %4552 = vmatpush3.msra.mxu0 %v5769_v14  ;;  %1066 = vmatpush1.msra.mxu1 %v5460_v22  ;;  %v5799_v22 = vld [vmem:[#allocation6 + $0xe8] sm:$0xff] }
  0x76   :  { %4553 = vmatprep.subr.mxu0 %v7858_v0  ;;  %1067 = vmatprep.subr.mxu1 %v5464_v23  ;;  %v5805_v23 = vld [vmem:[#allocation6 + $0xd0] sm:$0xff] }
  0x77   :  { %4554 = vmatpush3.msra.mxu0 %v5775_v8  ;;  %1068 = vmatpush1.msra.mxu1 %v5468_v24  ;;  %v5811_v24 = vld [vmem:[#allocation6 + $0xb8] sm:$0xff] }
  0x78   :  { %4555 = vmatprep.subr.mxu0 %v7858_v0  ;;  %1069 = vmatprep.subr.mxu1 %v5474_v26  ;;  %v5817_v26 = vld [vmem:[#allocation6 + $0xa0] sm:$0xff] }
  0x79   :  { %4556 = vmatpush3.msra.mxu0 %v5781_v15  ;;  %1070 = vmatpush1.msra.mxu1 %v5477_v27  ;;  %v5823_v27 = vld [vmem:[#allocation6 + $0x88] sm:$0xff] }
  0x7a   :  { %4557 = vmatprep.subr.mxu0 %v7858_v0  ;;  %1071 = vmatprep.subr.mxu1 %v5481_v28  ;;  %v5829_v28 = vld [vmem:[#allocation6 + $0x70] sm:$0xff] }
  0x7b   :  { %4558 = vmatpush3.msra.mxu0 %v5787_v13  ;;  %1072 = vmatpush1.msra.mxu1 %v5487_v29  ;;  %v5835_v29 = vld [vmem:[#allocation6 + $0x58] sm:$0xff] }
  0x7c   :  { %4559 = vmatprep.subr.mxu0 %v7858_v0  ;;  %1073 = vmatprep.subr.mxu1 %v5493_v31  ;;  %v5841_v31 = vld [vmem:[#allocation6 + $0x40] sm:$0xff] }
  0x7d   :  { %4560 = vmatpush3.msra.mxu0 %v5793_v11  ;;  %1074 = vmatpush1.msra.mxu1 %v5496_v32  ;;  %v5847_v32 = vld [vmem:[#allocation6 + $0x28] sm:$0xff] }
  0x7e   :  { %4561 = vmatprep.subr.mxu0 %v7858_v0  ;;  %1075 = vmatprep.subr.mxu1 %v5500_v33  ;;  %v5853_v33 = vld [vmem:[#allocation6 + $0x10] sm:$0xff] }
  0x7f   :  { %4562 = vmatpush3.msra.mxu0 %v5799_v22  ;;  %1076 = vmatpush1.msra.mxu1 %v5506_v34 }
  0x80   :  { %4563 = vmatprep.subr.mxu0 %v7858_v0  ;;  %1077 = vmatprep.subr.mxu1 %v5510_v35  ;;  %v81_v35 = vld [vmem:[%s7827_s3] sm:$0x3f] }
  0x81   :  { %4564 = vmatpush3.msra.mxu0 %v5805_v23  ;;  %1078 = vmatpush1.msra.mxu1 %v5513_v36 }
  0x82   :  { %4565 = vmatprep.subr.mxu0 %v7858_v0  ;;  %1079 = vmatprep.subr.mxu1 %v5517_v37 }
  0x83   :  { %4566 = vmatpush3.msra.mxu0 %v5811_v24  ;;  %1080 = vmatpush1.msra.mxu1 %v5523_v38 }
  0x84   :  { %4567 = vmatprep.subr.mxu0 %v7858_v0  ;;  %1081 = vmatprep.subr.mxu1 %v5529_v40 }
  0x85   :  { %4568 = vmatpush3.msra.mxu0 %v5817_v26  ;;  %1082 = vmatpush1.msra.mxu1 %v5532_v41 }
  0x86   :  { %4569 = vmatprep.subr.mxu0 %v7858_v0  ;;  %1083 = vmatprep.subr.mxu1 %v5537_v42 }
  0x87   :  { %4570 = vmatpush3.msra.mxu0 %v5823_v27  ;;  %1084 = vmatpush1.msra.mxu1 %v5543_v43 }
  0x88   :  { %4571 = vmatprep.subr.mxu0 %v7858_v0  ;;  %1085 = vmatprep.subr.mxu1 %v5549_v45 }
  0x89   :  { %4572 = vmatpush3.msra.mxu0 %v5829_v28  ;;  %1086 = vmatpush1.msra.mxu1 %v5552_v46 }
  0x8a   :  { %4573 = vmatprep.subr.mxu0 %v7858_v0  ;;  %1087 = vmatprep.subr.mxu1 %v5556_v47 }
  0x8b   :  { %4574 = vmatpush3.msra.mxu0 %v5835_v29  ;;  %1088 = vmatpush1.msra.mxu1 %v5562_v48 }
  0x8c   :  { %4575 = vmatprep.subr.mxu0 %v7858_v0  ;;  %1089 = vmatprep.subr.mxu1 %v5566_v49 }
  0x8d   :  { %4576 = vmatpush3.msra.mxu0 %v5841_v31  ;;  %1090 = vmatpush1.msra.mxu1 %v5569_v50 }
  0x8e   :  { %4577 = vmatprep.subr.mxu0 %v7858_v0  ;;  %1091 = vmatprep.subr.mxu1 %v5573_v51 }
  0x8f   :  { %4578 = vmatpush3.msra.mxu0 %v5847_v32  ;;  %1092 = vmatpush1.msra.mxu1 %v5579_v52 }
  0x90   :  { %4579 = vmatprep.subr.mxu0 %v7858_v0  ;;  %1093 = vmatprep.subr.mxu1 %v5585_v54 }
  0x91   :  { %4580 = vmatpush3.msra.mxu0 %v5853_v33  ;;  %1094 = vmatpush1.msra.mxu1 %v5588_v55 }
  0x92   :  { %4582 = vmatmul.mubr.f32.vlgmr.msra.gmra.mxu0 %v7858_v0  ;;  %4584 = vmatprep.subr.mxu0 %v7858_v0 }
  0x93   :  { %4585 = vmatpush3.msra.mxu0 %v5470_v25  ;;  %1095 = vmatprep.subr.mxu1 %v5593_v56  ;;  %v83_v25 = vlaneseq }
  0x94   :  { %4586 = vmatprep.subr.mxu0 %v7858_v0  ;;  %1096 = vmatpush1.msra.mxu1 %v5599_v57 }
  0x95   :  { %4587 = vmatpush3.msra.mxu0 %v5489_v30  ;;  %1129 = vmatprep.mubr.f32.mxu1 %v7858_v0  ;;  %v84_v30 = vshrl.u32 %v83_v25, 7 }
  0x96   :  { %4588 = vmatprep.subr.mxu0 %v7858_v0  ;;  %4616 = vmatprep.mubr.msk.f32.mxu0 %vm5293_vm1, %v7858_v0 }
  0x97   :  { %4589 = vmatpush3.msra.mxu0 %v5525_v39  ;;  %1275 = vmatprep.subr.mxu1 %v5605_v59  ;;  %v5902_v34 = vsub.s32 0, %v84_v30  ;;  %v5907_v36 = vsub.s32 1, %v84_v30 }
  0x98   :  { %4590 = vmatprep.subr.mxu0 %v7858_v0 }
  0x99   :  { %4591 = vmatpush3.msra.mxu0 %v5545_v44  ;;  %v5910_v37 = vrot.slane %v81_v35, %v5902_v34  ;;  %v5913_v38 = vrot.slane %v81_v35, %v5907_v36 }
  0x9a   :  { %4592 = vmatprep.subr.mxu0 %v7858_v0 }
  0x9b   :  { %4593 = vmatpush3.msra.mxu0 %v5581_v53 }
  0x9c   :  { %4594 = vmatprep.subr.mxu0 %v7858_v0 }
  0x9d   :  { %4595 = vmatpush3.msra.mxu0 %v5601_v58  ;;  %v97_v58 = vsub.s32 3, %v84_v30 }
  0x9e   :  { %4596 = vmatprep.subr.mxu0 %v7858_v0 }
  0x9f   :  { %4597 = vmatpush3.msra.mxu0 %v5623_v1  ;;  %v101_v1 = vsub.s32 4, %v84_v30  ;;  %v5957_v25 = vrot.slane %v81_v35, %v97_v58 }
  0xa0   :  { %4598 = vmatprep.subr.mxu0 %v7858_v0 }
  0xa1   :  { %4599 = vmatpush3.msra.mxu0 %v5634_v4 }
  0xa2   :  { %4600 = vmatprep.subr.mxu0 %v7858_v0 }
  0xa3   :  { %4601 = vmatpush3.msra.mxu0 %v5652_v12 }
  0xa4   :  { %4602 = vmatprep.subr.mxu0 %v7858_v0 }
  0xa5   :  { %4603 = vmatpush3.msra.mxu0 %v5663_v16  ;;  %v105_v16 = vsub.s32 5, %v84_v30 }
  0xa6   :  { %4604 = vmatprep.subr.mxu0 %v7858_v0 }
  0xa7   :  { %4605 = vmatpush3.msra.mxu0 %v5681_v21 }
  0xa8   :  { %4606 = vmatprep.subr.mxu0 %v7858_v0 }
  0xa9   :  { %4607 = vmatpush3.msra.mxu0 %v5692_v18 }
  0xaa   :  { %4608 = vmatprep.subr.mxu0 %v7858_v0 }
  0xab   :  { %4609 = vmatpush3.msra.mxu0 %v5710_v5  ;;  %v5952_v5 = vsub.s32 2, %v84_v30 }
  0xac   :  { %4610 = vmatprep.subr.mxu0 %v7858_v0 }
  0xad   :  { %4611 = vmatpush3.msra.mxu0 %v5721_v9 }
  0xae   :  { %4612 = vmatprep.subr.mxu0 %v7858_v0 }
  0xaf   :  { %4613 = vmatpush3.msra.mxu0 %v5739_v10 }
  0xb0   :  { %4614 = vmatprep.subr.mxu0 %v7858_v0 }
  0xb1   :  { %4615 = vmatpush3.msra.mxu0 %v5754_v7 }
  0xb2   :  { %4619 = vmatprep.subr.mxu0 %v7858_v0 }
  0xe1   :  { %v228_v39 = vpop.f32.mrf.mxu1 }
  0xe2   :  { %v5916_v40 = vadd.f32 %v228_v39, %v5910_v37 }
  0xe3   :  { %v230_v41 = vpop.f32.mrf.mxu1  ;;  %v5918_v42 = vpop.f32.mrf.mxu0 }
  0xe4   :  { %8031 = vst [vmem:[#allocation32_spill] sm:$0xff] %v5916_v40  ;;  %v5921_v43 = vadd.f32 %v230_v41, %v5913_v38  ;;  %v5962_v41 = vrot.slane %v81_v35, %v101_v1 }
  0xe5   :  { %v234_v44 = vpop.f32.mrf.mxu1  ;;  %v5923_v45 = vpop.f32.mrf.mxu0 }
  0xe6   :  { %8032 = vst [vmem:[#allocation33_spill] sm:$0xff] %v5921_v43  ;;  %v5926_v46 = vadd.f32 %v234_v44, %v5910_v37 }
  0xe7   :  { %v236_v47 = vpop.f32.mrf.mxu1  ;;  %v210_v48 = vpop.f32.mrf.mxu0 }
  0xe8   :  { %8033 = vst [vmem:[#allocation34_spill] sm:$0xff] %v5926_v46  ;;  %v5929_v49 = vadd.f32 %v236_v47, %v5913_v38  ;;  %v5932_v50 = vadd.f32 %v210_v48, %v5910_v37 }
  0xe9   :  { %v240_v51 = vpop.f32.mrf.mxu1  ;;  %v212_v52 = vpop.f32.mrf.mxu0 }
  0xea   :  { %8034 = vst [vmem:[#allocation35_spill] sm:$0xff] %v5929_v49  ;;  %v5935_v53 = vadd.f32 %v240_v51, %v5910_v37  ;;  %v5938_v54 = vadd.f32 %v212_v52, %v5913_v38  ;;  %v5969_v51 = vrot.slane %v81_v35, %v105_v16 }
  0xeb   :  { %v242_v55 = vpop.f32.mrf.mxu1  ;;  %v216_v56 = vpop.f32.mrf.mxu0 }
  0xec   :  { %8035 = vst [vmem:[#allocation36_spill] sm:$0xff] %v5935_v53  ;;  %v5941_v57 = vadd.f32 %v242_v55, %v5913_v38  ;;  %v5944_v59 = vadd.f32 %v216_v56, %v5910_v37  ;;  %v5972_v55 = vrot.slane %v81_v35, %v5952_v5 }
  0xed   :  { %v246_v4 = vpop.f32.mrf.mxu1  ;;  %v218_v7 = vpop.f32.mrf.mxu0 }
  0xee   :  { %8036 = vst [vmem:[#allocation37_spill] sm:$0xff] %v5941_v57  ;;  %8037 = vst [vmem:[#allocation38_spill] sm:$0xff] %v5944_v59  ;;  %v5947_v9 = vadd.f32 %v246_v4, %v5910_v37  ;;  %v5950_v12 = vadd.f32 %v218_v7, %v5913_v38  ;;  %v6345_v59 = vld [vmem:[#allocation6 + $0x170] sm:$0xff] }
  0xef   :  { %v248_v18 = vpop.f32.mrf.mxu1  ;;  %v222_v21 = vpop.f32.mrf.mxu0 }
  0xf0   :  { %8038 = vst [vmem:[#allocation39_spill] sm:$0xff] %v5947_v9  ;;  %8039 = vst [vmem:[#allocation40_spill] sm:$0xff] %v5950_v12  ;;  %v5955_v10 = vadd.f32 %v248_v18, %v5913_v38  ;;  %v5960_v39 = vadd.f32 %v222_v21, %v5910_v37  ;;  %v6341_v12 = vld [vmem:[#allocation4 + $0x10] sm:$0xff] }
  0xf1   :  { %v5964_v44 = vpop.f32.mrf.mxu1  ;;  %v224_v47 = vpop.f32.mrf.mxu0 }
  0xf2   :  { %8040 = vst [vmem:[#allocation41_spill] sm:$0xff] %v5955_v10  ;;  %8041 = vst [vmem:[#allocation42_spill] sm:$0xff] %v5960_v39  ;;  %v5967_v48 = vadd.f32 %v224_v47, %v5913_v38 }
  0xf3   :  { %v319_v30 = vpop.f32.mrf.mxu1  ;;  %v430_v52 = vpop.f32.mrf.mxu0 }
  0xf4   :  { %8042 = vst [vmem:[#allocation43_spill] sm:$0xff] %v5967_v48  ;;  %v5975_v56 = vadd.f32 %v319_v30, %v5957_v25  ;;  %v5978_v58 = vadd.f32 %v430_v52, %v5962_v41 }
  0xf5   :  { %v323_v1 = vpop.f32.mrf.mxu1  ;;  %v432_v4 = vpop.f32.mrf.mxu0 }
  0xf6   :  { %8043 = vst [vmem:[#allocation44_spill] sm:$0xff] %v5975_v56  ;;  %8044 = vst [vmem:[#allocation45_spill] sm:$0xff] %v5978_v58  ;;  %v5981_v7 = vadd.f32 %v323_v1, %v5972_v55  ;;  %v5984_v18 = vadd.f32 %v432_v4, %v5969_v51 }
  0xf7   :  { %v325_v16 = vpop.f32.mrf.mxu1 }
  0xf8   :  { %8045 = vst [vmem:[#allocation46_spill] sm:$0xff] %v5984_v18  ;;  %v5987_v21 = vadd.f32 %v325_v16, %v5957_v25 }
  0xf9   :  { %v329_v35 = vpop.f32.mrf.mxu1 }
  0xfa   :  { %8046 = vst [vmem:[#allocation47_spill] sm:$0xff] %v5987_v21  ;;  %v5990_v47 = vadd.f32 %v329_v35, %v5972_v55 }
  0xfb   :  { %v331_v30 = vpop.f32.mrf.mxu1 }
  0xfc   :  { %8047 = vst [vmem:[#allocation48_spill] sm:$0xff] %v5990_v47  ;;  %v5993_v52 = vadd.f32 %v331_v30, %v5957_v25 }
  0xfd   :  { %v335_v0 = vpop.f32.mrf.mxu1 }
  0xfe   :  { %8048 = vst [vmem:[#allocation49_spill] sm:$0xff] %v5993_v52  ;;  %v5996_v58 = vadd.f32 %v335_v0, %v5972_v55 }
  0xff   :  { %v337_v1 = vpop.f32.mrf.mxu1  ;;  %v436_v56 = vpop.f32.mrf.mxu0 }
 0x100   :  { %8049 = vst [vmem:[#allocation50_spill] sm:$0xff] %v5996_v58  ;;  %v5999_v4 = vadd.f32 %v337_v1, %v5957_v25  ;;  %v6002_v16 = vadd.f32 %v436_v56, %v5962_v41 }
 0x101   :  { %v341_v18 = vpop.f32.mrf.mxu1  ;;  %v438_v10 = vpop.f32.mrf.mxu0 }
 0x102   :  { %8050 = vst [vmem:[#allocation51_spill] sm:$0xff] %v5999_v4  ;;  %8051 = vst [vmem:[#allocation52_spill] sm:$0xff] %v6002_v16  ;;  %v6005_v35 = vadd.f32 %v341_v18, %v5972_v55  ;;  %v6008_v30 = vadd.f32 %v438_v10, %v5969_v51  ;;  %v525_v10 = vld [vmem:[%s7829_s5] sm:$0x7] }
 0x103   :  { %v343_v9 = vpop.f32.mrf.mxu1 }
 0x104   :  { %8052 = vst [vmem:[#allocation53_spill] sm:$0xff] %v6005_v35  ;;  %8053 = vst [vmem:[#allocation54_spill] sm:$0xff] %v6008_v30  ;;  %v6011_v0 = vadd.f32 %v343_v9, %v5957_v25 }
 0x105   :  { %v347_v21 = vpop.f32.mrf.mxu1 }
 0x106   :  { %8054 = vst [vmem:[#allocation55_spill] sm:$0xff] %v6011_v0  ;;  %v6014_v57 = vadd.f32 %v347_v21, %v5972_v55 }
 0x107   :  { %v349_v1 = vpop.f32.mrf.mxu1 }
 0x108   :  { %8055 = vst [vmem:[#allocation56_spill] sm:$0xff] %v6014_v57  ;;  %v6017_v56 = vadd.f32 %v349_v1, %v5957_v25 }
 0x109   :  { %v353_v16 = vpop.f32.mrf.mxu1 }
 0x10a   :  { %8056 = vst [vmem:[#allocation57_spill] sm:$0xff] %v6017_v56  ;;  %v6020_v53 = vadd.f32 %v353_v16, %v5972_v55  ;;  %v6035_v16 = vrot.slane %v525_v10, %v5902_v34  ;;  %v6339_v56 = vld [vmem:[#allocation4] sm:$0xff] }
 0x10b   :  { %v355_v18 = vpop.f32.mrf.mxu1  ;;  %v442_v30 = vpop.f32.mrf.mxu0 }
 0x10c   :  { %8057 = vst [vmem:[#allocation58_spill] sm:$0xff] %v6020_v53  ;;  %v6026_v9 = vadd.f32 %v355_v18, %v5957_v25  ;;  %v6029_v21 = vadd.f32 %v442_v30, %v5962_v41  ;;  %v205_v18 = vadd.f32 %v5918_v42, %v5910_v37  ;;  %v6044_v30 = vrot.slane %v525_v10, %v5907_v36 }
 0x10d   :  { %v359_v57 = vpop.f32.mrf.mxu1  ;;  %v444_v52 = vpop.f32.mrf.mxu0  ;;  %v207_v37 = vadd.f32 %v5923_v45, %v5913_v38 }
 0x10e   :  { %8058 = vst [vmem:[#allocation59_spill] sm:$0xff] %v6029_v21  ;;  %v6032_v1 = vadd.f32 %v359_v57, %v5972_v55  ;;  %v6038_v53 = vadd.f32 %v444_v52, %v5969_v51  ;;  %8061 = vst [vmem:[#allocation62_spill] sm:$0xff] %v6044_v30 }
 0x10f   :  { %v361_v49 = vpop.f32.mrf.mxu1 }
 0x110   :  { %8059 = vst [vmem:[#allocation60_spill] sm:$0xff] %v6032_v1  ;;  %8060 = vst [vmem:[#allocation61_spill] sm:$0xff] %v6038_v53 }
 0x111   :  { %v685_v46 = vpop.f32.mrf.mxu1 }
 0x112   :  { %v686_v35 = vadd.f32 %v685_v46, %v6035_v16 }
 0x113   :  { %v687_v21 = vpop.f32.mrf.mxu1 }
 0x114   :  { %v760_v4 = vadd.f32 %v686_v35, %v205_v18  ;;  %v448_v57 = vpop.f32.mrf.mxu0  ;;  %v688_v52 = vadd.f32 %v687_v21, %v6044_v30 }
 0x115   :  { %v6047_v1 = vadd.f32 %v448_v57, %v5962_v41 }
 0x116   :  { %v4182_v43 = vmul.f32 -1.442695, %v760_v4  ;;  %v450_v53 = vpop.f32.mrf.mxu0  ;;  %v767_v42 = vadd.f32 %v688_v52, %v207_v37 }
 0x117   :  { %8062 = vst [vmem:[#allocation63_spill] sm:$0xff] %v6047_v1  ;;  %v6051_v40 = vadd.f32 %v450_v53, %v5969_v51 }
 0x118   :  { %5084 = vpow2.f32 %v4182_v43  ;;  %v4183_v4 = vmul.f32 -1.442695, %v767_v42  ;;  %v542_v42 = vld [vmem:[%s7831_s7] sm:$0x7] }
 0x119   :  { %8063 = vst [vmem:[#allocation64_spill] sm:$0xff] %v6051_v40 }
 0x11a   :  { %v454_v46 = vpop.f32.mrf.mxu0  ;;  %5086 = vpow2.f32 %v4183_v4 }
 0x11b   :  { %v6056_v58 = vadd.f32 %v454_v46, %v5962_v41 }
 0x11c   :  { %v456_v35 = vpop.f32.mrf.mxu0 }
 0x11d   :  { %8064 = vst [vmem:[#allocation65_spill] sm:$0xff] %v6056_v58  ;;  %v6059_v18 = vadd.f32 %v456_v35, %v5969_v51  ;;  %v6085_v58 = vrot.slane %v542_v42, %v5907_v36 }
 0x11f   :  { %8065 = vst [vmem:[#allocation66_spill] sm:$0xff] %v6059_v18 }
 0x120   :  { %v460_v57 = vpop.f32.mrf.mxu0 }
 0x121   :  { %v6062_v21 = vadd.f32 %v460_v57, %v5962_v41  ;;  %v6077_v57 = vrot.slane %v542_v42, %v5902_v34 }
 0x122   :  { %v462_v53 = vpop.f32.mrf.mxu0 }
 0x123   :  { %8066 = vst [vmem:[#allocation67_spill] sm:$0xff] %v6062_v21  ;;  %v6065_v40 = vadd.f32 %v462_v53, %v5969_v51 }
 0x125   :  { %8067 = vst [vmem:[#allocation68_spill] sm:$0xff] %v6065_v40  ;;  %v5085_v38 = vpop.eup %5084 }
 0x126   :  { %v764_v43 = vadd.f32 1.0, %v5085_v38  ;;  %v466_v45 = vpop.f32.mrf.mxu0  ;;  %v6080_v38 = vrot.slane %v525_v10, %v5952_v5  ;;  %v318_v10 = vadd.f32 %v5964_v44, %v5972_v55 }
 0x127   :  { %v6068_v52 = vadd.f32 %v466_v45, %v5962_v41  ;;  %v5087_v53 = vpop.eup %5086 }
 0x128   :  { %5088 = vrcp.f32 %v764_v43  ;;  %v468_v37 = vpop.f32.mrf.mxu0  ;;  %v362_v43 = vadd.f32 %v361_v49, %v5957_v25  ;;  %v771_v1 = vadd.f32 1.0, %v5087_v53 }
 0x129   :  { %v6071_v46 = vadd.f32 %v468_v37, %v5969_v51 }
 0x12a   :  { %5090 = vrcp.f32 %v771_v1 }
 0x12c   :  { %v472_v35 = vpop.f32.mrf.mxu0 }
 0x12d   :  { %v473_v25 = vadd.f32 %v472_v35, %v5962_v41 }
 0x12e   :  { %v474_v4 = vpop.f32.mrf.mxu0 }
 0x131   :  { %v895_v45 = vpop.f32.mrf.mxu1 }
 0x132   :  { %v896_v37 = vadd.f32 %v895_v45, %v6077_v57  ;;  %v756_v18 = vpop.f32.mrf.mxu0 }
 0x133   :  { %v757_v0 = vadd.f32 %v756_v18, %v6080_v38  ;;  %v897_v48 = vpop.f32.mrf.mxu1 }
 0x134   :  { %v970_v39 = vadd.f32 %v896_v37, %v362_v43  ;;  %v4548_v34 = vpop.f32.mrf.mxu0  ;;  %v898_v49 = vadd.f32 %v897_v48, %v6085_v58  ;;  %v991_v43 = vld [vmem:[%s7825_s1] sm:$0xff] }
 0x135   :  { %v5089_v40 = vpop.eup %5088  ;;  %v6101_v34 = vrot.slane %v542_v42, %v5952_v5  ;;  %v8080_v42 = vld [vmem:[#allocation20_spill] sm:$0xff] }
 0x136   :  { %v4184_v21 = vmul.f32 -1.442695, %v970_v39  ;;  %v774_v47 = vmul.f32 %v5089_v40, %v757_v0  ;;  %v977_v36 = vadd.f32 %v898_v49, %v473_v25  ;;  %v999_v39 = vsub.f32 1.0, %v991_v43 }
 0x137   :  { %v5091_v18 = vpop.eup %5090  ;;  %8068 = vst [vmem:[#allocation69_spill] sm:$0xff] %v6101_v34  ;;  %v8069_v25 = vmov 0.0  }
 0x138   :  { %5092 = vpow2.f32 %v4184_v21  ;;  %v775_v53 = vadd.f32 %v774_v47, %v318_v10  ;;  %v4185_v45 = vmul.f32 -1.442695, %v977_v36  ;;  %v777_v55 = vsub.f32 1.0, %v5091_v18  ;;  %v8082_v36 = vld [vmem:[#allocation22_spill] sm:$0xff] }
 0x139   :  { %v779_v0 = vmul.f32 0.0, %v5091_v18  ;;  %v1000_v1 = vmul.f32 0.0, %v999_v39 }
 0x13a   :  { %5094 = vtanh.f32 %v775_v53 }
 0x13b   :  { %5096 = vpow2.f32 %v4185_v45  ;;  %v8083_v45 = vld [vmem:[#allocation23_spill] sm:$0xff] }
 0x13c   :  { %8105 = vst [vmem:[#allocation23_spill] sm:$0xff] %v6339_v56 }
 0x145   :  { %v5093_v37 = vpop.eup %5092 }
 0x146   :  { %v974_v44 = vadd.f32 1.0, %v5093_v37 }
 0x147   :  { %v5095_v40 = vpop.eup %5094 }
 0x148   :  { %5098 = vrcp.f32 %v974_v44  ;;  %v778_v48 = vmul.f32 %v5095_v40, %v777_v55  ;;  %v5097_v35 = vpop.eup %5096  ;;  %v8086_v44 = vld [vmem:[#allocation26_spill] sm:$0xff]  ;;  %v8087_v40 = vld [vmem:[#allocation27_spill] sm:$0xff] }
 0x149   :  { %v981_v10 = vadd.f32 1.0, %v5097_v35  ;;  %v6201_v35 = vld [vmem:[#allocation4 + $0x160] sm:$0xff] }
 0x14a   :  { %v780_v41 = vadd.f32 %v779_v0, %v778_v48 }
 0x14b   :  { %5100 = vrcp.f32 %v981_v10  ;;  %v6205_v10 = vld [vmem:[#allocation4 + $0x140] sm:$0xff] }
 0x14c   :  { %v994_v47 = vmul.f32 %v991_v43, %v780_v41  ;;  %v8089_v41 = vld [vmem:[#allocation29_spill] sm:$0xff] }
 0x14e   :  { %996 = vst [vmem:[%s7832_s8] sm:$0xff] %v994_v47  ;;  %v6098_v21 = vadd.f32 %v1000_v1, %v994_v47  ;;  %v6195_v1 = vld [vmem:[#allocation4 + $0x158] sm:$0xff]  ;;  %v6199_v47 = vld [vmem:[#allocation4 + $0x150] sm:$0xff] }
 0x150   :  { %1130 = vmatmul.mubr.f32.vlgmr.msra.gmra.mxu1 %v6098_v21  ;;  %4617 = vmatmul.mubr.f32.vlgmr.msra.gmra.mxu0 %v6098_v21 }
 0x151   :  { %1276 = vmatpush1.msra.mxu1 %v5608_v60  ;;  %4620 = vmatpush3.msra.mxu0 %v5762_v17 }
 0x152   :  { %v966_v49 = vpop.f32.mrf.mxu0  ;;  %1277 = vmatprep.subr.mxu1 %v5612_v61  ;;  %4621 = vmatprep.subr.mxu0 %v8069_v25  ;;  %v475_v61 = vadd.f32 %v474_v4, %v5969_v51  ;;  %v8078_v51 = vld [vmem:[#allocation18_spill] sm:$0xff]  ;;  %v8081_v4 = vld [vmem:[#allocation21_spill] sm:$0xff] }
 0x153   :  { %v967_v53 = vadd.f32 %v966_v49, %v6101_v34  ;;  %1278 = vmatpush1.msra.mxu1 %v5617_v62  ;;  %4622 = vmatpush3.msra.mxu0 %v5769_v14  ;;  %v8075_v14 = vld [vmem:[#allocation15_spill] sm:$0xff]  ;;  %v6209_v49 = vld [vmem:[#allocation4 + $0x138] sm:$0xff] }
 0x154   :  { %v4583_v5 = vpop.f32.mrf.mxu0  ;;  %1279 = vmatprep.subr.mxu1 %v5620_v63  ;;  %4623 = vmatprep.subr.mxu0 %v8069_v25  ;;  %v8070_v63 = vld [vmem:[#allocation10_spill] sm:$0xff] }
 0x155   :  { %v5099_v60 = vpop.eup %5098  ;;  %1280 = vmatpush1.msra.mxu1 %v5626_v2  ;;  %4624 = vmatpush3.msra.mxu0 %v5775_v8  ;;  %v8071_v2 = vld [vmem:[#allocation11_spill] sm:$0xff]  ;;  %v8072_v8 = vld [vmem:[#allocation12_spill] sm:$0xff] }
 0x156   :  { %v984_v17 = vmul.f32 %v5099_v60, %v967_v53  ;;  %1281 = vmatprep.subr.mxu1 %v5630_v3  ;;  %4625 = vmatprep.subr.mxu0 %v8069_v25  ;;  %v8073_v3 = vld [vmem:[#allocation13_spill] sm:$0xff]  ;;  %v6211_v53 = vld [vmem:[#allocation4 + $0x148] sm:$0xff]  ;;  %v6219_v60 = vld [vmem:[#allocation4 + $0x120] sm:$0xff] }
 0x157   :  { %1282 = vmatpush1.msra.mxu1 %v5637_v6  ;;  %4626 = vmatpush3.msra.mxu0 %v5781_v15  ;;  %v8074_v6 = vld [vmem:[#allocation14_spill] sm:$0xff]  ;;  %v8076_v15 = vld [vmem:[#allocation16_spill] sm:$0xff]  ;;  %v6215_v5 = vld [vmem:[#allocation4 + $0x128] sm:$0xff] }
 0x158   :  { %v985_v62 = vadd.f32 %v984_v17, %v475_v61  ;;  %1283 = vmatprep.subr.mxu1 %v8070_v63  ;;  %4627 = vmatprep.subr.mxu0 %v8069_v25  ;;  %v6221_v61 = vld [vmem:[#allocation4 + $0x130] sm:$0xff]  ;;  %v6231_v63 = vld [vmem:[#allocation4 + $0x118] sm:$0xff] }
 0x159   :  { %1284 = vmatpush1.msra.mxu1 %v8071_v2  ;;  %4628 = vmatpush3.msra.mxu0 %v5787_v13  ;;  %v8077_v13 = vld [vmem:[#allocation17_spill] sm:$0xff]  ;;  %v6225_v17 = vld [vmem:[#allocation4 + $0x110] sm:$0xff] }
 0x15a   :  { %5102 = vtanh.f32 %v985_v62  ;;  %1285 = vmatprep.subr.mxu1 %v8072_v8  ;;  %4629 = vmatprep.subr.mxu0 %v8069_v25  ;;  %v6229_v62 = vld [vmem:[#allocation4 + $0x108] sm:$0xff]  ;;  %v6235_v2 = vld [vmem:[#allocation4 + $0xf8] sm:$0xff]  ;;  %v6239_v8 = vld [vmem:[#allocation4 + $0xf0] sm:$0xff] }
 0x15b   :  { %1286 = vmatpush1.msra.mxu1 %v8073_v3  ;;  %4630 = vmatpush3.msra.mxu0 %v5793_v11  ;;  %v8079_v11 = vld [vmem:[#allocation19_spill] sm:$0xff]  ;;  %v6241_v3 = vld [vmem:[#allocation4 + $0x100] sm:$0xff] }
 0x15c   :  { %1287 = vmatprep.subr.mxu1 %v8074_v6  ;;  %4631 = vmatprep.subr.mxu0 %v8069_v25  ;;  %v6245_v6 = vld [vmem:[#allocation4 + $0xe0] sm:$0xff] }
 0x15d   :  { %1288 = vmatpush1.msra.mxu1 %v8075_v14  ;;  %4632 = vmatpush3.msra.mxu0 %v5799_v22  ;;  %v5101_v22 = vpop.eup %5100  ;;  %v6249_v14 = vld [vmem:[#allocation4 + $0xd8] sm:$0xff] }
 0x15e   :  { %1289 = vmatprep.subr.mxu1 %v8076_v15  ;;  %4633 = vmatprep.subr.mxu0 %v8069_v25  ;;  %v987_v18 = vsub.f32 1.0, %v5101_v22  ;;  %v989_v39 = vmul.f32 0.0, %v5101_v22  ;;  %v6251_v15 = vld [vmem:[#allocation4 + $0xe8] sm:$0xff] }
 0x15f   :  { %1290 = vmatpush1.msra.mxu1 %v8077_v13  ;;  %4634 = vmatpush3.msra.mxu0 %v5805_v23  ;;  %v4186_v23 = vld [vmem:[%s7825_s1 + $0x38] sm:$0xff]  ;;  %v6255_v13 = vld [vmem:[#allocation4 + $0xc8] sm:$0xff] }
 0x160   :  { %1291 = vmatprep.subr.mxu1 %v8078_v51  ;;  %4635 = vmatprep.subr.mxu0 %v8069_v25  ;;  %v1002_v43 = vsub.f32 1.0, %v4186_v23  ;;  %v6259_v51 = vld [vmem:[#allocation4 + $0xc0] sm:$0xff]  ;;  %v6269_v22 = vld [vmem:[#allocation4 + $0xa8] sm:$0xff] }
 0x161   :  { %1292 = vmatpush1.msra.mxu1 %v8079_v11  ;;  %4636 = vmatpush3.msra.mxu0 %v5811_v24  ;;  %v8084_v24 = vld [vmem:[#allocation24_spill] sm:$0xff] }
 0x162   :  { %1293 = vmatprep.subr.mxu1 %v8080_v42  ;;  %4637 = vmatprep.subr.mxu0 %v8069_v25  ;;  %v1003_v48 = vmul.f32 0.0, %v1002_v43  ;;  %v6261_v11 = vld [vmem:[#allocation4 + $0xd0] sm:$0xff]  ;;  %v6291_v43 = vld [vmem:[#allocation4 + $0x88] sm:$0xff]  ;;  %8106 = vst [vmem:[#allocation24_spill] sm:$0xff] %v6341_v12 }
 0x163   :  { %1294 = vmatpush1.msra.mxu1 %v8081_v4  ;;  %4638 = vmatpush3.msra.mxu0 %v5817_v26  ;;  %v8085_v26 = vld [vmem:[#allocation25_spill] sm:$0xff]  ;;  %v6265_v42 = vld [vmem:[#allocation4 + $0xb0] sm:$0xff] }
 0x164   :  { %1295 = vmatprep.subr.mxu1 %v8082_v36  ;;  %4639 = vmatprep.subr.mxu0 %v8069_v25  ;;  %v6271_v4 = vld [vmem:[#allocation4 + $0xb8] sm:$0xff]  ;;  %v6279_v36 = vld [vmem:[#allocation4 + $0x90] sm:$0xff]  ;;  %8107 = vst [vmem:[#allocation25_spill] sm:$0xff] %v6345_v59 }
 0x165   :  { %1296 = vmatpush1.msra.mxu1 %v8083_v45  ;;  %4640 = vmatpush3.msra.mxu0 %v5823_v27  ;;  %v6281_v45 = vld [vmem:[#allocation4 + $0xa0] sm:$0xff] }
 0x166   :  { %1297 = vmatprep.subr.mxu1 %v8084_v24  ;;  %4641 = vmatprep.subr.mxu0 %v8069_v25  ;;  %v6285_v24 = vld [vmem:[#allocation4 + $0x80] sm:$0xff] }
 0x167   :  { %v5103_v37 = vpop.eup %5102  ;;  %1298 = vmatpush1.msra.mxu1 %v8085_v26  ;;  %4642 = vmatpush3.msra.mxu0 %v5829_v28  ;;  %v8088_v28 = vld [vmem:[#allocation28_spill] sm:$0xff]  ;;  %v6299_v26 = vld [vmem:[#allocation4 + $0x60] sm:$0xff] }
 0x168   :  { %1299 = vmatprep.subr.mxu1 %v8086_v44  ;;  %4643 = vmatprep.subr.mxu0 %v8069_v25  ;;  %v988_v55 = vmul.f32 %v5103_v37, %v987_v18  ;;  %v6289_v18 = vld [vmem:[#allocation4 + $0x78] sm:$0xff]  ;;  %v6295_v37 = vld [vmem:[#allocation4 + $0x68] sm:$0xff]  ;;  %8093 = vst [vmem:[#allocation11_spill] sm:$0xff] %v6299_v26  ;;  %v6301_v44 = vld [vmem:[#allocation4 + $0x70] sm:$0xff] }
 0x169   :  { %1300 = vmatpush1.msra.mxu1 %v8087_v40  ;;  %4644 = vmatpush3.msra.mxu0 %v5835_v29  ;;  %v8090_v29 = vld [vmem:[#allocation30_spill] sm:$0xff]  ;;  %8092 = vst [vmem:[#allocation10_spill] sm:$0xff] %v6295_v37  ;;  %8094 = vst [vmem:[#allocation12_spill] sm:$0xff] %v6301_v44  ;;  %v6311_v40 = vld [vmem:[#allocation4 + $0x58] sm:$0xff] }
 0x16a   :  { %1301 = vmatprep.subr.mxu1 %v5728_v19  ;;  %4645 = vmatprep.subr.mxu0 %v8069_v25  ;;  %v990_v27 = vadd.f32 %v989_v39, %v988_v55  ;;  %v6305_v55 = vld [vmem:[#allocation4 + $0x50] sm:$0xff]  ;;  %v6309_v39 = vld [vmem:[#allocation4 + $0x48] sm:$0xff]  ;;  %8097 = vst [vmem:[#allocation15_spill] sm:$0xff] %v6311_v40 }
 0x16b   :  { %1302 = vmatpush1.msra.mxu1 %v5732_v20  ;;  %4646 = vmatpush3.msra.mxu0 %v5841_v31  ;;  %v8091_v20 = vld [vmem:[#allocation31_spill] sm:$0xff]  ;;  %v6186_v31 = vld [vmem:[#allocation4 + $0x170] sm:$0xff]  ;;  %8095 = vst [vmem:[#allocation13_spill] sm:$0xff] %v6305_v55  ;;  %8096 = vst [vmem:[#allocation14_spill] sm:$0xff] %v6309_v39 }
 0x16c   :  { %1303 = vmatprep.subr.mxu1 %v8088_v28  ;;  %4647 = vmatprep.subr.mxu0 %v8069_v25  ;;  %v995_v0 = vmul.f32 %v4186_v23, %v990_v27  ;;  %v6275_v23 = vld [vmem:[#allocation4 + $0x98] sm:$0xff]  ;;  %v6321_v28 = vld [vmem:[#allocation4 + $0x40] sm:$0xff] }
 0x16d   :  { %1304 = vmatpush1.msra.mxu1 %v8089_v41  ;;  %4648 = vmatpush3.msra.mxu0 %v5847_v32  ;;  %v6189_v32 = vld [vmem:[#allocation4 + $0x168] sm:$0xff]  ;;  %v6315_v27 = vld [vmem:[#allocation4 + $0x38] sm:$0xff]  ;;  %8100 = vst [vmem:[#allocation18_spill] sm:$0xff] %v6321_v28 }
 0x16e   :  { %1305 = vmatprep.subr.mxu1 %v8090_v29  ;;  %4649 = vmatprep.subr.mxu0 %v8069_v25  ;;  %4187 = vst [vmem:[%s7833_s9 + $0x38] sm:$0xff] %v995_v0  ;;  %v6173_v19 = vadd.f32 %v1003_v48, %v995_v0  ;;  %8098 = vst [vmem:[#allocation16_spill] sm:$0xff] %v6315_v27  ;;  %v6319_v48 = vld [vmem:[#allocation4 + $0x30] sm:$0xff]  ;;  %v6325_v0 = vld [vmem:[#allocation4 + $0x20] sm:$0xff] }
 0x16f   :  { %1306 = vmatpush1.msra.mxu1 %v8091_v20  ;;  %1339 = vmatprep.mubr.f32.mxu1 %v8069_v25  ;;  %8099 = vst [vmem:[#allocation17_spill] sm:$0xff] %v6319_v48  ;;  %8101 = vst [vmem:[#allocation19_spill] sm:$0xff] %v6325_v0  ;;  %v6329_v41 = vld [vmem:[#allocation4 + $0x18] sm:$0xff]  ;;  %v6331_v29 = vld [vmem:[#allocation4 + $0x28] sm:$0xff] }
 0x170   :  { %4650 = vmatpush3.msra.mxu0 %v5853_v33  ;;  %4651 = vmatprep.mubr.msk.f32.mxu0 %vm5293_vm1, %v8069_v25  ;;  %v6191_v33 = vld [vmem:[#allocation4 + $0x178] sm:$0xff]  ;;  %8102 = vst [vmem:[#allocation20_spill] sm:$0xff] %v6329_v41  ;;  %8103 = vst [vmem:[#allocation21_spill] sm:$0xff] %v6331_v29  ;;  %v6335_v20 = vld [vmem:[#allocation4 + $0x8] sm:$0xff] }
 0x171   :  { %1340 = vmatmul.mubr.f32.vlgmr.msra.gmra.mxu1 %v6173_v19  ;;  %4652 = vmatmul.mubr.f32.vlgmr.msra.gmra.mxu0 %v6173_v19  ;;  %8104 = vst [vmem:[#allocation22_spill] sm:$0xff] %v6335_v20 }
 0x172   :  { %4654 = vmatprep.subr.mxu0 %v8069_v25  ;;  %1577 = vmatprep.mubr.f32.mxu1 %v8069_v25 }
 0x173   :  { %4686 = vmatprep.mubr.msk.f32.mxu0 %vm5293_vm1, %v8069_v25  ;;  %1513 = vmatprep.subr.mxu1 %v6186_v31 }
 0x174   :  { %1514 = vmatpush1.msra.mxu1 %v6189_v32  ;;  %4655 = vmatpush3.msra.mxu0 %v6191_v33 }
 0x175   :  { %1515 = vmatprep.subr.mxu1 %v6195_v1  ;;  %4656 = vmatprep.subr.mxu0 %v8069_v25 }
 0x176   :  { %1516 = vmatpush1.msra.mxu1 %v6199_v47  ;;  %4657 = vmatpush3.msra.mxu0 %v6201_v35 }
 0x177   :  { %1517 = vmatprep.subr.mxu1 %v6205_v10  ;;  %4658 = vmatprep.subr.mxu0 %v8069_v25 }
 0x178   :  { %1518 = vmatpush1.msra.mxu1 %v6209_v49  ;;  %4659 = vmatpush3.msra.mxu0 %v6211_v53 }
 0x179   :  { %1519 = vmatprep.subr.mxu1 %v6215_v5  ;;  %4660 = vmatprep.subr.mxu0 %v8069_v25 }
 0x17a   :  { %1520 = vmatpush1.msra.mxu1 %v6219_v60  ;;  %4661 = vmatpush3.msra.mxu0 %v6221_v61 }
 0x17b   :  { %1521 = vmatprep.subr.mxu1 %v6225_v17  ;;  %4662 = vmatprep.subr.mxu0 %v8069_v25 }
 0x17c   :  { %1522 = vmatpush1.msra.mxu1 %v6229_v62  ;;  %4663 = vmatpush3.msra.mxu0 %v6231_v63 }
 0x17d   :  { %1523 = vmatprep.subr.mxu1 %v6235_v2  ;;  %4664 = vmatprep.subr.mxu0 %v8069_v25 }
 0x17e   :  { %1524 = vmatpush1.msra.mxu1 %v6239_v8  ;;  %4665 = vmatpush3.msra.mxu0 %v6241_v3 }
 0x17f   :  { %1525 = vmatprep.subr.mxu1 %v6245_v6  ;;  %4666 = vmatprep.subr.mxu0 %v8069_v25 }
 0x180   :  { %1526 = vmatpush1.msra.mxu1 %v6249_v14  ;;  %4667 = vmatpush3.msra.mxu0 %v6251_v15 }
 0x181   :  { %1527 = vmatprep.subr.mxu1 %v6255_v13  ;;  %4668 = vmatprep.subr.mxu0 %v8069_v25 }
 0x182   :  { %1528 = vmatpush1.msra.mxu1 %v6259_v51  ;;  %4669 = vmatpush3.msra.mxu0 %v6261_v11 }
 0x183   :  { %1529 = vmatprep.subr.mxu1 %v6265_v42  ;;  %4670 = vmatprep.subr.mxu0 %v8069_v25 }
 0x184   :  { %1530 = vmatpush1.msra.mxu1 %v6269_v22  ;;  %4671 = vmatpush3.msra.mxu0 %v6271_v4 }
 0x185   :  { %1531 = vmatprep.subr.mxu1 %v6275_v23  ;;  %4672 = vmatprep.subr.mxu0 %v8069_v25 }
 0x186   :  { %1532 = vmatpush1.msra.mxu1 %v6279_v36  ;;  %4673 = vmatpush3.msra.mxu0 %v6281_v45 }
 0x187   :  { %1533 = vmatprep.subr.mxu1 %v6285_v24  ;;  %4674 = vmatprep.subr.mxu0 %v8069_v25 }
 0x188   :  { %1534 = vmatpush1.msra.mxu1 %v6289_v18  ;;  %4675 = vmatpush3.msra.mxu0 %v6291_v43 }
 0x189   :  { %1535 = vmatprep.subr.mxu1 %v6295_v37  ;;  %4676 = vmatprep.subr.mxu0 %v8069_v25 }
 0x18a   :  { %1536 = vmatpush1.msra.mxu1 %v6299_v26  ;;  %4677 = vmatpush3.msra.mxu0 %v6301_v44 }
 0x18b   :  { %1537 = vmatprep.subr.mxu1 %v6305_v55  ;;  %4678 = vmatprep.subr.mxu0 %v8069_v25 }
 0x18c   :  { %1538 = vmatpush1.msra.mxu1 %v6309_v39  ;;  %4679 = vmatpush3.msra.mxu0 %v6311_v40 }
 0x18d   :  { %1539 = vmatprep.subr.mxu1 %v6315_v27  ;;  %4680 = vmatprep.subr.mxu0 %v8069_v25 }
 0x18e   :  { %1540 = vmatpush1.msra.mxu1 %v6319_v48  ;;  %4681 = vmatpush3.msra.mxu0 %v6321_v28 }
 0x18f   :  { %1541 = vmatprep.subr.mxu1 %v6325_v0  ;;  %4682 = vmatprep.subr.mxu0 %v8069_v25 }
 0x190   :  { %1542 = vmatpush1.msra.mxu1 %v6329_v41  ;;  %4683 = vmatpush3.msra.mxu0 %v6331_v29 }
 0x191   :  { %1543 = vmatprep.subr.mxu1 %v6335_v20  ;;  %4684 = vmatprep.subr.mxu0 %v8069_v25 }
 0x192   :  { %1544 = vmatpush1.msra.mxu1 %v6339_v56  ;;  %4685 = vmatpush3.msra.mxu0 %v6341_v12 }
 0x193   :  { %1723 = vmatprep.subr.mxu1 %v6345_v59  ;;  %4689 = vmatprep.subr.mxu0 %v8069_v25 }
 0x210   :  { %v1131_v29 = vpop.f32.mrf.mxu1  ;;  %v1202_v41 = vpop.f32.mrf.mxu0 }
 0x211   :  { %v1132_v20 = vadd.f32 %v1131_v29, %v6035_v16 }
 0x212   :  { %v1133_v0 = vpop.f32.mrf.mxu1  ;;  %v4618_v28 = vpop.f32.mrf.mxu0 }
 0x213   :  { %v1206_v48 = vadd.f32 %v1132_v20, %v5932_v50  ;;  %v1134_v40 = vadd.f32 %v1133_v0, %v6044_v30  ;;  %v1203_v28 = vadd.f32 %v1202_v41, %v6080_v38 }
 0x215   :  { %v4188_v27 = vmul.f32 -1.442695, %v1206_v48  ;;  %v1213_v12 = vadd.f32 %v1134_v40, %v5938_v54 }
 0x217   :  { %5104 = vpow2.f32 %v4188_v27  ;;  %v4189_v56 = vmul.f32 -1.442695, %v1213_v12 }
 0x219   :  { %5106 = vpow2.f32 %v4189_v56 }
 0x224   :  { %v5105_v39 = vpop.eup %5104 }
 0x225   :  { %v1210_v59 = vadd.f32 1.0, %v5105_v39  ;;  %v4192_v39 = vld [vmem:[%s7825_s1 + $0x8] sm:$0xff] }
 0x226   :  { %v5107_v55 = vpop.eup %5106 }
 0x227   :  { %5108 = vrcp.f32 %v1210_v59  ;;  %v1217_v44 = vadd.f32 1.0, %v5107_v55 }
 0x229   :  { %5110 = vrcp.f32 %v1217_v44 }
 0x231   :  { %v1341_v26 = vpop.f32.mrf.mxu1  ;;  %v1412_v37 = vpop.f32.mrf.mxu0 }
 0x232   :  { %v1342_v29 = vadd.f32 %v1341_v26, %v6077_v57 }
 0x233   :  { %v1343_v50 = vpop.f32.mrf.mxu1  ;;  %v4653_v48 = vpop.f32.mrf.mxu0 }
 0x234   :  { %v5109_v20 = vpop.eup %5108  ;;  %v1416_v27 = vadd.f32 %v1342_v29, %v6026_v9  ;;  %v1344_v12 = vadd.f32 %v1343_v50, %v6085_v58  ;;  %v1447_v50 = vsub.f32 1.0, %v4192_v39 }
 0x235   :  { %v1220_v0 = vmul.f32 %v5109_v20, %v1203_v28 }
 0x236   :  { %v4190_v54 = vmul.f32 -1.442695, %v1416_v27  ;;  %v1423_v56 = vadd.f32 %v1344_v12, %v6068_v52  ;;  %v5111_v26 = vpop.eup %5110  ;;  %v1448_v52 = vmul.f32 %v1447_v50, %v6098_v21  ;;  %v6369_v27 = vld [vmem:[#allocation6 + $0x168] sm:$0xff] }
 0x237   :  { %v1221_v59 = vadd.f32 %v1220_v0, %v5981_v7  ;;  %v1223_v9 = vsub.f32 1.0, %v5111_v26  ;;  %v1225_v28 = vmul.f32 %v5111_v26, %v6098_v21  ;;  %v6371_v0 = vld [vmem:[#allocation6 + $0x178] sm:$0xff]  ;;  %v6379_v21 = vld [vmem:[#allocation6 + $0x160] sm:$0xff]  ;;  %v6389_v26 = vld [vmem:[#allocation6 + $0x148] sm:$0xff] }
 0x238   :  { %5112 = vpow2.f32 %v4190_v54  ;;  %v4191_v55 = vmul.f32 -1.442695, %v1423_v56  ;;  %v6373_v54 = vld [vmem:[#allocation6 + $0x158] sm:$0xff]  ;;  %v6383_v56 = vld [vmem:[#allocation6 + $0x140] sm:$0xff]  ;;  %8108 = vst [vmem:[#allocation26_spill] sm:$0xff] %v6389_v26  ;;  %v6408_v50 = vld [vmem:[#allocation6 + $0x108] sm:$0xff] }
 0x239   :  { %5114 = vtanh.f32 %v1221_v59  ;;  %v6377_v59 = vld [vmem:[#allocation6 + $0x150] sm:$0xff]  ;;  %8113 = vst [vmem:[#allocation31_spill] sm:$0xff] %v6408_v50 }
 0x23a   :  { %5116 = vpow2.f32 %v4191_v55  ;;  %v6387_v55 = vld [vmem:[#allocation6 + $0x138] sm:$0xff] }
 0x245   :  { %v5113_v40 = vpop.eup %5112 }
 0x246   :  { %v5115_v41 = vpop.eup %5114  ;;  %v1420_v44 = vadd.f32 1.0, %v5113_v40  ;;  %v6393_v40 = vld [vmem:[#allocation6 + $0x128] sm:$0xff] }
 0x247   :  { %v1224_v29 = vmul.f32 %v5115_v41, %v1223_v9  ;;  %v5117_v12 = vpop.eup %5116  ;;  %8109 = vst [vmem:[#allocation27_spill] sm:$0xff] %v6393_v40  ;;  %v6397_v9 = vld [vmem:[#allocation6 + $0x120] sm:$0xff]  ;;  %v6399_v41 = vld [vmem:[#allocation6 + $0x130] sm:$0xff] }
 0x248   :  { %5118 = vrcp.f32 %v1420_v44  ;;  %8110 = vst [vmem:[#allocation28_spill] sm:$0xff] %v6397_v9  ;;  %8111 = vst [vmem:[#allocation29_spill] sm:$0xff] %v6399_v41  ;;  %v1413_v44 = vadd.f32 %v1412_v37, %v6101_v34  ;;  %v6414_v37 = vld [vmem:[#allocation6 + $0xf8] sm:$0xff] }
 0x249   :  { %v1226_v7 = vadd.f32 %v1225_v28, %v1224_v29  ;;  %v6404_v29 = vld [vmem:[#allocation6 + $0x110] sm:$0xff]  ;;  %8115 = vst [vmem:[#allocation71_spill] sm:$0xff] %v6414_v37 }
 0x24a   :  { %8112 = vst [vmem:[#allocation30_spill] sm:$0xff] %v6404_v29 }
 0x24b   :  { %v1441_v48 = vmul.f32 %v4192_v39, %v1226_v7  ;;  %v1427_v39 = vadd.f32 1.0, %v5117_v12  ;;  %v6410_v7 = vld [vmem:[#allocation6 + $0x118] sm:$0xff]  ;;  %v6420_v12 = vld [vmem:[#allocation6 + $0x100] sm:$0xff] }
 0x24c   :  { %8114 = vst [vmem:[#allocation70_spill] sm:$0xff] %v6410_v7  ;;  %8117 = vst [vmem:[#allocation73_spill] sm:$0xff] %v6420_v12 }
 0x24d   :  { %4194 = vst [vmem:[%s7832_s8 + $0x8] sm:$0xff] %v1441_v48  ;;  %v6367_v20 = vadd.f32 %v1448_v52, %v1441_v48  ;;  %5120 = vrcp.f32 %v1427_v39  ;;  %v6418_v52 = vld [vmem:[#allocation6 + $0xf0] sm:$0xff]  ;;  %v6425_v39 = vld [vmem:[#allocation6 + $0xe0] sm:$0xff] }
 0x24e   :  { %8116 = vst [vmem:[#allocation72_spill] sm:$0xff] %v6418_v52  ;;  %8118 = vst [vmem:[#allocation74_spill] sm:$0xff] %v6425_v39 }
 0x24f   :  { %1578 = vmatmul.mubr.f32.vlgmr.msra.gmra.mxu1 %v6367_v20  ;;  %4687 = vmatmul.mubr.f32.vlgmr.msra.gmra.mxu0 %v6367_v20 }
 0x250   :  { %1724 = vmatpush1.msra.mxu1 %v6369_v27  ;;  %4690 = vmatpush3.msra.mxu0 %v6371_v0 }
 0x251   :  { %1725 = vmatprep.subr.mxu1 %v6373_v54  ;;  %4691 = vmatprep.subr.mxu0 %v8069_v25 }
 0x252   :  { %1726 = vmatpush1.msra.mxu1 %v6377_v59  ;;  %4692 = vmatpush3.msra.mxu0 %v6379_v21 }
 0x253   :  { %1727 = vmatprep.subr.mxu1 %v6383_v56  ;;  %4693 = vmatprep.subr.mxu0 %v8069_v25 }
 0x254   :  { %1728 = vmatpush1.msra.mxu1 %v6387_v55  ;;  %4694 = vmatpush3.msra.mxu0 %v6389_v26  ;;  %v6515_v26 = vld [vmem:[#allocation6 + $0x28] sm:$0xff] }
 0x255   :  { %v5119_v28 = vpop.eup %5118  ;;  %1729 = vmatprep.subr.mxu1 %v6393_v40  ;;  %4695 = vmatprep.subr.mxu0 %v8069_v25 }
 0x256   :  { %v1430_v48 = vmul.f32 %v5119_v28, %v1413_v44  ;;  %1730 = vmatpush1.msra.mxu1 %v6397_v9  ;;  %4696 = vmatpush3.msra.mxu0 %v6399_v41  ;;  %v6429_v44 = vld [vmem:[#allocation6 + $0xd8] sm:$0xff]  ;;  %v6431_v28 = vld [vmem:[#allocation6 + $0xe8] sm:$0xff]  ;;  %v6508_v41 = vld [vmem:[#allocation6 + $0x20] sm:$0xff] }
 0x257   :  { %1731 = vmatprep.subr.mxu1 %v6404_v29  ;;  %4697 = vmatprep.subr.mxu0 %v8069_v25  ;;  %8119 = vst [vmem:[#allocation75_spill] sm:$0xff] %v6429_v44  ;;  %8120 = vst [vmem:[#allocation76_spill] sm:$0xff] %v6431_v28  ;;  %v6504_v29 = vld [vmem:[#allocation6 + $0x40] sm:$0xff] }
 0x258   :  { %v1431_v40 = vadd.f32 %v1430_v48, %v6071_v46  ;;  %1732 = vmatpush1.msra.mxu1 %v6408_v50  ;;  %4698 = vmatpush3.msra.mxu0 %v6410_v7  ;;  %v6435_v46 = vld [vmem:[#allocation6 + $0xc8] sm:$0xff]  ;;  %v6439_v48 = vld [vmem:[#allocation6 + $0xc0] sm:$0xff]  ;;  %v6445_v7 = vld [vmem:[#allocation6 + $0xb0] sm:$0xff] }
 0x259   :  { %1733 = vmatprep.subr.mxu1 %v6414_v37  ;;  %4699 = vmatprep.subr.mxu0 %v8069_v25  ;;  %8121 = vst [vmem:[#allocation77_spill] sm:$0xff] %v6435_v46  ;;  %8122 = vst [vmem:[#allocation78_spill] sm:$0xff] %v6439_v48  ;;  %v6441_v37 = vld [vmem:[#allocation6 + $0xd0] sm:$0xff] }
 0x25a   :  { %5122 = vtanh.f32 %v1431_v40  ;;  %1734 = vmatpush1.msra.mxu1 %v6418_v52  ;;  %4700 = vmatpush3.msra.mxu0 %v6420_v12  ;;  %8123 = vst [vmem:[#allocation79_spill] sm:$0xff] %v6441_v37  ;;  %8124 = vst [vmem:[#allocation80_spill] sm:$0xff] %v6445_v7  ;;  %v6449_v40 = vld [vmem:[#allocation6 + $0xa8] sm:$0xff]  ;;  %v6451_v12 = vld [vmem:[#allocation6 + $0xb8] sm:$0xff]  ;;  %v5121_v52 = vpop.eup %5120 }
 0x25b   :  { %1735 = vmatprep.subr.mxu1 %v6425_v39  ;;  %4701 = vmatprep.subr.mxu0 %v8069_v25  ;;  %8125 = vst [vmem:[#allocation81_spill] sm:$0xff] %v6449_v40  ;;  %8126 = vst [vmem:[#allocation82_spill] sm:$0xff] %v6451_v12  ;;  %v6455_v39 = vld [vmem:[#allocation6 + $0x98] sm:$0xff] }
 0x25c   :  { %1736 = vmatpush1.msra.mxu1 %v6429_v44  ;;  %4702 = vmatpush3.msra.mxu0 %v6431_v28  ;;  %8127 = vst [vmem:[#allocation83_spill] sm:$0xff] %v6455_v39  ;;  %v6459_v28 = vld [vmem:[#allocation6 + $0x90] sm:$0xff]  ;;  %v6461_v44 = vld [vmem:[#allocation6 + $0xa0] sm:$0xff] }
 0x25d   :  { %1737 = vmatprep.subr.mxu1 %v6435_v46  ;;  %4703 = vmatprep.subr.mxu0 %v8069_v25  ;;  %8128 = vst [vmem:[#allocation84_spill] sm:$0xff] %v6459_v28  ;;  %8129 = vst [vmem:[#allocation85_spill] sm:$0xff] %v6461_v44  ;;  %v6465_v46 = vld [vmem:[#allocation6 + $0x80] sm:$0xff] }
 0x25e   :  { %1738 = vmatpush1.msra.mxu1 %v6439_v48  ;;  %4704 = vmatpush3.msra.mxu0 %v6441_v37  ;;  %8130 = vst [vmem:[#allocation86_spill] sm:$0xff] %v6465_v46  ;;  %v6469_v37 = vld [vmem:[#allocation6 + $0x78] sm:$0xff]  ;;  %v6471_v48 = vld [vmem:[#allocation6 + $0x88] sm:$0xff] }
 0x25f   :  { %1739 = vmatprep.subr.mxu1 %v6445_v7  ;;  %4705 = vmatprep.subr.mxu0 %v8069_v25  ;;  %8131 = vst [vmem:[#allocation87_spill] sm:$0xff] %v6469_v37  ;;  %8132 = vst [vmem:[#allocation88_spill] sm:$0xff] %v6471_v48  ;;  %v6475_v7 = vld [vmem:[#allocation6 + $0x68] sm:$0xff] }
 0x260   :  { %1740 = vmatpush1.msra.mxu1 %v6449_v40  ;;  %4706 = vmatpush3.msra.mxu0 %v6451_v12  ;;  %8133 = vst [vmem:[#allocation89_spill] sm:$0xff] %v6475_v7  ;;  %v6479_v12 = vld [vmem:[#allocation6 + $0x60] sm:$0xff]  ;;  %v6485_v40 = vld [vmem:[#allocation6 + $0x50] sm:$0xff] }
 0x261   :  { %1741 = vmatprep.subr.mxu1 %v6455_v39  ;;  %4707 = vmatprep.subr.mxu0 %v8069_v25  ;;  %8134 = vst [vmem:[#allocation90_spill] sm:$0xff] %v6479_v12  ;;  %v6481_v39 = vld [vmem:[#allocation6 + $0x70] sm:$0xff]  ;;  %8136 = vst [vmem:[#allocation92_spill] sm:$0xff] %v6485_v40 }
 0x262   :  { %1742 = vmatpush1.msra.mxu1 %v6459_v28  ;;  %4708 = vmatpush3.msra.mxu0 %v6461_v44  ;;  %8135 = vst [vmem:[#allocation91_spill] sm:$0xff] %v6481_v39  ;;  %v6489_v44 = vld [vmem:[#allocation6 + $0x48] sm:$0xff]  ;;  %v6491_v28 = vld [vmem:[#allocation6 + $0x58] sm:$0xff] }
 0x263   :  { %1743 = vmatprep.subr.mxu1 %v6465_v46  ;;  %4709 = vmatprep.subr.mxu0 %v8069_v25  ;;  %8137 = vst [vmem:[#allocation93_spill] sm:$0xff] %v6489_v44  ;;  %8138 = vst [vmem:[#allocation94_spill] sm:$0xff] %v6491_v28  ;;  %v4193_v46 = vld [vmem:[%s7825_s1 + $0x30] sm:$0xff] }
 0x264   :  { %1744 = vmatpush1.msra.mxu1 %v6469_v37  ;;  %4710 = vmatpush3.msra.mxu0 %v6471_v48  ;;  %v6498_v37 = vld [vmem:[#allocation6 + $0x38] sm:$0xff]  ;;  %v1433_v48 = vsub.f32 1.0, %v5121_v52  ;;  %v1450_v9 = vsub.f32 1.0, %v4193_v46 }
 0x265   :  { %1745 = vmatprep.subr.mxu1 %v6475_v7  ;;  %4711 = vmatprep.subr.mxu0 %v8069_v25  ;;  %v6502_v7 = vld [vmem:[#allocation6 + $0x30] sm:$0xff] }
 0x266   :  { %1746 = vmatpush1.msra.mxu1 %v6479_v12  ;;  %4712 = vmatpush3.msra.mxu0 %v6481_v39  ;;  %8139 = vst [vmem:[#allocation95_spill] sm:$0xff] %v6502_v7  ;;  %v1435_v39 = vmul.f32 %v5121_v52, %v6173_v19  ;;  %v6527_v52 = vld [vmem:[#allocation6 + $0x10] sm:$0xff] }
 0x267   :  { %v5123_v50 = vpop.eup %5122  ;;  %1747 = vmatprep.subr.mxu1 %v6485_v40  ;;  %4713 = vmatprep.subr.mxu0 %v8069_v25  ;;  %v6513_v40 = vld [vmem:[#allocation6 + $0x18] sm:$0xff] }
 0x268   :  { %1748 = vmatpush1.msra.mxu1 %v6489_v44  ;;  %4714 = vmatpush3.msra.mxu0 %v6491_v28  ;;  %v1434_v12 = vmul.f32 %v5123_v50, %v1433_v48  ;;  %v6519_v44 = vld [vmem:[#allocation6 + $0x8] sm:$0xff]  ;;  %v6523_v50 = vld [vmem:[#allocation6] sm:$0xff] }
 0x269   :  { %1749 = vmatprep.subr.mxu1 %v6498_v37  ;;  %4715 = vmatprep.subr.mxu0 %v8069_v25 }
 0x26a   :  { %1750 = vmatpush1.msra.mxu1 %v6502_v7  ;;  %4716 = vmatpush3.msra.mxu0 %v6504_v29  ;;  %v1436_v28 = vadd.f32 %v1435_v39, %v1434_v12  ;;  %v1451_v7 = vmul.f32 %v1450_v9, %v6173_v19  ;;  %v8140_v19 = vld [vmem:[#allocation10_spill] sm:$0xff] }
 0x26b   :  { %1751 = vmatprep.subr.mxu1 %v6508_v41  ;;  %4717 = vmatprep.subr.mxu0 %v8069_v25 }
 0x26c   :  { %1752 = vmatpush1.msra.mxu1 %v6513_v40  ;;  %4718 = vmatpush3.msra.mxu0 %v6515_v26  ;;  %v1442_v48 = vmul.f32 %v4193_v46, %v1436_v28 }
 0x26d   :  { %1753 = vmatprep.subr.mxu1 %v6519_v44  ;;  %4719 = vmatprep.subr.mxu0 %v8069_v25 }
 0x26e   :  { %1754 = vmatpush1.msra.mxu1 %v6523_v50  ;;  %1787 = vmatprep.mubr.f32.mxu1 %v8069_v25  ;;  %4195 = vst [vmem:[%s7833_s9 + $0x30] sm:$0xff] %v1442_v48  ;;  %v6537_v12 = vadd.f32 %v1451_v7, %v1442_v48  ;;  %v8158_v48 = vld [vmem:[#allocation57_spill] sm:$0xff] }
 0x26f   :  { %4720 = vmatpush3.msra.mxu0 %v6527_v52  ;;  %4721 = vmatprep.mubr.msk.f32.mxu0 %vm5293_vm1, %v8069_v25 }
 0x270   :  { %1788 = vmatmul.mubr.f32.vlgmr.msra.gmra.mxu1 %v6537_v12  ;;  %4722 = vmatmul.mubr.f32.vlgmr.msra.gmra.mxu0 %v6537_v12 }
 0x271   :  { %1961 = vmatprep.subr.mxu1 %v6186_v31  ;;  %4724 = vmatprep.subr.mxu0 %v8069_v25  ;;  %v8141_v31 = vld [vmem:[#allocation11_spill] sm:$0xff] }
 0x272   :  { %1962 = vmatpush1.msra.mxu1 %v6189_v32  ;;  %4725 = vmatpush3.msra.mxu0 %v6191_v33  ;;  %v8142_v32 = vld [vmem:[#allocation12_spill] sm:$0xff]  ;;  %v8143_v33 = vld [vmem:[#allocation13_spill] sm:$0xff] }
 0x273   :  { %1963 = vmatprep.subr.mxu1 %v6195_v1  ;;  %4726 = vmatprep.subr.mxu0 %v8069_v25  ;;  %v8144_v1 = vld [vmem:[#allocation14_spill] sm:$0xff] }
 0x274   :  { %1964 = vmatpush1.msra.mxu1 %v6199_v47  ;;  %4727 = vmatpush3.msra.mxu0 %v6201_v35  ;;  %v8145_v47 = vld [vmem:[#allocation15_spill] sm:$0xff]  ;;  %v8146_v35 = vld [vmem:[#allocation16_spill] sm:$0xff] }
 0x275   :  { %1965 = vmatprep.subr.mxu1 %v6205_v10  ;;  %4728 = vmatprep.subr.mxu0 %v8069_v25  ;;  %v8147_v10 = vld [vmem:[#allocation17_spill] sm:$0xff] }
 0x276   :  { %1966 = vmatpush1.msra.mxu1 %v6209_v49  ;;  %4729 = vmatpush3.msra.mxu0 %v6211_v53  ;;  %v8148_v49 = vld [vmem:[#allocation18_spill] sm:$0xff]  ;;  %v8149_v53 = vld [vmem:[#allocation19_spill] sm:$0xff] }
 0x277   :  { %1967 = vmatprep.subr.mxu1 %v6215_v5  ;;  %4730 = vmatprep.subr.mxu0 %v8069_v25  ;;  %v8150_v5 = vld [vmem:[#allocation20_spill] sm:$0xff] }
 0x278   :  { %1968 = vmatpush1.msra.mxu1 %v6219_v60  ;;  %4731 = vmatpush3.msra.mxu0 %v6221_v61  ;;  %v8151_v60 = vld [vmem:[#allocation21_spill] sm:$0xff]  ;;  %v8152_v61 = vld [vmem:[#allocation22_spill] sm:$0xff] }
 0x279   :  { %1969 = vmatprep.subr.mxu1 %v6225_v17  ;;  %4732 = vmatprep.subr.mxu0 %v8069_v25  ;;  %v8153_v17 = vld [vmem:[#allocation23_spill] sm:$0xff] }
 0x27a   :  { %1970 = vmatpush1.msra.mxu1 %v6229_v62  ;;  %4733 = vmatpush3.msra.mxu0 %v6231_v63  ;;  %v8154_v62 = vld [vmem:[#allocation24_spill] sm:$0xff]  ;;  %v8155_v63 = vld [vmem:[#allocation25_spill] sm:$0xff] }
 0x27b   :  { %1971 = vmatprep.subr.mxu1 %v6235_v2  ;;  %4734 = vmatprep.subr.mxu0 %v8069_v25 }
 0x27c   :  { %1972 = vmatpush1.msra.mxu1 %v6239_v8  ;;  %4735 = vmatpush3.msra.mxu0 %v6241_v3 }
 0x27d   :  { %1973 = vmatprep.subr.mxu1 %v6245_v6  ;;  %4736 = vmatprep.subr.mxu0 %v8069_v25 }
 0x27e   :  { %1974 = vmatpush1.msra.mxu1 %v6249_v14  ;;  %4737 = vmatpush3.msra.mxu0 %v6251_v15  ;;  %v8156_v15 = vld [vmem:[#allocation38_spill] sm:$0xff] }
 0x27f   :  { %1975 = vmatprep.subr.mxu1 %v6255_v13  ;;  %4738 = vmatprep.subr.mxu0 %v8069_v25 }
 0x280   :  { %1976 = vmatpush1.msra.mxu1 %v6259_v51  ;;  %4739 = vmatpush3.msra.mxu0 %v6261_v11 }
 0x281   :  { %1977 = vmatprep.subr.mxu1 %v6265_v42  ;;  %4740 = vmatprep.subr.mxu0 %v8069_v25  ;;  %v8157_v42 = vld [vmem:[#allocation40_spill] sm:$0xff] }
 0x282   :  { %1978 = vmatpush1.msra.mxu1 %v6269_v22  ;;  %4741 = vmatpush3.msra.mxu0 %v6271_v4 }
 0x283   :  { %1979 = vmatprep.subr.mxu1 %v6275_v23  ;;  %4742 = vmatprep.subr.mxu0 %v8069_v25 }
 0x284   :  { %1980 = vmatpush1.msra.mxu1 %v6279_v36  ;;  %4743 = vmatpush3.msra.mxu0 %v6281_v45 }
 0x285   :  { %1981 = vmatprep.subr.mxu1 %v6285_v24  ;;  %4744 = vmatprep.subr.mxu0 %v8069_v25 }
 0x286   :  { %1982 = vmatpush1.msra.mxu1 %v6289_v18  ;;  %4745 = vmatpush3.msra.mxu0 %v6291_v43 }
 0x287   :  { %1983 = vmatprep.subr.mxu1 %v8140_v19  ;;  %4746 = vmatprep.subr.mxu0 %v8069_v25 }
 0x288   :  { %1984 = vmatpush1.msra.mxu1 %v8141_v31  ;;  %4747 = vmatpush3.msra.mxu0 %v8142_v32 }
 0x289   :  { %1985 = vmatprep.subr.mxu1 %v8143_v33  ;;  %4748 = vmatprep.subr.mxu0 %v8069_v25 }
 0x28a   :  { %1986 = vmatpush1.msra.mxu1 %v8144_v1  ;;  %4749 = vmatpush3.msra.mxu0 %v8145_v47  ;;  %v8159_v1 = vld [vmem:[#allocation48_spill] sm:$0xff] }
 0x28b   :  { %1987 = vmatprep.subr.mxu1 %v8146_v35  ;;  %4750 = vmatprep.subr.mxu0 %v8069_v25  ;;  %v8160_v35 = vld [vmem:[#allocation67_spill] sm:$0xff] }
 0x28c   :  { %1988 = vmatpush1.msra.mxu1 %v8147_v10  ;;  %4751 = vmatpush3.msra.mxu0 %v8148_v49 }
 0x28d   :  { %1989 = vmatprep.subr.mxu1 %v8149_v53  ;;  %4752 = vmatprep.subr.mxu0 %v8069_v25 }
 0x28e   :  { %1990 = vmatpush1.msra.mxu1 %v8150_v5  ;;  %4753 = vmatpush3.msra.mxu0 %v8151_v60  ;;  %v4200_v5 = vld [vmem:[%s7825_s1 + $0x10] sm:$0xff] }
 0x28f   :  { %1991 = vmatprep.subr.mxu1 %v8152_v61  ;;  %4754 = vmatprep.subr.mxu0 %v8069_v25 }
 0x290   :  { %1992 = vmatpush1.msra.mxu1 %v8153_v17  ;;  %4755 = vmatpush3.msra.mxu0 %v8154_v62 }
 0x291   :  { %2025 = vmatprep.mubr.f32.mxu1 %v8069_v25  ;;  %4756 = vmatprep.mubr.msk.f32.mxu0 %vm5293_vm1, %v8069_v25 }
 0x292   :  { %2171 = vmatprep.subr.mxu1 %v8155_v63  ;;  %4759 = vmatprep.subr.mxu0 %v8069_v25 }
 0x30f   :  { %v1579_v2 = vpop.f32.mrf.mxu1  ;;  %v1650_v8 = vpop.f32.mrf.mxu0 }
 0x310   :  { %v1580_v3 = vadd.f32 %v1579_v2, %v6035_v16  ;;  %v1651_v7 = vadd.f32 %v1650_v8, %v6080_v38  ;;  %v1895_v8 = vsub.f32 1.0, %v4200_v5 }
 0x311   :  { %v1581_v6 = vpop.f32.mrf.mxu1  ;;  %v4688_v14 = vpop.f32.mrf.mxu0 }
 0x312   :  { %v1654_v13 = vadd.f32 %v1580_v3, %v8156_v15  ;;  %v1582_v11 = vadd.f32 %v1581_v6, %v6044_v30  ;;  %v1896_v14 = vmul.f32 %v1895_v8, %v6367_v20 }
 0x314   :  { %v4196_v51 = vmul.f32 -1.442695, %v1654_v13  ;;  %v1661_v22 = vadd.f32 %v1582_v11, %v8157_v42  ;;  %v8162_v11 = vld [vmem:[#allocation27_spill] sm:$0xff]  ;;  %v8166_v42 = vld [vmem:[#allocation68_spill] sm:$0xff] }
 0x316   :  { %5124 = vpow2.f32 %v4196_v51  ;;  %v4197_v4 = vmul.f32 -1.442695, %v1661_v22 }
 0x318   :  { %5126 = vpow2.f32 %v4197_v4  ;;  %v8168_v4 = vld [vmem:[#allocation70_spill] sm:$0xff] }
 0x323   :  { %v5125_v23 = vpop.eup %5124 }
 0x324   :  { %v1658_v36 = vadd.f32 1.0, %v5125_v23  ;;  %v8169_v23 = vld [vmem:[#allocation71_spill] sm:$0xff] }
 0x325   :  { %v5127_v45 = vpop.eup %5126 }
 0x326   :  { %5128 = vrcp.f32 %v1658_v36  ;;  %v1665_v24 = vadd.f32 1.0, %v5127_v45  ;;  %v8170_v36 = vld [vmem:[#allocation72_spill] sm:$0xff]  ;;  %v8171_v45 = vld [vmem:[#allocation73_spill] sm:$0xff] }
 0x328   :  { %5130 = vrcp.f32 %v1665_v24  ;;  %v8172_v24 = vld [vmem:[#allocation74_spill] sm:$0xff] }
 0x330   :  { %v1789_v18 = vpop.f32.mrf.mxu1  ;;  %v1860_v43 = vpop.f32.mrf.mxu0 }
 0x331   :  { %v1790_v9 = vadd.f32 %v1789_v18, %v6077_v57  ;;  %v1861_v51 = vadd.f32 %v1860_v43, %v6101_v34  ;;  %v8173_v18 = vld [vmem:[#allocation75_spill] sm:$0xff]  ;;  %v8174_v43 = vld [vmem:[#allocation76_spill] sm:$0xff] }
 0x332   :  { %v1791_v39 = vpop.f32.mrf.mxu1  ;;  %v4723_v28 = vpop.f32.mrf.mxu0 }
 0x333   :  { %v5129_v46 = vpop.eup %5128  ;;  %v1864_v19 = vadd.f32 %v1790_v9, %v8158_v48  ;;  %v1792_v33 = vadd.f32 %v1791_v39, %v6085_v58  ;;  %v8175_v9 = vld [vmem:[#allocation77_spill] sm:$0xff]  ;;  %v8177_v39 = vld [vmem:[#allocation79_spill] sm:$0xff]  ;;  %v8178_v28 = vld [vmem:[#allocation80_spill] sm:$0xff] }
 0x334   :  { %v1668_v31 = vmul.f32 %v5129_v46, %v1651_v7  ;;  %v8176_v7 = vld [vmem:[#allocation78_spill] sm:$0xff]  ;;  %v8179_v46 = vld [vmem:[#allocation81_spill] sm:$0xff] }
 0x335   :  { %v4198_v32 = vmul.f32 -1.442695, %v1864_v19  ;;  %v1871_v10 = vadd.f32 %v1792_v33, %v8160_v35  ;;  %v5131_v53 = vpop.eup %5130  ;;  %v8180_v48 = vld [vmem:[#allocation82_spill] sm:$0xff]  ;;  %v8181_v19 = vld [vmem:[#allocation83_spill] sm:$0xff]  ;;  %v8186_v35 = vld [vmem:[#allocation88_spill] sm:$0xff] }
 0x336   :  { %v1669_v47 = vadd.f32 %v1668_v31, %v8159_v1  ;;  %v1671_v61 = vsub.f32 1.0, %v5131_v53  ;;  %v1673_v2 = vmul.f32 %v5131_v53, %v6367_v20  ;;  %v8182_v31 = vld [vmem:[#allocation84_spill] sm:$0xff]  ;;  %v8184_v1 = vld [vmem:[#allocation86_spill] sm:$0xff] }
 0x337   :  { %5132 = vpow2.f32 %v4198_v32  ;;  %v4199_v49 = vmul.f32 -1.442695, %v1871_v10  ;;  %v8183_v32 = vld [vmem:[#allocation85_spill] sm:$0xff]  ;;  %v8188_v53 = vld [vmem:[#allocation90_spill] sm:$0xff] }
 0x338   :  { %5134 = vtanh.f32 %v1669_v47  ;;  %v8185_v47 = vld [vmem:[#allocation87_spill] sm:$0xff]  ;;  %v8187_v10 = vld [vmem:[#allocation89_spill] sm:$0xff] }
 0x339   :  { %5136 = vpow2.f32 %v4199_v49  ;;  %v4201_v49 = vld [vmem:[%s7825_s1 + $0x28] sm:$0xff] }
 0x344   :  { %v5133_v60 = vpop.eup %5132 }
 0x345   :  { %v5135_v17 = vpop.eup %5134  ;;  %v1868_v62 = vadd.f32 1.0, %v5133_v60 }
 0x346   :  { %v1672_v63 = vmul.f32 %v5135_v17, %v1671_v61  ;;  %v5137_v13 = vpop.eup %5136  ;;  %v8190_v17 = vld [vmem:[#allocation92_spill] sm:$0xff] }
 0x347   :  { %5138 = vrcp.f32 %v1868_v62  ;;  %v1875_v20 = vadd.f32 1.0, %v5137_v13  ;;  %v8191_v62 = vld [vmem:[#allocation93_spill] sm:$0xff] }
 0x348   :  { %v1674_v3 = vadd.f32 %v1673_v2, %v1672_v63  ;;  %v8192_v63 = vld [vmem:[#allocation94_spill] sm:$0xff] }
 0x349   :  { %5140 = vrcp.f32 %v1875_v20 }
 0x34a   :  { %v1889_v6 = vmul.f32 %v4200_v5, %v1674_v3  ;;  %v8189_v5 = vld [vmem:[#allocation91_spill] sm:$0xff]  ;;  %v1898_v3 = vsub.f32 1.0, %v4201_v49 }
 0x34c   :  { %4202 = vst [vmem:[%s7832_s8 + $0x10] sm:$0xff] %v1889_v6  ;;  %v6631_v15 = vadd.f32 %v1896_v14, %v1889_v6  ;;  %v8193_v6 = vld [vmem:[#allocation95_spill] sm:$0xff]  ;;  %v1899_v20 = vmul.f32 %v1898_v3, %v6537_v12 }
 0x34e   :  { %2026 = vmatmul.mubr.f32.vlgmr.msra.gmra.mxu1 %v6631_v15  ;;  %4757 = vmatmul.mubr.f32.vlgmr.msra.gmra.mxu0 %v6631_v15 }
 0x34f   :  { %2172 = vmatpush1.msra.mxu1 %v6369_v27  ;;  %4760 = vmatpush3.msra.mxu0 %v6371_v0  ;;  %v8161_v27 = vld [vmem:[#allocation26_spill] sm:$0xff] }
 0x350   :  { %2173 = vmatprep.subr.mxu1 %v6373_v54  ;;  %4761 = vmatprep.subr.mxu0 %v8069_v25 }
 0x351   :  { %2174 = vmatpush1.msra.mxu1 %v6377_v59  ;;  %4762 = vmatpush3.msra.mxu0 %v6379_v21  ;;  %v8163_v59 = vld [vmem:[#allocation28_spill] sm:$0xff]  ;;  %v8164_v21 = vld [vmem:[#allocation29_spill] sm:$0xff] }
 0x352   :  { %2175 = vmatprep.subr.mxu1 %v6383_v56  ;;  %4763 = vmatprep.subr.mxu0 %v8069_v25  ;;  %v8165_v56 = vld [vmem:[#allocation30_spill] sm:$0xff] }
 0x353   :  { %2176 = vmatpush1.msra.mxu1 %v6387_v55  ;;  %4764 = vmatpush3.msra.mxu0 %v8161_v27  ;;  %v8167_v55 = vld [vmem:[#allocation31_spill] sm:$0xff] }
 0x354   :  { %v5139_v0 = vpop.eup %5138  ;;  %2177 = vmatprep.subr.mxu1 %v8162_v11  ;;  %4765 = vmatprep.subr.mxu0 %v8069_v25  ;;  %v6747_v27 = vld [vmem:[#allocation4 + $0x128] sm:$0xff]  ;;  %v6753_v11 = vld [vmem:[#allocation4 + $0x130] sm:$0xff] }
 0x355   :  { %v1878_v54 = vmul.f32 %v5139_v0, %v1861_v51  ;;  %2178 = vmatpush1.msra.mxu1 %v8163_v59  ;;  %4766 = vmatpush3.msra.mxu0 %v8164_v21  ;;  %v6743_v51 = vld [vmem:[#allocation4 + $0x148] sm:$0xff]  ;;  %v6751_v0 = vld [vmem:[#allocation4 + $0x120] sm:$0xff]  ;;  %v6763_v21 = vld [vmem:[#allocation4 + $0x118] sm:$0xff] }
 0x356   :  { %2179 = vmatprep.subr.mxu1 %v8165_v56  ;;  %4767 = vmatprep.subr.mxu0 %v8069_v25  ;;  %v5141_v33 = vpop.eup %5140  ;;  %v6761_v59 = vld [vmem:[#allocation4 + $0x108] sm:$0xff]  ;;  %v6767_v56 = vld [vmem:[#allocation4 + $0xf8] sm:$0xff] }
 0x357   :  { %v1879_v22 = vadd.f32 %v1878_v54, %v8166_v42  ;;  %2180 = vmatpush1.msra.mxu1 %v8167_v55  ;;  %4768 = vmatpush3.msra.mxu0 %v8168_v4  ;;  %v1881_v60 = vsub.f32 1.0, %v5141_v33  ;;  %v1883_v8 = vmul.f32 %v5141_v33, %v6537_v12  ;;  %v6741_v12 = vld [vmem:[#allocation4 + $0x138] sm:$0xff]  ;;  %v6757_v54 = vld [vmem:[#allocation4 + $0x110] sm:$0xff]  ;;  %v6777_v55 = vld [vmem:[#allocation4 + $0xe0] sm:$0xff] }
 0x358   :  { %2181 = vmatprep.subr.mxu1 %v8169_v23  ;;  %4769 = vmatprep.subr.mxu0 %v8069_v25  ;;  %v6771_v42 = vld [vmem:[#allocation4 + $0xf0] sm:$0xff]  ;;  %v6781_v4 = vld [vmem:[#allocation4 + $0xd8] sm:$0xff]  ;;  %v6783_v23 = vld [vmem:[#allocation4 + $0xe8] sm:$0xff] }
 0x359   :  { %5142 = vtanh.f32 %v1879_v22  ;;  %2182 = vmatpush1.msra.mxu1 %v8170_v36  ;;  %4770 = vmatpush3.msra.mxu0 %v8171_v45  ;;  %v6773_v22 = vld [vmem:[#allocation4 + $0x100] sm:$0xff]  ;;  %v6787_v36 = vld [vmem:[#allocation4 + $0xc8] sm:$0xff]  ;;  %v6833_v33 = vld [vmem:[#allocation4 + $0x70] sm:$0xff] }
 0x35a   :  { %2183 = vmatprep.subr.mxu1 %v8172_v24  ;;  %4771 = vmatprep.subr.mxu0 %v8069_v25  ;;  %v6791_v45 = vld [vmem:[#allocation4 + $0xc0] sm:$0xff]  ;;  %v6793_v24 = vld [vmem:[#allocation4 + $0xd0] sm:$0xff] }
 0x35b   :  { %2184 = vmatpush1.msra.mxu1 %v8173_v18  ;;  %4772 = vmatpush3.msra.mxu0 %v8174_v43  ;;  %v6797_v18 = vld [vmem:[#allocation4 + $0xb0] sm:$0xff]  ;;  %v6801_v43 = vld [vmem:[#allocation4 + $0xa8] sm:$0xff] }
 0x35c   :  { %2185 = vmatprep.subr.mxu1 %v8175_v9  ;;  %4773 = vmatprep.subr.mxu0 %v8069_v25  ;;  %v6803_v9 = vld [vmem:[#allocation4 + $0xb8] sm:$0xff] }
 0x35d   :  { %2186 = vmatpush1.msra.mxu1 %v8176_v7  ;;  %4774 = vmatpush3.msra.mxu0 %v8177_v39  ;;  %v6807_v7 = vld [vmem:[#allocation4 + $0x98] sm:$0xff]  ;;  %v6811_v39 = vld [vmem:[#allocation4 + $0x90] sm:$0xff] }
 0x35e   :  { %2187 = vmatprep.subr.mxu1 %v8178_v28  ;;  %4775 = vmatprep.subr.mxu0 %v8069_v25  ;;  %v6813_v28 = vld [vmem:[#allocation4 + $0xa0] sm:$0xff] }
 0x35f   :  { %2188 = vmatpush1.msra.mxu1 %v8179_v46  ;;  %4776 = vmatpush3.msra.mxu0 %v8180_v48  ;;  %v6817_v46 = vld [vmem:[#allocation4 + $0x80] sm:$0xff]  ;;  %v6821_v48 = vld [vmem:[#allocation4 + $0x78] sm:$0xff] }
 0x360   :  { %2189 = vmatprep.subr.mxu1 %v8181_v19  ;;  %4777 = vmatprep.subr.mxu0 %v8069_v25  ;;  %v6823_v19 = vld [vmem:[#allocation4 + $0x88] sm:$0xff] }
 0x361   :  { %2190 = vmatpush1.msra.mxu1 %v8182_v31  ;;  %4778 = vmatpush3.msra.mxu0 %v8183_v32  ;;  %v6827_v31 = vld [vmem:[#allocation4 + $0x68] sm:$0xff]  ;;  %v6831_v32 = vld [vmem:[#allocation4 + $0x60] sm:$0xff] }
 0x362   :  { %2191 = vmatprep.subr.mxu1 %v8184_v1  ;;  %4779 = vmatprep.subr.mxu0 %v8069_v25  ;;  %v6837_v1 = vld [vmem:[#allocation4 + $0x50] sm:$0xff] }
 0x363   :  { %2192 = vmatpush1.msra.mxu1 %v8185_v47  ;;  %4780 = vmatpush3.msra.mxu0 %v8186_v35  ;;  %v6841_v47 = vld [vmem:[#allocation4 + $0x48] sm:$0xff]  ;;  %v6843_v35 = vld [vmem:[#allocation4 + $0x58] sm:$0xff] }
 0x364   :  { %2193 = vmatprep.subr.mxu1 %v8187_v10  ;;  %4781 = vmatprep.subr.mxu0 %v8069_v25  ;;  %8194 = vst [vmem:[#allocation10_spill] sm:$0xff] %v6841_v47  ;;  %8195 = vst [vmem:[#allocation11_spill] sm:$0xff] %v6843_v35  ;;  %v6847_v10 = vld [vmem:[#allocation4 + $0x38] sm:$0xff] }
 0x365   :  { %2194 = vmatpush1.msra.mxu1 %v8188_v53  ;;  %4782 = vmatpush3.msra.mxu0 %v8189_v5  ;;  %8196 = vst [vmem:[#allocation12_spill] sm:$0xff] %v6847_v10  ;;  %v6853_v53 = vld [vmem:[#allocation4 + $0x40] sm:$0xff] }
 0x366   :  { %v5143_v61 = vpop.eup %5142  ;;  %2195 = vmatprep.subr.mxu1 %v8190_v17  ;;  %4783 = vmatprep.subr.mxu0 %v8069_v25  ;;  %8198 = vst [vmem:[#allocation14_spill] sm:$0xff] %v6853_v53  ;;  %v6857_v5 = vld [vmem:[#allocation4 + $0x20] sm:$0xff]  ;;  %v6867_v17 = vld [vmem:[#allocation4 + $0x8] sm:$0xff] }
 0x367   :  { %2196 = vmatpush1.msra.mxu1 %v8191_v62  ;;  %4784 = vmatpush3.msra.mxu0 %v8192_v63  ;;  %v1882_v2 = vmul.f32 %v5143_v61, %v1881_v60  ;;  %8199 = vst [vmem:[#allocation15_spill] sm:$0xff] %v6857_v5  ;;  %v6861_v60 = vld [vmem:[#allocation4 + $0x18] sm:$0xff]  ;;  %v6863_v61 = vld [vmem:[#allocation4 + $0x28] sm:$0xff]  ;;  %8202 = vst [vmem:[#allocation18_spill] sm:$0xff] %v6867_v17 }
 0x368   :  { %2197 = vmatprep.subr.mxu1 %v6498_v37  ;;  %4785 = vmatprep.subr.mxu0 %v8069_v25  ;;  %v6723_v37 = vld [vmem:[#allocation4 + $0x178] sm:$0xff]  ;;  %8200 = vst [vmem:[#allocation16_spill] sm:$0xff] %v6861_v60  ;;  %8201 = vst [vmem:[#allocation17_spill] sm:$0xff] %v6863_v61  ;;  %v6871_v62 = vld [vmem:[#allocation4] sm:$0xff] }
 0x369   :  { %2198 = vmatpush1.msra.mxu1 %v8193_v6  ;;  %4786 = vmatpush3.msra.mxu0 %v6504_v29  ;;  %v1884_v14 = vadd.f32 %v1883_v8, %v1882_v2  ;;  %v6721_v29 = vld [vmem:[#allocation4 + $0x168] sm:$0xff]  ;;  %8203 = vst [vmem:[#allocation19_spill] sm:$0xff] %v6871_v62  ;;  %v6873_v63 = vld [vmem:[#allocation4 + $0x10] sm:$0xff] }
 0x36a   :  { %2199 = vmatprep.subr.mxu1 %v6508_v41  ;;  %4787 = vmatprep.subr.mxu0 %v8069_v25  ;;  %8204 = vst [vmem:[#allocation20_spill] sm:$0xff] %v6873_v63  ;;  %v6877_v2 = vld [vmem:[#allocation6 + $0x170] sm:$0xff] }
 0x36b   :  { %2200 = vmatpush1.msra.mxu1 %v6513_v40  ;;  %4788 = vmatpush3.msra.mxu0 %v6515_v26  ;;  %v1890_v13 = vmul.f32 %v4201_v49, %v1884_v14  ;;  %v6718_v26 = vld [vmem:[#allocation4 + $0x170] sm:$0xff]  ;;  %8205 = vst [vmem:[#allocation21_spill] sm:$0xff] %v6877_v2 }
 0x36c   :  { %2201 = vmatprep.subr.mxu1 %v6519_v44  ;;  %4789 = vmatprep.subr.mxu0 %v8069_v25  ;;  %v6727_v44 = vld [vmem:[#allocation4 + $0x158] sm:$0xff]  ;;  %v6731_v40 = vld [vmem:[#allocation4 + $0x150] sm:$0xff] }
 0x36d   :  { %2202 = vmatpush1.msra.mxu1 %v6523_v50  ;;  %2235 = vmatprep.mubr.f32.mxu1 %v8069_v25  ;;  %4203 = vst [vmem:[%s7833_s9 + $0x28] sm:$0xff] %v1890_v13  ;;  %v6707_v41 = vadd.f32 %v1899_v20, %v1890_v13  ;;  %v6733_v50 = vld [vmem:[#allocation4 + $0x160] sm:$0xff]  ;;  %v6851_v49 = vld [vmem:[#allocation4 + $0x30] sm:$0xff] }
 0x36e   :  { %4790 = vmatpush3.msra.mxu0 %v6527_v52  ;;  %4791 = vmatprep.mubr.msk.f32.mxu0 %vm5293_vm1, %v8069_v25  ;;  %v6737_v52 = vld [vmem:[#allocation4 + $0x140] sm:$0xff]  ;;  %8197 = vst [vmem:[#allocation13_spill] sm:$0xff] %v6851_v49 }
 0x36f   :  { %2236 = vmatmul.mubr.f32.vlgmr.msra.gmra.mxu1 %v6707_v41  ;;  %4792 = vmatmul.mubr.f32.vlgmr.msra.gmra.mxu0 %v6707_v41  ;;  %v8206_v20 = vld [vmem:[#allocation42_spill] sm:$0xff] }
 0x370   :  { %4794 = vmatprep.subr.mxu0 %v8069_v25  ;;  %2471 = vmatprep.mubr.f32.mxu1 %v8069_v25 }
 0x371   :  { %4826 = vmatprep.mubr.msk.f32.mxu0 %vm5293_vm1, %v8069_v25  ;;  %2407 = vmatprep.subr.mxu1 %v6718_v26 }
 0x372   :  { %2408 = vmatpush1.msra.mxu1 %v6721_v29  ;;  %4795 = vmatpush3.msra.mxu0 %v6723_v37 }
 0x373   :  { %2409 = vmatprep.subr.mxu1 %v6727_v44  ;;  %4796 = vmatprep.subr.mxu0 %v8069_v25 }
 0x374   :  { %2410 = vmatpush1.msra.mxu1 %v6731_v40  ;;  %4797 = vmatpush3.msra.mxu0 %v6733_v50 }
 0x375   :  { %2411 = vmatprep.subr.mxu1 %v6737_v52  ;;  %4798 = vmatprep.subr.mxu0 %v8069_v25 }
 0x376   :  { %2412 = vmatpush1.msra.mxu1 %v6741_v12  ;;  %4799 = vmatpush3.msra.mxu0 %v6743_v51 }
 0x377   :  { %2413 = vmatprep.subr.mxu1 %v6747_v27  ;;  %4800 = vmatprep.subr.mxu0 %v8069_v25 }
 0x378   :  { %2414 = vmatpush1.msra.mxu1 %v6751_v0  ;;  %4801 = vmatpush3.msra.mxu0 %v6753_v11 }
 0x379   :  { %2415 = vmatprep.subr.mxu1 %v6757_v54  ;;  %4802 = vmatprep.subr.mxu0 %v8069_v25 }
 0x37a   :  { %2416 = vmatpush1.msra.mxu1 %v6761_v59  ;;  %4803 = vmatpush3.msra.mxu0 %v6763_v21 }
 0x37b   :  { %2417 = vmatprep.subr.mxu1 %v6767_v56  ;;  %4804 = vmatprep.subr.mxu0 %v8069_v25 }
 0x37c   :  { %2418 = vmatpush1.msra.mxu1 %v6771_v42  ;;  %4805 = vmatpush3.msra.mxu0 %v6773_v22 }
 0x37d   :  { %2419 = vmatprep.subr.mxu1 %v6777_v55  ;;  %4806 = vmatprep.subr.mxu0 %v8069_v25 }
 0x37e   :  { %2420 = vmatpush1.msra.mxu1 %v6781_v4  ;;  %4807 = vmatpush3.msra.mxu0 %v6783_v23 }
 0x37f   :  { %2421 = vmatprep.subr.mxu1 %v6787_v36  ;;  %4808 = vmatprep.subr.mxu0 %v8069_v25 }
 0x380   :  { %2422 = vmatpush1.msra.mxu1 %v6791_v45  ;;  %4809 = vmatpush3.msra.mxu0 %v6793_v24 }
 0x381   :  { %2423 = vmatprep.subr.mxu1 %v6797_v18  ;;  %4810 = vmatprep.subr.mxu0 %v8069_v25 }
 0x382   :  { %2424 = vmatpush1.msra.mxu1 %v6801_v43  ;;  %4811 = vmatpush3.msra.mxu0 %v6803_v9 }
 0x383   :  { %2425 = vmatprep.subr.mxu1 %v6807_v7  ;;  %4812 = vmatprep.subr.mxu0 %v8069_v25 }
 0x384   :  { %2426 = vmatpush1.msra.mxu1 %v6811_v39  ;;  %4813 = vmatpush3.msra.mxu0 %v6813_v28 }
 0x385   :  { %2427 = vmatprep.subr.mxu1 %v6817_v46  ;;  %4814 = vmatprep.subr.mxu0 %v8069_v25 }
 0x386   :  { %2428 = vmatpush1.msra.mxu1 %v6821_v48  ;;  %4815 = vmatpush3.msra.mxu0 %v6823_v19 }
 0x387   :  { %2429 = vmatprep.subr.mxu1 %v6827_v31  ;;  %4816 = vmatprep.subr.mxu0 %v8069_v25 }
 0x388   :  { %2430 = vmatpush1.msra.mxu1 %v6831_v32  ;;  %4817 = vmatpush3.msra.mxu0 %v6833_v33 }
 0x389   :  { %2431 = vmatprep.subr.mxu1 %v6837_v1  ;;  %4818 = vmatprep.subr.mxu0 %v8069_v25 }
 0x38a   :  { %2432 = vmatpush1.msra.mxu1 %v6841_v47  ;;  %4819 = vmatpush3.msra.mxu0 %v6843_v35 }
 0x38b   :  { %2433 = vmatprep.subr.mxu1 %v6847_v10  ;;  %4820 = vmatprep.subr.mxu0 %v8069_v25 }
 0x38c   :  { %2434 = vmatpush1.msra.mxu1 %v6851_v49  ;;  %4821 = vmatpush3.msra.mxu0 %v6853_v53 }
 0x38d   :  { %2435 = vmatprep.subr.mxu1 %v6857_v5  ;;  %4822 = vmatprep.subr.mxu0 %v8069_v25 }
 0x38e   :  { %2436 = vmatpush1.msra.mxu1 %v6861_v60  ;;  %4823 = vmatpush3.msra.mxu0 %v6863_v61 }
 0x38f   :  { %2437 = vmatprep.subr.mxu1 %v6867_v17  ;;  %4824 = vmatprep.subr.mxu0 %v8069_v25 }
 0x390   :  { %2438 = vmatpush1.msra.mxu1 %v6871_v62  ;;  %4825 = vmatpush3.msra.mxu0 %v6873_v63  ;;  %v8207_v62 = vld [vmem:[#allocation43_spill] sm:$0xff] }
 0x391   :  { %2617 = vmatprep.subr.mxu1 %v6877_v2  ;;  %4829 = vmatprep.subr.mxu0 %v8069_v25 }
 0x40e   :  { %v2027_v8 = vpop.f32.mrf.mxu1  ;;  %v2098_v3 = vpop.f32.mrf.mxu0 }
 0x40f   :  { %v2028_v6 = vadd.f32 %v2027_v8, %v6035_v16 }
 0x410   :  { %v2029_v14 = vpop.f32.mrf.mxu1  ;;  %v4758_v13 = vpop.f32.mrf.mxu0 }
 0x411   :  { %v2102_v17 = vadd.f32 %v2028_v6, %v8206_v20  ;;  %v2030_v60 = vadd.f32 %v2029_v14, %v6044_v30  ;;  %v2099_v13 = vadd.f32 %v2098_v3, %v6080_v38  ;;  %v8208_v14 = vld [vmem:[#allocation55_spill] sm:$0xff]  ;;  %v6894_v3 = vld [vmem:[%s7825_s1 + $0x18] sm:$0xff] }
 0x412   :  { %8211 = vst [vmem:[#allocation22_spill] sm:$0xff] %v6894_v3 }
 0x413   :  { %v4204_v61 = vmul.f32 -1.442695, %v2102_v17  ;;  %v2109_v63 = vadd.f32 %v2030_v60, %v8207_v62 }
 0x415   :  { %5144 = vpow2.f32 %v4204_v61  ;;  %v4205_v5 = vmul.f32 -1.442695, %v2109_v63 }
 0x417   :  { %5146 = vpow2.f32 %v4205_v5 }
 0x422   :  { %v5145_v53 = vpop.eup %5144 }
 0x423   :  { %v2106_v2 = vadd.f32 1.0, %v5145_v53  ;;  %v8209_v53 = vld [vmem:[#allocation50_spill] sm:$0xff] }
 0x424   :  { %v5147_v49 = vpop.eup %5146 }
 0x425   :  { %5148 = vrcp.f32 %v2106_v2  ;;  %v2113_v10 = vadd.f32 1.0, %v5147_v49  ;;  %v8210_v49 = vld [vmem:[#allocation65_spill] sm:$0xff] }
 0x427   :  { %5150 = vrcp.f32 %v2113_v10 }
 0x42f   :  { %v2237_v35 = vpop.f32.mrf.mxu1  ;;  %v2308_v47 = vpop.f32.mrf.mxu0 }
 0x430   :  { %v2238_v8 = vadd.f32 %v2237_v35, %v6077_v57 }
 0x431   :  { %v2239_v6 = vpop.f32.mrf.mxu1  ;;  %v4793_v17 = vpop.f32.mrf.mxu0 }
 0x432   :  { %v5149_v20 = vpop.eup %5148  ;;  %v2312_v61 = vadd.f32 %v2238_v8, %v8208_v14  ;;  %v2240_v5 = vadd.f32 %v2239_v6, %v6085_v58 }
 0x433   :  { %v2116_v30 = vmul.f32 %v5149_v20, %v2099_v13 }
 0x434   :  { %v4206_v60 = vmul.f32 -1.442695, %v2312_v61  ;;  %v2319_v63 = vadd.f32 %v2240_v5, %v8210_v49  ;;  %v5151_v35 = vpop.eup %5150  ;;  %v6911_v49 = vld [vmem:[#allocation6 + $0x158] sm:$0xff] }
 0x435   :  { %v2117_v62 = vadd.f32 %v2116_v30, %v8209_v53  ;;  %v2119_v13 = vsub.f32 1.0, %v5151_v35  ;;  %v2121_v6 = vmul.f32 %v5151_v35, %v6631_v15  ;;  %v7922_v30 = vsub.f32 1.0, %v6894_v3  ;;  %v6907_v53 = vld [vmem:[#allocation6 + $0x168] sm:$0xff]  ;;  %v6921_v35 = vld [vmem:[#allocation6 + $0x140] sm:$0xff] }
 0x436   :  { %5152 = vpow2.f32 %v4206_v60  ;;  %v4207_v2 = vmul.f32 -1.442695, %v2319_v63  ;;  %8212 = vst [vmem:[#allocation23_spill] sm:$0xff] %v6921_v35 }
 0x437   :  { %5154 = vtanh.f32 %v2117_v62  ;;  %v2344_v60 = vmul.f32 %v7922_v30, %v6631_v15  ;;  %v6909_v62 = vld [vmem:[#allocation6 + $0x178] sm:$0xff]  ;;  %v6917_v15 = vld [vmem:[#allocation6 + $0x160] sm:$0xff] }
 0x438   :  { %5156 = vpow2.f32 %v4207_v2  ;;  %v6915_v2 = vld [vmem:[#allocation6 + $0x150] sm:$0xff]  ;;  %v6948_v30 = vld [vmem:[#allocation6 + $0x118] sm:$0xff] }
 0x439   :  { %8220 = vst [vmem:[#allocation26_spill] sm:$0xff] %v6948_v30 }
 0x443   :  { %v5153_v8 = vpop.eup %5152 }
 0x444   :  { %v5155_v10 = vpop.eup %5154  ;;  %v2316_v17 = vadd.f32 1.0, %v5153_v8  ;;  %v6925_v8 = vld [vmem:[#allocation6 + $0x138] sm:$0xff] }
 0x445   :  { %v2120_v20 = vmul.f32 %v5155_v10, %v2119_v13  ;;  %v5157_v63 = vpop.eup %5156  ;;  %8213 = vst [vmem:[#allocation24_spill] sm:$0xff] %v6925_v8  ;;  %v6927_v13 = vld [vmem:[#allocation6 + $0x148] sm:$0xff] }
 0x446   :  { %5158 = vrcp.f32 %v2316_v17  ;;  %8214 = vst [vmem:[#allocation25_spill] sm:$0xff] %v6927_v13  ;;  %v2323_v10 = vadd.f32 1.0, %v5157_v63  ;;  %v6931_v17 = vld [vmem:[#allocation6 + $0x128] sm:$0xff] }
 0x447   :  { %v2122_v14 = vadd.f32 %v2121_v6, %v2120_v20  ;;  %8215 = vst [vmem:[#allocation38_spill] sm:$0xff] %v6931_v17  ;;  %v6935_v20 = vld [vmem:[#allocation6 + $0x120] sm:$0xff]  ;;  %v6937_v6 = vld [vmem:[#allocation6 + $0x130] sm:$0xff]  ;;  %v6946_v63 = vld [vmem:[#allocation6 + $0x108] sm:$0xff] }
 0x448   :  { %8216 = vst [vmem:[#allocation40_spill] sm:$0xff] %v6935_v20  ;;  %8217 = vst [vmem:[#allocation57_spill] sm:$0xff] %v6937_v6  ;;  %5160 = vrcp.f32 %v2323_v10  ;;  %v6963_v10 = vld [vmem:[#allocation6 + $0xe0] sm:$0xff] }
 0x449   :  { %v2337_v61 = vmul.f32 %v6894_v3, %v2122_v14  ;;  %v2309_v14 = vadd.f32 %v2308_v47, %v6101_v34  ;;  %8219 = vst [vmem:[#allocation67_spill] sm:$0xff] %v6946_v63  ;;  %v6952_v47 = vld [vmem:[#allocation6 + $0xf8] sm:$0xff]  ;;  %8225 = vst [vmem:[#allocation30_spill] sm:$0xff] %v6963_v10 }
 0x44a   :  { %8221 = vst [vmem:[#allocation27_spill] sm:$0xff] %v6952_v47 }
 0x44b   :  { %4210 = vst [vmem:[%s7832_s8 + $0x18] sm:$0xff] %v2337_v61  ;;  %v6905_v5 = vadd.f32 %v2344_v60, %v2337_v61  ;;  %v6942_v61 = vld [vmem:[#allocation6 + $0x110] sm:$0xff] }
 0x44c   :  { %8218 = vst [vmem:[#allocation48_spill] sm:$0xff] %v6942_v61 }
 0x44d   :  { %2472 = vmatmul.mubr.f32.vlgmr.msra.gmra.mxu1 %v6905_v5  ;;  %4827 = vmatmul.mubr.f32.vlgmr.msra.gmra.mxu0 %v6905_v5 }
 0x44e   :  { %2618 = vmatpush1.msra.mxu1 %v6907_v53  ;;  %4830 = vmatpush3.msra.mxu0 %v6909_v62 }
 0x44f   :  { %2619 = vmatprep.subr.mxu1 %v6911_v49  ;;  %4831 = vmatprep.subr.mxu0 %v8069_v25 }
 0x450   :  { %2620 = vmatpush1.msra.mxu1 %v6915_v2  ;;  %4832 = vmatpush3.msra.mxu0 %v6917_v15 }
 0x451   :  { %2621 = vmatprep.subr.mxu1 %v6921_v35  ;;  %4833 = vmatprep.subr.mxu0 %v8069_v25  ;;  %v7056_v35 = vld [vmem:[#allocation6 + $0x28] sm:$0xff] }
 0x452   :  { %2622 = vmatpush1.msra.mxu1 %v6925_v8  ;;  %4834 = vmatpush3.msra.mxu0 %v6927_v13  ;;  %v6956_v13 = vld [vmem:[#allocation6 + $0xf0] sm:$0xff]  ;;  %v8224_v8 = vld [vmem:[#allocation66_spill] sm:$0xff] }
 0x453   :  { %v5159_v60 = vpop.eup %5158  ;;  %2623 = vmatprep.subr.mxu1 %v6931_v17  ;;  %4835 = vmatprep.subr.mxu0 %v8069_v25  ;;  %8222 = vst [vmem:[#allocation28_spill] sm:$0xff] %v6956_v13  ;;  %v6958_v17 = vld [vmem:[#allocation6 + $0x100] sm:$0xff] }
 0x454   :  { %v2326_v3 = vmul.f32 %v5159_v60, %v2309_v14  ;;  %2624 = vmatpush1.msra.mxu1 %v6935_v20  ;;  %4836 = vmatpush3.msra.mxu0 %v6937_v6  ;;  %8223 = vst [vmem:[#allocation29_spill] sm:$0xff] %v6958_v17  ;;  %v6967_v14 = vld [vmem:[#allocation6 + $0xd8] sm:$0xff]  ;;  %v6969_v60 = vld [vmem:[#allocation6 + $0xe8] sm:$0xff]  ;;  %v7048_v6 = vld [vmem:[#allocation6 + $0x20] sm:$0xff] }
 0x455   :  { %2625 = vmatprep.subr.mxu1 %v6942_v61  ;;  %4837 = vmatprep.subr.mxu0 %v8069_v25  ;;  %8226 = vst [vmem:[#allocation68_spill] sm:$0xff] %v6967_v14  ;;  %8227 = vst [vmem:[#allocation31_spill] sm:$0xff] %v6969_v60  ;;  %v7044_v61 = vld [vmem:[#allocation6 + $0x40] sm:$0xff] }
 0x456   :  { %v2327_v34 = vadd.f32 %v2326_v3, %v8224_v8  ;;  %2626 = vmatpush1.msra.mxu1 %v6946_v63  ;;  %4838 = vmatpush3.msra.mxu0 %v6948_v30  ;;  %v6973_v3 = vld [vmem:[#allocation6 + $0xc8] sm:$0xff]  ;;  %v6977_v8 = vld [vmem:[#allocation6 + $0xc0] sm:$0xff]  ;;  %v6983_v30 = vld [vmem:[#allocation6 + $0xb0] sm:$0xff]  ;;  %8246 = vst [vmem:[#allocation88_spill] sm:$0xff] %v7044_v61 }
 0x457   :  { %2627 = vmatprep.subr.mxu1 %v6952_v47  ;;  %4839 = vmatprep.subr.mxu0 %v8069_v25  ;;  %8228 = vst [vmem:[#allocation70_spill] sm:$0xff] %v6973_v3  ;;  %8229 = vst [vmem:[#allocation71_spill] sm:$0xff] %v6977_v8  ;;  %v6979_v47 = vld [vmem:[#allocation6 + $0xd0] sm:$0xff] }
 0x458   :  { %5162 = vtanh.f32 %v2327_v34  ;;  %2628 = vmatpush1.msra.mxu1 %v6956_v13  ;;  %4840 = vmatpush3.msra.mxu0 %v6958_v17  ;;  %8230 = vst [vmem:[#allocation72_spill] sm:$0xff] %v6979_v47  ;;  %8231 = vst [vmem:[#allocation73_spill] sm:$0xff] %v6983_v30  ;;  %v6987_v34 = vld [vmem:[#allocation6 + $0xa8] sm:$0xff]  ;;  %v6989_v17 = vld [vmem:[#allocation6 + $0xb8] sm:$0xff]  ;;  %v5161_v13 = vpop.eup %5160 }
 0x459   :  { %2629 = vmatprep.subr.mxu1 %v6963_v10  ;;  %4841 = vmatprep.subr.mxu0 %v8069_v25  ;;  %8232 = vst [vmem:[#allocation74_spill] sm:$0xff] %v6987_v34  ;;  %8233 = vst [vmem:[#allocation75_spill] sm:$0xff] %v6989_v17  ;;  %v6993_v10 = vld [vmem:[#allocation6 + $0x98] sm:$0xff] }
 0x45a   :  { %2630 = vmatpush1.msra.mxu1 %v6967_v14  ;;  %4842 = vmatpush3.msra.mxu0 %v6969_v60  ;;  %8234 = vst [vmem:[#allocation76_spill] sm:$0xff] %v6993_v10  ;;  %v6997_v60 = vld [vmem:[#allocation6 + $0x90] sm:$0xff]  ;;  %v6999_v14 = vld [vmem:[#allocation6 + $0xa0] sm:$0xff] }
 0x45b   :  { %2631 = vmatprep.subr.mxu1 %v6973_v3  ;;  %4843 = vmatprep.subr.mxu0 %v8069_v25  ;;  %8235 = vst [vmem:[#allocation77_spill] sm:$0xff] %v6997_v60  ;;  %8236 = vst [vmem:[#allocation78_spill] sm:$0xff] %v6999_v14  ;;  %v7003_v3 = vld [vmem:[#allocation6 + $0x80] sm:$0xff] }
 0x45c   :  { %2632 = vmatpush1.msra.mxu1 %v6977_v8  ;;  %4844 = vmatpush3.msra.mxu0 %v6979_v47  ;;  %8237 = vst [vmem:[#allocation79_spill] sm:$0xff] %v7003_v3  ;;  %v7007_v47 = vld [vmem:[#allocation6 + $0x78] sm:$0xff]  ;;  %v7009_v8 = vld [vmem:[#allocation6 + $0x88] sm:$0xff] }
 0x45d   :  { %2633 = vmatprep.subr.mxu1 %v6983_v30  ;;  %4845 = vmatprep.subr.mxu0 %v8069_v25  ;;  %8238 = vst [vmem:[#allocation80_spill] sm:$0xff] %v7007_v47  ;;  %8239 = vst [vmem:[#allocation81_spill] sm:$0xff] %v7009_v8  ;;  %v7013_v30 = vld [vmem:[#allocation6 + $0x68] sm:$0xff] }
 0x45e   :  { %2634 = vmatpush1.msra.mxu1 %v6987_v34  ;;  %4846 = vmatpush3.msra.mxu0 %v6989_v17  ;;  %8240 = vst [vmem:[#allocation82_spill] sm:$0xff] %v7013_v30  ;;  %v7017_v17 = vld [vmem:[#allocation6 + $0x60] sm:$0xff]  ;;  %v7023_v34 = vld [vmem:[#allocation6 + $0x50] sm:$0xff] }
 0x45f   :  { %2635 = vmatprep.subr.mxu1 %v6993_v10  ;;  %4847 = vmatprep.subr.mxu0 %v8069_v25  ;;  %8241 = vst [vmem:[#allocation83_spill] sm:$0xff] %v7017_v17  ;;  %v7019_v10 = vld [vmem:[#allocation6 + $0x70] sm:$0xff]  ;;  %8243 = vst [vmem:[#allocation85_spill] sm:$0xff] %v7023_v34 }
 0x460   :  { %2636 = vmatpush1.msra.mxu1 %v6997_v60  ;;  %4848 = vmatpush3.msra.mxu0 %v6999_v14  ;;  %8242 = vst [vmem:[#allocation84_spill] sm:$0xff] %v7019_v10  ;;  %v7027_v14 = vld [vmem:[#allocation6 + $0x48] sm:$0xff]  ;;  %v7029_v60 = vld [vmem:[#allocation6 + $0x58] sm:$0xff] }
 0x461   :  { %2637 = vmatprep.subr.mxu1 %v7003_v3  ;;  %4849 = vmatprep.subr.mxu0 %v8069_v25  ;;  %8244 = vst [vmem:[#allocation86_spill] sm:$0xff] %v7027_v14  ;;  %8245 = vst [vmem:[#allocation87_spill] sm:$0xff] %v7029_v60  ;;  %v7034_v3 = vld [vmem:[%s7825_s1 + $0x20] sm:$0xff] }
 0x462   :  { %2638 = vmatpush1.msra.mxu1 %v7007_v47  ;;  %4850 = vmatpush3.msra.mxu0 %v7009_v8  ;;  %v7038_v8 = vld [vmem:[#allocation6 + $0x38] sm:$0xff]  ;;  %v2329_v47 = vsub.f32 1.0, %v5161_v13  ;;  %v2346_v20 = vsub.f32 1.0, %v7034_v3 }
 0x463   :  { %2639 = vmatprep.subr.mxu1 %v7013_v30  ;;  %4851 = vmatprep.subr.mxu0 %v8069_v25  ;;  %v7042_v30 = vld [vmem:[#allocation6 + $0x30] sm:$0xff] }
 0x464   :  { %2640 = vmatpush1.msra.mxu1 %v7017_v17  ;;  %4852 = vmatpush3.msra.mxu0 %v7019_v10  ;;  %v2331_v10 = vmul.f32 %v5161_v13, %v6707_v41  ;;  %v7064_v13 = vld [vmem:[#allocation6] sm:$0xff] }
 0x465   :  { %v5163_v63 = vpop.eup %5162  ;;  %2641 = vmatprep.subr.mxu1 %v7023_v34  ;;  %4853 = vmatprep.subr.mxu0 %v8069_v25  ;;  %v7054_v34 = vld [vmem:[#allocation6 + $0x18] sm:$0xff] }
 0x466   :  { %2642 = vmatpush1.msra.mxu1 %v7027_v14  ;;  %4854 = vmatpush3.msra.mxu0 %v7029_v60  ;;  %v2330_v17 = vmul.f32 %v5163_v63, %v2329_v47  ;;  %v7060_v60 = vld [vmem:[#allocation6 + $0x8] sm:$0xff]  ;;  %v7068_v63 = vld [vmem:[#allocation6 + $0x10] sm:$0xff] }
 0x467   :  { %2643 = vmatprep.subr.mxu1 %v7038_v8  ;;  %4855 = vmatprep.subr.mxu0 %v8069_v25 }
 0x468   :  { %2644 = vmatpush1.msra.mxu1 %v7042_v30  ;;  %4856 = vmatpush3.msra.mxu0 %v7044_v61  ;;  %v2332_v14 = vadd.f32 %v2331_v10, %v2330_v17  ;;  %v2347_v61 = vmul.f32 %v2346_v20, %v6707_v41  ;;  %v8247_v41 = vld [vmem:[#allocation10_spill] sm:$0xff] }
 0x469   :  { %2645 = vmatprep.subr.mxu1 %v7048_v6  ;;  %4857 = vmatprep.subr.mxu0 %v8069_v25 }
 0x46a   :  { %2646 = vmatpush1.msra.mxu1 %v7054_v34  ;;  %4858 = vmatpush3.msra.mxu0 %v7056_v35  ;;  %v2338_v47 = vmul.f32 %v7034_v3, %v2332_v14 }
 0x46b   :  { %2647 = vmatprep.subr.mxu1 %v7060_v60  ;;  %4859 = vmatprep.subr.mxu0 %v8069_v25 }
 0x46c   :  { %2648 = vmatpush1.msra.mxu1 %v7064_v13  ;;  %2681 = vmatprep.mubr.f32.mxu1 %v8069_v25  ;;  %4211 = vst [vmem:[%s7833_s9 + $0x20] sm:$0xff] %v2338_v47  ;;  %v7081_v17 = vadd.f32 %v2347_v61, %v2338_v47  ;;  %v8263_v47 = vld [vmem:[#allocation53_spill] sm:$0xff] }
 0x46d   :  { %4860 = vmatpush3.msra.mxu0 %v7068_v63  ;;  %4861 = vmatprep.mubr.msk.f32.mxu0 %vm5293_vm1, %v8069_v25 }
 0x46e   :  { %2682 = vmatmul.mubr.f32.vlgmr.msra.gmra.mxu1 %v7081_v17  ;;  %4862 = vmatmul.mubr.f32.vlgmr.msra.gmra.mxu0 %v7081_v17 }
 0x46f   :  { %2851 = vmatprep.subr.mxu1 %v6718_v26  ;;  %4864 = vmatprep.subr.mxu0 %v8069_v25  ;;  %v8248_v26 = vld [vmem:[#allocation11_spill] sm:$0xff] }
 0x470   :  { %2852 = vmatpush1.msra.mxu1 %v6721_v29  ;;  %4865 = vmatpush3.msra.mxu0 %v6723_v37  ;;  %v8249_v29 = vld [vmem:[#allocation12_spill] sm:$0xff]  ;;  %v8250_v37 = vld [vmem:[#allocation13_spill] sm:$0xff] }
 0x471   :  { %2853 = vmatprep.subr.mxu1 %v6727_v44  ;;  %4866 = vmatprep.subr.mxu0 %v8069_v25  ;;  %v8251_v44 = vld [vmem:[#allocation14_spill] sm:$0xff] }
 0x472   :  { %2854 = vmatpush1.msra.mxu1 %v6731_v40  ;;  %4867 = vmatpush3.msra.mxu0 %v6733_v50  ;;  %v8252_v40 = vld [vmem:[#allocation15_spill] sm:$0xff]  ;;  %v8253_v50 = vld [vmem:[#allocation16_spill] sm:$0xff] }
 0x473   :  { %2855 = vmatprep.subr.mxu1 %v6737_v52  ;;  %4868 = vmatprep.subr.mxu0 %v8069_v25  ;;  %v8254_v52 = vld [vmem:[#allocation17_spill] sm:$0xff] }
 0x474   :  { %2856 = vmatpush1.msra.mxu1 %v6741_v12  ;;  %4869 = vmatpush3.msra.mxu0 %v6743_v51  ;;  %v8255_v12 = vld [vmem:[#allocation18_spill] sm:$0xff]  ;;  %v8256_v51 = vld [vmem:[#allocation19_spill] sm:$0xff] }
 0x475   :  { %2857 = vmatprep.subr.mxu1 %v6747_v27  ;;  %4870 = vmatprep.subr.mxu0 %v8069_v25  ;;  %v8257_v27 = vld [vmem:[#allocation20_spill] sm:$0xff] }
 0x476   :  { %2858 = vmatpush1.msra.mxu1 %v6751_v0  ;;  %4871 = vmatpush3.msra.mxu0 %v6753_v11  ;;  %v8258_v0 = vld [vmem:[#allocation21_spill] sm:$0xff] }
 0x477   :  { %2859 = vmatprep.subr.mxu1 %v6757_v54  ;;  %4872 = vmatprep.subr.mxu0 %v8069_v25 }
 0x478   :  { %2860 = vmatpush1.msra.mxu1 %v6761_v59  ;;  %4873 = vmatpush3.msra.mxu0 %v6763_v21 }
 0x479   :  { %2861 = vmatprep.subr.mxu1 %v6767_v56  ;;  %4874 = vmatprep.subr.mxu0 %v8069_v25 }
 0x47a   :  { %2862 = vmatpush1.msra.mxu1 %v6771_v42  ;;  %4875 = vmatpush3.msra.mxu0 %v6773_v22  ;;  %v8259_v42 = vld [vmem:[#allocation32_spill] sm:$0xff] }
 0x47b   :  { %2863 = vmatprep.subr.mxu1 %v6777_v55  ;;  %4876 = vmatprep.subr.mxu0 %v8069_v25 }
 0x47c   :  { %2864 = vmatpush1.msra.mxu1 %v6781_v4  ;;  %4877 = vmatpush3.msra.mxu0 %v6783_v23  ;;  %v8260_v4 = vld [vmem:[#allocation62_spill] sm:$0xff] }
 0x47d   :  { %2865 = vmatprep.subr.mxu1 %v6787_v36  ;;  %4878 = vmatprep.subr.mxu0 %v8069_v25  ;;  %v8261_v36 = vld [vmem:[#allocation33_spill] sm:$0xff] }
 0x47e   :  { %2866 = vmatpush1.msra.mxu1 %v6791_v45  ;;  %4879 = vmatpush3.msra.mxu0 %v6793_v24 }
 0x47f   :  { %2867 = vmatprep.subr.mxu1 %v6797_v18  ;;  %4880 = vmatprep.subr.mxu0 %v8069_v25 }
 0x480   :  { %2868 = vmatpush1.msra.mxu1 %v6801_v43  ;;  %4881 = vmatpush3.msra.mxu0 %v6803_v9 }
 0x481   :  { %2869 = vmatprep.subr.mxu1 %v6807_v7  ;;  %4882 = vmatprep.subr.mxu0 %v8069_v25 }
 0x482   :  { %2870 = vmatpush1.msra.mxu1 %v6811_v39  ;;  %4883 = vmatpush3.msra.mxu0 %v6813_v28 }
 0x483   :  { %2871 = vmatprep.subr.mxu1 %v6817_v46  ;;  %4884 = vmatprep.subr.mxu0 %v8069_v25 }
 0x484   :  { %2872 = vmatpush1.msra.mxu1 %v6821_v48  ;;  %4885 = vmatpush3.msra.mxu0 %v6823_v19 }
 0x485   :  { %2873 = vmatprep.subr.mxu1 %v6827_v31  ;;  %4886 = vmatprep.subr.mxu0 %v8069_v25 }
 0x486   :  { %2874 = vmatpush1.msra.mxu1 %v6831_v32  ;;  %4887 = vmatpush3.msra.mxu0 %v6833_v33  ;;  %v8262_v33 = vld [vmem:[#allocation51_spill] sm:$0xff] }
 0x487   :  { %2875 = vmatprep.subr.mxu1 %v6837_v1  ;;  %4888 = vmatprep.subr.mxu0 %v8069_v25 }
 0x488   :  { %2876 = vmatpush1.msra.mxu1 %v8247_v41  ;;  %4889 = vmatpush3.msra.mxu0 %v8248_v26  ;;  %v8264_v26 = vld [vmem:[#allocation63_spill] sm:$0xff] }
 0x489   :  { %2877 = vmatprep.subr.mxu1 %v8249_v29  ;;  %4890 = vmatprep.subr.mxu0 %v8069_v25 }
 0x48a   :  { %2878 = vmatpush1.msra.mxu1 %v8250_v37  ;;  %4891 = vmatpush3.msra.mxu0 %v8251_v44 }
 0x48b   :  { %2879 = vmatprep.subr.mxu1 %v8252_v40  ;;  %4892 = vmatprep.subr.mxu0 %v8069_v25 }
 0x48c   :  { %2880 = vmatpush1.msra.mxu1 %v8253_v50  ;;  %4893 = vmatpush3.msra.mxu0 %v8254_v52 }
 0x48d   :  { %2881 = vmatprep.subr.mxu1 %v8255_v12  ;;  %4894 = vmatprep.subr.mxu0 %v8069_v25 }
 0x48e   :  { %2882 = vmatpush1.msra.mxu1 %v8256_v51  ;;  %4895 = vmatpush3.msra.mxu0 %v8257_v27 }
 0x48f   :  { %2915 = vmatprep.mubr.f32.mxu1 %v8069_v25  ;;  %4896 = vmatprep.mubr.msk.f32.mxu0 %vm5293_vm1, %v8069_v25 }
 0x490   :  { %3061 = vmatprep.subr.mxu1 %v8258_v0  ;;  %4899 = vmatprep.subr.mxu0 %v8069_v25 }
 0x50d   :  { %v2473_v11 = vpop.f32.mrf.mxu1  ;;  %v2544_v54 = vpop.f32.mrf.mxu0 }
 0x50e   :  { %v2474_v59 = vadd.f32 %v2473_v11, %v6035_v16  ;;  %v2545_v48 = vadd.f32 %v2544_v54, %v6080_v38  ;;  %v2788_v54 = vmul.f32 %v2346_v20, %v6905_v5  ;;  %v8265_v20 = vld [vmem:[#allocation23_spill] sm:$0xff] }
 0x50f   :  { %v2475_v21 = vpop.f32.mrf.mxu1  ;;  %v4828_v56 = vpop.f32.mrf.mxu0 }
 0x510   :  { %v2548_v22 = vadd.f32 %v2474_v59, %v8259_v42  ;;  %v2476_v23 = vadd.f32 %v2475_v21, %v8260_v4  ;;  %v8267_v42 = vld [vmem:[#allocation24_spill] sm:$0xff] }
 0x512   :  { %v4212_v55 = vmul.f32 -1.442695, %v2548_v22  ;;  %v2555_v45 = vadd.f32 %v2476_v23, %v8261_v36  ;;  %v8269_v22 = vld [vmem:[#allocation38_spill] sm:$0xff]  ;;  %v8273_v23 = vld [vmem:[#allocation64_spill] sm:$0xff] }
 0x514   :  { %5164 = vpow2.f32 %v4212_v55  ;;  %v4213_v24 = vmul.f32 -1.442695, %v2555_v45  ;;  %v8272_v55 = vld [vmem:[#allocation48_spill] sm:$0xff]  ;;  %v8274_v45 = vld [vmem:[#allocation67_spill] sm:$0xff] }
 0x516   :  { %5166 = vpow2.f32 %v4213_v24  ;;  %v8275_v24 = vld [vmem:[#allocation26_spill] sm:$0xff] }
 0x521   :  { %v5165_v18 = vpop.eup %5164 }
 0x522   :  { %v2552_v43 = vadd.f32 1.0, %v5165_v18  ;;  %v8276_v18 = vld [vmem:[#allocation27_spill] sm:$0xff] }
 0x523   :  { %v5167_v9 = vpop.eup %5166 }
 0x524   :  { %5168 = vrcp.f32 %v2552_v43  ;;  %v2559_v7 = vadd.f32 1.0, %v5167_v9  ;;  %v8277_v43 = vld [vmem:[#allocation28_spill] sm:$0xff]  ;;  %v8278_v9 = vld [vmem:[#allocation29_spill] sm:$0xff] }
 0x526   :  { %5170 = vrcp.f32 %v2559_v7  ;;  %v8279_v7 = vld [vmem:[#allocation30_spill] sm:$0xff] }
 0x52e   :  { %v2683_v39 = vpop.f32.mrf.mxu1  ;;  %v2754_v28 = vpop.f32.mrf.mxu0 }
 0x52f   :  { %v2684_v46 = vadd.f32 %v2683_v39, %v6077_v57  ;;  %v8280_v39 = vld [vmem:[#allocation68_spill] sm:$0xff] }
 0x530   :  { %v2685_v19 = vpop.f32.mrf.mxu1  ;;  %v4863_v31 = vpop.f32.mrf.mxu0 }
 0x531   :  { %v5169_v32 = vpop.eup %5168  ;;  %v2758_v1 = vadd.f32 %v2684_v46, %v8262_v33  ;;  %v2686_v14 = vadd.f32 %v2685_v19, %v6085_v58  ;;  %v8282_v46 = vld [vmem:[#allocation70_spill] sm:$0xff]  ;;  %v8284_v19 = vld [vmem:[#allocation72_spill] sm:$0xff]  ;;  %v8285_v31 = vld [vmem:[#allocation73_spill] sm:$0xff] }
 0x532   :  { %v2562_v61 = vmul.f32 %v5169_v32, %v2545_v48  ;;  %v8283_v48 = vld [vmem:[#allocation71_spill] sm:$0xff]  ;;  %v8286_v32 = vld [vmem:[#allocation74_spill] sm:$0xff] }
 0x533   :  { %v4214_v10 = vmul.f32 -1.442695, %v2758_v1  ;;  %v2765_v29 = vadd.f32 %v2686_v14, %v8264_v26  ;;  %v5171_v44 = vpop.eup %5170  ;;  %v8287_v33 = vld [vmem:[#allocation75_spill] sm:$0xff]  ;;  %v8288_v1 = vld [vmem:[#allocation76_spill] sm:$0xff]  ;;  %v8293_v26 = vld [vmem:[#allocation81_spill] sm:$0xff] }
 0x534   :  { %v2563_v41 = vadd.f32 %v2562_v61, %v8263_v47  ;;  %v2565_v50 = vsub.f32 1.0, %v5171_v44  ;;  %v2567_v27 = vmul.f32 %v5171_v44, %v6905_v5  ;;  %v8289_v61 = vld [vmem:[#allocation77_spill] sm:$0xff]  ;;  %v8291_v47 = vld [vmem:[#allocation79_spill] sm:$0xff]  ;;  %v8296_v44 = vld [vmem:[#allocation84_spill] sm:$0xff] }
 0x535   :  { %5172 = vpow2.f32 %v4214_v10  ;;  %v4215_v37 = vmul.f32 -1.442695, %v2765_v29  ;;  %v8290_v10 = vld [vmem:[#allocation78_spill] sm:$0xff] }
 0x536   :  { %5174 = vtanh.f32 %v2563_v41  ;;  %v8292_v41 = vld [vmem:[#allocation80_spill] sm:$0xff]  ;;  %v8294_v29 = vld [vmem:[#allocation82_spill] sm:$0xff] }
 0x537   :  { %5176 = vpow2.f32 %v4215_v37  ;;  %v8295_v37 = vld [vmem:[#allocation83_spill] sm:$0xff] }
 0x542   :  { %v5173_v40 = vpop.eup %5172 }
 0x543   :  { %v5175_v52 = vpop.eup %5174  ;;  %v2762_v12 = vadd.f32 1.0, %v5173_v40 }
 0x544   :  { %v2566_v51 = vmul.f32 %v5175_v52, %v2565_v50  ;;  %v5177_v21 = vpop.eup %5176  ;;  %v8297_v52 = vld [vmem:[#allocation85_spill] sm:$0xff] }
 0x545   :  { %5178 = vrcp.f32 %v2762_v12  ;;  %v2769_v5 = vadd.f32 1.0, %v5177_v21  ;;  %v8298_v12 = vld [vmem:[#allocation86_spill] sm:$0xff] }
 0x546   :  { %v2568_v0 = vadd.f32 %v2567_v27, %v2566_v51  ;;  %v8299_v51 = vld [vmem:[#allocation87_spill] sm:$0xff]  ;;  %v8301_v21 = vld [vmem:[#allocation22_spill] sm:$0xff] }
 0x547   :  { %5180 = vrcp.f32 %v2769_v5 }
 0x548   :  { %v2781_v11 = vmul.f32 %v7034_v3, %v2568_v0  ;;  %v8266_v3 = vld [vmem:[#allocation69_spill] sm:$0xff] }
 0x549   :  { %v2755_v56 = vadd.f32 %v2754_v28, %v8266_v3  ;;  %v8281_v28 = vld [vmem:[#allocation31_spill] sm:$0xff] }
 0x54a   :  { %4218 = vst [vmem:[%s7832_s8 + $0x20] sm:$0xff] %v2781_v11  ;;  %v7175_v59 = vadd.f32 %v2788_v54, %v2781_v11  ;;  %v8300_v11 = vld [vmem:[#allocation88_spill] sm:$0xff] }
 0x54c   :  { %2916 = vmatmul.mubr.f32.vlgmr.msra.gmra.mxu1 %v7175_v59  ;;  %4897 = vmatmul.mubr.f32.vlgmr.msra.gmra.mxu0 %v7175_v59 }
 0x54d   :  { %3062 = vmatpush1.msra.mxu1 %v6907_v53  ;;  %4900 = vmatpush3.msra.mxu0 %v6909_v62  ;;  %v8268_v53 = vld [vmem:[#allocation25_spill] sm:$0xff] }
 0x54e   :  { %3063 = vmatprep.subr.mxu1 %v6911_v49  ;;  %4901 = vmatprep.subr.mxu0 %v8069_v25 }
 0x54f   :  { %3064 = vmatpush1.msra.mxu1 %v6915_v2  ;;  %4902 = vmatpush3.msra.mxu0 %v6917_v15  ;;  %v8270_v2 = vld [vmem:[#allocation40_spill] sm:$0xff]  ;;  %v8271_v15 = vld [vmem:[#allocation57_spill] sm:$0xff] }
 0x550   :  { %3065 = vmatprep.subr.mxu1 %v8265_v20  ;;  %4903 = vmatprep.subr.mxu0 %v8069_v25  ;;  %v8302_v20 = vsub.f32 1.0, %v8301_v21 }
 0x551   :  { %3066 = vmatpush1.msra.mxu1 %v8267_v42  ;;  %4904 = vmatpush3.msra.mxu0 %v8268_v53  ;;  %v7287_v42 = vld [vmem:[#allocation4 + $0x148] sm:$0xff] }
 0x552   :  { %v5179_v62 = vpop.eup %5178  ;;  %3067 = vmatprep.subr.mxu1 %v8269_v22  ;;  %4905 = vmatprep.subr.mxu0 %v8069_v25  ;;  %v7291_v53 = vld [vmem:[#allocation4 + $0x128] sm:$0xff]  ;;  %v7297_v22 = vld [vmem:[#allocation4 + $0x130] sm:$0xff] }
 0x553   :  { %v2772_v49 = vmul.f32 %v5179_v62, %v2755_v56  ;;  %3068 = vmatpush1.msra.mxu1 %v8270_v2  ;;  %4906 = vmatpush3.msra.mxu0 %v8271_v15  ;;  %v7285_v56 = vld [vmem:[#allocation4 + $0x138] sm:$0xff]  ;;  %v7295_v62 = vld [vmem:[#allocation4 + $0x120] sm:$0xff]  ;;  %v7305_v2 = vld [vmem:[#allocation4 + $0x108] sm:$0xff] }
 0x554   :  { %3069 = vmatprep.subr.mxu1 %v8272_v55  ;;  %4907 = vmatprep.subr.mxu0 %v8069_v25  ;;  %v5181_v14 = vpop.eup %5180  ;;  %v7307_v15 = vld [vmem:[#allocation4 + $0x118] sm:$0xff] }
 0x555   :  { %v2773_v36 = vadd.f32 %v2772_v49, %v8273_v23  ;;  %3070 = vmatpush1.msra.mxu1 %v8274_v45  ;;  %4908 = vmatpush3.msra.mxu0 %v8275_v24  ;;  %v2775_v40 = vsub.f32 1.0, %v5181_v14  ;;  %v2777_v0 = vmul.f32 %v5181_v14, %v7081_v17  ;;  %v7301_v49 = vld [vmem:[#allocation4 + $0x110] sm:$0xff]  ;;  %v7311_v55 = vld [vmem:[#allocation4 + $0xf8] sm:$0xff]  ;;  %v7321_v45 = vld [vmem:[#allocation4 + $0xe0] sm:$0xff] }
 0x556   :  { %3071 = vmatprep.subr.mxu1 %v8276_v18  ;;  %4909 = vmatprep.subr.mxu0 %v8069_v25  ;;  %v7315_v23 = vld [vmem:[#allocation4 + $0xf0] sm:$0xff]  ;;  %v7325_v24 = vld [vmem:[#allocation4 + $0xd8] sm:$0xff]  ;;  %v7327_v18 = vld [vmem:[#allocation4 + $0xe8] sm:$0xff] }
 0x557   :  { %5182 = vtanh.f32 %v2773_v36  ;;  %3072 = vmatpush1.msra.mxu1 %v8277_v43  ;;  %4910 = vmatpush3.msra.mxu0 %v8278_v9  ;;  %v7317_v36 = vld [vmem:[#allocation4 + $0x100] sm:$0xff]  ;;  %v7331_v43 = vld [vmem:[#allocation4 + $0xc8] sm:$0xff]  ;;  %v7377_v14 = vld [vmem:[#allocation4 + $0x70] sm:$0xff] }
 0x558   :  { %3073 = vmatprep.subr.mxu1 %v8279_v7  ;;  %4911 = vmatprep.subr.mxu0 %v8069_v25  ;;  %v7335_v9 = vld [vmem:[#allocation4 + $0xc0] sm:$0xff]  ;;  %v7337_v7 = vld [vmem:[#allocation4 + $0xd0] sm:$0xff] }
 0x559   :  { %3074 = vmatpush1.msra.mxu1 %v8280_v39  ;;  %4912 = vmatpush3.msra.mxu0 %v8281_v28  ;;  %v7341_v39 = vld [vmem:[#allocation4 + $0xb0] sm:$0xff]  ;;  %v7345_v28 = vld [vmem:[#allocation4 + $0xa8] sm:$0xff] }
 0x55a   :  { %3075 = vmatprep.subr.mxu1 %v8282_v46  ;;  %4913 = vmatprep.subr.mxu0 %v8069_v25  ;;  %v7347_v46 = vld [vmem:[#allocation4 + $0xb8] sm:$0xff] }
 0x55b   :  { %3076 = vmatpush1.msra.mxu1 %v8283_v48  ;;  %4914 = vmatpush3.msra.mxu0 %v8284_v19  ;;  %v7351_v48 = vld [vmem:[#allocation4 + $0x98] sm:$0xff]  ;;  %v7355_v19 = vld [vmem:[#allocation4 + $0x90] sm:$0xff] }
 0x55c   :  { %3077 = vmatprep.subr.mxu1 %v8285_v31  ;;  %4915 = vmatprep.subr.mxu0 %v8069_v25  ;;  %v7357_v31 = vld [vmem:[#allocation4 + $0xa0] sm:$0xff] }
 0x55d   :  { %3078 = vmatpush1.msra.mxu1 %v8286_v32  ;;  %4916 = vmatpush3.msra.mxu0 %v8287_v33  ;;  %v7361_v32 = vld [vmem:[#allocation4 + $0x80] sm:$0xff]  ;;  %v7365_v33 = vld [vmem:[#allocation4 + $0x78] sm:$0xff] }
 0x55e   :  { %3079 = vmatprep.subr.mxu1 %v8288_v1  ;;  %4917 = vmatprep.subr.mxu0 %v8069_v25  ;;  %v7367_v1 = vld [vmem:[#allocation4 + $0x88] sm:$0xff] }
 0x55f   :  { %3080 = vmatpush1.msra.mxu1 %v8289_v61  ;;  %4918 = vmatpush3.msra.mxu0 %v8290_v10  ;;  %v7371_v61 = vld [vmem:[#allocation4 + $0x68] sm:$0xff]  ;;  %v7375_v10 = vld [vmem:[#allocation4 + $0x60] sm:$0xff] }
 0x560   :  { %3081 = vmatprep.subr.mxu1 %v8291_v47  ;;  %4919 = vmatprep.subr.mxu0 %v8069_v25  ;;  %v7381_v47 = vld [vmem:[#allocation4 + $0x50] sm:$0xff] }
 0x561   :  { %3082 = vmatpush1.msra.mxu1 %v8292_v41  ;;  %4920 = vmatpush3.msra.mxu0 %v8293_v26  ;;  %v7385_v41 = vld [vmem:[#allocation4 + $0x48] sm:$0xff]  ;;  %v7387_v26 = vld [vmem:[#allocation4 + $0x58] sm:$0xff] }
 0x562   :  { %3083 = vmatprep.subr.mxu1 %v8294_v29  ;;  %4921 = vmatprep.subr.mxu0 %v8069_v25  ;;  %8303 = vst [vmem:[#allocation89_spill] sm:$0xff] %v7385_v41  ;;  %8304 = vst [vmem:[#allocation90_spill] sm:$0xff] %v7387_v26  ;;  %v7391_v29 = vld [vmem:[#allocation4 + $0x38] sm:$0xff] }
 0x563   :  { %3084 = vmatpush1.msra.mxu1 %v8295_v37  ;;  %4922 = vmatpush3.msra.mxu0 %v8296_v44  ;;  %8305 = vst [vmem:[#allocation91_spill] sm:$0xff] %v7391_v29  ;;  %v7395_v37 = vld [vmem:[#allocation4 + $0x30] sm:$0xff]  ;;  %v7397_v44 = vld [vmem:[#allocation4 + $0x40] sm:$0xff] }
 0x564   :  { %v5183_v50 = vpop.eup %5182  ;;  %3085 = vmatprep.subr.mxu1 %v8297_v52  ;;  %4923 = vmatprep.subr.mxu0 %v8069_v25  ;;  %8306 = vst [vmem:[#allocation92_spill] sm:$0xff] %v7395_v37  ;;  %8307 = vst [vmem:[#allocation93_spill] sm:$0xff] %v7397_v44  ;;  %v7407_v52 = vld [vmem:[#allocation4 + $0x28] sm:$0xff] }
 0x565   :  { %3086 = vmatpush1.msra.mxu1 %v8298_v12  ;;  %4924 = vmatpush3.msra.mxu0 %v8299_v51  ;;  %v2776_v27 = vmul.f32 %v5183_v50, %v2775_v40  ;;  %v7401_v40 = vld [vmem:[#allocation4 + $0x20] sm:$0xff]  ;;  %v7405_v50 = vld [vmem:[#allocation4 + $0x18] sm:$0xff]  ;;  %8310 = vst [vmem:[#allocation42_spill] sm:$0xff] %v7407_v52  ;;  %v7411_v12 = vld [vmem:[#allocation4 + $0x8] sm:$0xff] }
 0x566   :  { %3087 = vmatprep.subr.mxu1 %v7038_v8  ;;  %4925 = vmatprep.subr.mxu0 %v8069_v25  ;;  %v2791_v8 = vmul.f32 %v7081_v17, %v8302_v20  ;;  %v7281_v17 = vld [vmem:[#allocation4 + $0x140] sm:$0xff]  ;;  %8308 = vst [vmem:[#allocation94_spill] sm:$0xff] %v7401_v40  ;;  %8309 = vst [vmem:[#allocation95_spill] sm:$0xff] %v7405_v50 }
 0x567   :  { %3088 = vmatpush1.msra.mxu1 %v7042_v30  ;;  %4926 = vmatpush3.msra.mxu0 %v8300_v11  ;;  %v2778_v54 = vadd.f32 %v2777_v0, %v2776_v27  ;;  %8311 = vst [vmem:[#allocation43_spill] sm:$0xff] %v7411_v12  ;;  %v7415_v51 = vld [vmem:[#allocation4] sm:$0xff]  ;;  %v7417_v27 = vld [vmem:[#allocation4 + $0x10] sm:$0xff] }
 0x568   :  { %3089 = vmatprep.subr.mxu1 %v7048_v6  ;;  %4927 = vmatprep.subr.mxu0 %v8069_v25  ;;  %v7265_v6 = vld [vmem:[#allocation4 + $0x168] sm:$0xff]  ;;  %8312 = vst [vmem:[#allocation55_spill] sm:$0xff] %v7415_v51  ;;  %8313 = vst [vmem:[#allocation50_spill] sm:$0xff] %v7417_v27  ;;  %v7421_v0 = vld [vmem:[#allocation6 + $0x170] sm:$0xff] }
 0x569   :  { %3090 = vmatpush1.msra.mxu1 %v7054_v34  ;;  %4928 = vmatpush3.msra.mxu0 %v7056_v35  ;;  %v2782_v5 = vmul.f32 %v8301_v21, %v2778_v54  ;;  %v7262_v35 = vld [vmem:[#allocation4 + $0x170] sm:$0xff]  ;;  %v7271_v34 = vld [vmem:[#allocation4 + $0x158] sm:$0xff]  ;;  %8314 = vst [vmem:[#allocation65_spill] sm:$0xff] %v7421_v0 }
 0x56a   :  { %3091 = vmatprep.subr.mxu1 %v7060_v60  ;;  %4929 = vmatprep.subr.mxu0 %v8069_v25  ;;  %v7267_v60 = vld [vmem:[#allocation4 + $0x178] sm:$0xff] }
 0x56b   :  { %3092 = vmatpush1.msra.mxu1 %v7064_v13  ;;  %3125 = vmatprep.mubr.f32.mxu1 %v8069_v25  ;;  %4219 = vst [vmem:[%s7833_s9 + $0x18] sm:$0xff] %v2782_v5  ;;  %v7251_v30 = vadd.f32 %v2791_v8, %v2782_v5  ;;  %v7275_v13 = vld [vmem:[#allocation4 + $0x150] sm:$0xff]  ;;  %v8315_v8 = vld [vmem:[#allocation34_spill] sm:$0xff] }
 0x56c   :  { %4930 = vmatpush3.msra.mxu0 %v7068_v63  ;;  %4931 = vmatprep.mubr.msk.f32.mxu0 %vm5293_vm1, %v8069_v25  ;;  %v7277_v63 = vld [vmem:[#allocation4 + $0x160] sm:$0xff] }
 0x56d   :  { %3126 = vmatmul.mubr.f32.vlgmr.msra.gmra.mxu1 %v7251_v30  ;;  %4932 = vmatmul.mubr.f32.vlgmr.msra.gmra.mxu0 %v7251_v30 }
 0x56e   :  { %4934 = vmatprep.subr.mxu0 %v8069_v25  ;;  %3359 = vmatprep.mubr.f32.mxu1 %v8069_v25 }
 0x56f   :  { %4966 = vmatprep.mubr.msk.f32.mxu0 %vm5293_vm1, %v8069_v25  ;;  %3295 = vmatprep.subr.mxu1 %v7262_v35 }
 0x570   :  { %3296 = vmatpush1.msra.mxu1 %v7265_v6  ;;  %4935 = vmatpush3.msra.mxu0 %v7267_v60 }
 0x571   :  { %3297 = vmatprep.subr.mxu1 %v7271_v34  ;;  %4936 = vmatprep.subr.mxu0 %v8069_v25 }
 0x572   :  { %3298 = vmatpush1.msra.mxu1 %v7275_v13  ;;  %4937 = vmatpush3.msra.mxu0 %v7277_v63 }
 0x573   :  { %3299 = vmatprep.subr.mxu1 %v7281_v17  ;;  %4938 = vmatprep.subr.mxu0 %v8069_v25 }
 0x574   :  { %3300 = vmatpush1.msra.mxu1 %v7285_v56  ;;  %4939 = vmatpush3.msra.mxu0 %v7287_v42 }
 0x575   :  { %3301 = vmatprep.subr.mxu1 %v7291_v53  ;;  %4940 = vmatprep.subr.mxu0 %v8069_v25 }
 0x576   :  { %3302 = vmatpush1.msra.mxu1 %v7295_v62  ;;  %4941 = vmatpush3.msra.mxu0 %v7297_v22 }
 0x577   :  { %3303 = vmatprep.subr.mxu1 %v7301_v49  ;;  %4942 = vmatprep.subr.mxu0 %v8069_v25 }
 0x578   :  { %3304 = vmatpush1.msra.mxu1 %v7305_v2  ;;  %4943 = vmatpush3.msra.mxu0 %v7307_v15 }
 0x579   :  { %3305 = vmatprep.subr.mxu1 %v7311_v55  ;;  %4944 = vmatprep.subr.mxu0 %v8069_v25 }
 0x57a   :  { %3306 = vmatpush1.msra.mxu1 %v7315_v23  ;;  %4945 = vmatpush3.msra.mxu0 %v7317_v36 }
 0x57b   :  { %3307 = vmatprep.subr.mxu1 %v7321_v45  ;;  %4946 = vmatprep.subr.mxu0 %v8069_v25 }
 0x57c   :  { %3308 = vmatpush1.msra.mxu1 %v7325_v24  ;;  %4947 = vmatpush3.msra.mxu0 %v7327_v18 }
 0x57d   :  { %3309 = vmatprep.subr.mxu1 %v7331_v43  ;;  %4948 = vmatprep.subr.mxu0 %v8069_v25 }
 0x57e   :  { %3310 = vmatpush1.msra.mxu1 %v7335_v9  ;;  %4949 = vmatpush3.msra.mxu0 %v7337_v7 }
 0x57f   :  { %3311 = vmatprep.subr.mxu1 %v7341_v39  ;;  %4950 = vmatprep.subr.mxu0 %v8069_v25 }
 0x580   :  { %3312 = vmatpush1.msra.mxu1 %v7345_v28  ;;  %4951 = vmatpush3.msra.mxu0 %v7347_v46 }
 0x581   :  { %3313 = vmatprep.subr.mxu1 %v7351_v48  ;;  %4952 = vmatprep.subr.mxu0 %v8069_v25 }
 0x582   :  { %3314 = vmatpush1.msra.mxu1 %v7355_v19  ;;  %4953 = vmatpush3.msra.mxu0 %v7357_v31 }
 0x583   :  { %3315 = vmatprep.subr.mxu1 %v7361_v32  ;;  %4954 = vmatprep.subr.mxu0 %v8069_v25 }
 0x584   :  { %3316 = vmatpush1.msra.mxu1 %v7365_v33  ;;  %4955 = vmatpush3.msra.mxu0 %v7367_v1 }
 0x585   :  { %3317 = vmatprep.subr.mxu1 %v7371_v61  ;;  %4956 = vmatprep.subr.mxu0 %v8069_v25 }
 0x586   :  { %3318 = vmatpush1.msra.mxu1 %v7375_v10  ;;  %4957 = vmatpush3.msra.mxu0 %v7377_v14 }
 0x587   :  { %3319 = vmatprep.subr.mxu1 %v7381_v47  ;;  %4958 = vmatprep.subr.mxu0 %v8069_v25 }
 0x588   :  { %3320 = vmatpush1.msra.mxu1 %v7385_v41  ;;  %4959 = vmatpush3.msra.mxu0 %v7387_v26 }
 0x589   :  { %3321 = vmatprep.subr.mxu1 %v7391_v29  ;;  %4960 = vmatprep.subr.mxu0 %v8069_v25 }
 0x58a   :  { %3322 = vmatpush1.msra.mxu1 %v7395_v37  ;;  %4961 = vmatpush3.msra.mxu0 %v7397_v44 }
 0x58b   :  { %3323 = vmatprep.subr.mxu1 %v7401_v40  ;;  %4962 = vmatprep.subr.mxu0 %v8069_v25 }
 0x58c   :  { %3324 = vmatpush1.msra.mxu1 %v7405_v50  ;;  %4963 = vmatpush3.msra.mxu0 %v7407_v52 }
 0x58d   :  { %3325 = vmatprep.subr.mxu1 %v7411_v12  ;;  %4964 = vmatprep.subr.mxu0 %v8069_v25 }
 0x58e   :  { %3326 = vmatpush1.msra.mxu1 %v7415_v51  ;;  %4965 = vmatpush3.msra.mxu0 %v7417_v27  ;;  %v8316_v51 = vld [vmem:[#allocation35_spill] sm:$0xff] }
 0x58f   :  { %3505 = vmatprep.subr.mxu1 %v7421_v0  ;;  %4969 = vmatprep.subr.mxu0 %v8069_v25 }
 0x60c   :  { %v2917_v11 = vpop.f32.mrf.mxu1  ;;  %v2988_v54 = vpop.f32.mrf.mxu0 }
 0x60d   :  { %v2918_v21 = vadd.f32 %v2917_v11, %v6035_v16 }
 0x60e   :  { %v2919_v5 = vpop.f32.mrf.mxu1  ;;  %v4898_v20 = vpop.f32.mrf.mxu0 }
 0x60f   :  { %v2992_v12 = vadd.f32 %v2918_v21, %v8315_v8  ;;  %v2920_v50 = vadd.f32 %v2919_v5, %v8260_v4  ;;  %v2989_v20 = vadd.f32 %v2988_v54, %v6080_v38  ;;  %v8317_v5 = vld [vmem:[#allocation49_spill] sm:$0xff]  ;;  %v4224_v54 = vld [vmem:[%s7825_s1 + $0x28] sm:$0xff] }
 0x611   :  { %v4220_v52 = vmul.f32 -1.442695, %v2992_v12  ;;  %v2999_v27 = vadd.f32 %v2920_v50, %v8316_v51 }
 0x613   :  { %5184 = vpow2.f32 %v4220_v52  ;;  %v4221_v40 = vmul.f32 -1.442695, %v2999_v27 }
 0x615   :  { %5186 = vpow2.f32 %v4221_v40 }
 0x620   :  { %v5185_v44 = vpop.eup %5184 }
 0x621   :  { %v2996_v0 = vadd.f32 1.0, %v5185_v44  ;;  %v8318_v44 = vld [vmem:[#allocation56_spill] sm:$0xff] }
 0x622   :  { %v5187_v37 = vpop.eup %5186 }
 0x623   :  { %5188 = vrcp.f32 %v2996_v0  ;;  %v3003_v29 = vadd.f32 1.0, %v5187_v37  ;;  %v8319_v37 = vld [vmem:[#allocation59_spill] sm:$0xff] }
 0x625   :  { %5190 = vrcp.f32 %v3003_v29 }
 0x62d   :  { %v3127_v26 = vpop.f32.mrf.mxu1  ;;  %v3198_v41 = vpop.f32.mrf.mxu0 }
 0x62e   :  { %v3128_v11 = vadd.f32 %v3127_v26, %v6077_v57 }
 0x62f   :  { %v3129_v21 = vpop.f32.mrf.mxu1  ;;  %v4933_v12 = vpop.f32.mrf.mxu0 }
 0x630   :  { %v5189_v8 = vpop.eup %5188  ;;  %v3202_v52 = vadd.f32 %v3128_v11, %v8317_v5  ;;  %v3130_v40 = vadd.f32 %v3129_v21, %v6085_v58  ;;  %v3231_v5 = vsub.f32 1.0, %v4224_v54 }
 0x631   :  { %v3006_v4 = vmul.f32 %v5189_v8, %v2989_v20 }
 0x632   :  { %v4222_v50 = vmul.f32 -1.442695, %v3202_v52  ;;  %v3209_v27 = vadd.f32 %v3130_v40, %v8319_v37  ;;  %v5191_v26 = vpop.eup %5190  ;;  %v7449_v37 = vld [vmem:[#allocation6 + $0x158] sm:$0xff] }
 0x633   :  { %v3007_v51 = vadd.f32 %v3006_v4, %v8318_v44  ;;  %v3009_v11 = vsub.f32 1.0, %v5191_v26  ;;  %v3011_v21 = vmul.f32 %v5191_v26, %v7175_v59  ;;  %v7445_v44 = vld [vmem:[#allocation6 + $0x168] sm:$0xff]  ;;  %v7459_v26 = vld [vmem:[#allocation6 + $0x140] sm:$0xff] }
 0x634   :  { %5192 = vpow2.f32 %v4222_v50  ;;  %v4223_v0 = vmul.f32 -1.442695, %v3209_v27  ;;  %v3232_v50 = vmul.f32 %v3231_v5, %v7175_v59  ;;  %v7455_v59 = vld [vmem:[#allocation6 + $0x160] sm:$0xff]  ;;  %8320 = vst [vmem:[#allocation66_spill] sm:$0xff] %v7459_v26  ;;  %v7480_v5 = vld [vmem:[#allocation6 + $0x110] sm:$0xff] }
 0x635   :  { %5194 = vtanh.f32 %v3007_v51  ;;  %v7447_v51 = vld [vmem:[#allocation6 + $0x178] sm:$0xff]  ;;  %8326 = vst [vmem:[#allocation15_spill] sm:$0xff] %v7480_v5 }
 0x636   :  { %5196 = vpow2.f32 %v4223_v0  ;;  %v7453_v0 = vld [vmem:[#allocation6 + $0x150] sm:$0xff] }
 0x641   :  { %v5193_v12 = vpop.eup %5192 }
 0x642   :  { %v5195_v20 = vpop.eup %5194  ;;  %v3206_v29 = vadd.f32 1.0, %v5193_v12  ;;  %v7465_v12 = vld [vmem:[#allocation6 + $0x148] sm:$0xff] }
 0x643   :  { %v3010_v8 = vmul.f32 %v5195_v20, %v3009_v11  ;;  %v5197_v27 = vpop.eup %5196  ;;  %8322 = vst [vmem:[#allocation11_spill] sm:$0xff] %v7465_v12  ;;  %v7469_v20 = vld [vmem:[#allocation6 + $0x128] sm:$0xff] }
 0x644   :  { %5198 = vrcp.f32 %v3206_v29  ;;  %v3213_v11 = vadd.f32 1.0, %v5197_v27  ;;  %8323 = vst [vmem:[#allocation12_spill] sm:$0xff] %v7469_v20  ;;  %v7473_v29 = vld [vmem:[#allocation6 + $0x120] sm:$0xff] }
 0x645   :  { %v3012_v4 = vadd.f32 %v3011_v21, %v3010_v8  ;;  %8324 = vst [vmem:[#allocation13_spill] sm:$0xff] %v7473_v29  ;;  %v7475_v8 = vld [vmem:[#allocation6 + $0x130] sm:$0xff]  ;;  %v3199_v21 = vadd.f32 %v3198_v41, %v8266_v3  ;;  %v7490_v41 = vld [vmem:[#allocation6 + $0xf8] sm:$0xff] }
 0x646   :  { %8325 = vst [vmem:[#allocation14_spill] sm:$0xff] %v7475_v8  ;;  %5200 = vrcp.f32 %v3213_v11  ;;  %8329 = vst [vmem:[#allocation18_spill] sm:$0xff] %v7490_v41  ;;  %v7501_v11 = vld [vmem:[#allocation6 + $0xe0] sm:$0xff] }
 0x647   :  { %v3225_v52 = vmul.f32 %v4224_v54, %v3012_v4  ;;  %v7463_v54 = vld [vmem:[#allocation6 + $0x138] sm:$0xff]  ;;  %8333 = vst [vmem:[#allocation21_spill] sm:$0xff] %v7501_v11 }
 0x648   :  { %8321 = vst [vmem:[#allocation10_spill] sm:$0xff] %v7463_v54 }
 0x649   :  { %4226 = vst [vmem:[%s7832_s8 + $0x28] sm:$0xff] %v3225_v52  ;;  %v7443_v40 = vadd.f32 %v3232_v50, %v3225_v52  ;;  %v7484_v52 = vld [vmem:[#allocation6 + $0x108] sm:$0xff]  ;;  %v7486_v50 = vld [vmem:[#allocation6 + $0x118] sm:$0xff] }
 0x64a   :  { %8327 = vst [vmem:[#allocation16_spill] sm:$0xff] %v7484_v52  ;;  %8328 = vst [vmem:[#allocation17_spill] sm:$0xff] %v7486_v50 }
 0x64b   :  { %3360 = vmatmul.mubr.f32.vlgmr.msra.gmra.mxu1 %v7443_v40  ;;  %4967 = vmatmul.mubr.f32.vlgmr.msra.gmra.mxu0 %v7443_v40 }
 0x64c   :  { %3506 = vmatpush1.msra.mxu1 %v7445_v44  ;;  %4970 = vmatpush3.msra.mxu0 %v7447_v51 }
 0x64d   :  { %3507 = vmatprep.subr.mxu1 %v7449_v37  ;;  %4971 = vmatprep.subr.mxu0 %v8069_v25 }
 0x64e   :  { %3508 = vmatpush1.msra.mxu1 %v7453_v0  ;;  %4972 = vmatpush3.msra.mxu0 %v7455_v59 }
 0x64f   :  { %3509 = vmatprep.subr.mxu1 %v7459_v26  ;;  %4973 = vmatprep.subr.mxu0 %v8069_v25  ;;  %v7591_v26 = vld [vmem:[#allocation6 + $0x28] sm:$0xff] }
 0x650   :  { %3510 = vmatpush1.msra.mxu1 %v7463_v54  ;;  %4974 = vmatpush3.msra.mxu0 %v7465_v12  ;;  %v7494_v12 = vld [vmem:[#allocation6 + $0xf0] sm:$0xff]  ;;  %v8332_v54 = vld [vmem:[#allocation61_spill] sm:$0xff] }
 0x651   :  { %v5199_v4 = vpop.eup %5198  ;;  %3511 = vmatprep.subr.mxu1 %v7469_v20  ;;  %4975 = vmatprep.subr.mxu0 %v8069_v25  ;;  %8330 = vst [vmem:[#allocation19_spill] sm:$0xff] %v7494_v12  ;;  %v7496_v20 = vld [vmem:[#allocation6 + $0x100] sm:$0xff] }
 0x652   :  { %v3216_v27 = vmul.f32 %v5199_v4, %v3199_v21  ;;  %3512 = vmatpush1.msra.mxu1 %v7473_v29  ;;  %4976 = vmatpush3.msra.mxu0 %v7475_v8  ;;  %8331 = vst [vmem:[#allocation20_spill] sm:$0xff] %v7496_v20  ;;  %v7505_v21 = vld [vmem:[#allocation6 + $0xd8] sm:$0xff]  ;;  %v7507_v4 = vld [vmem:[#allocation6 + $0xe8] sm:$0xff]  ;;  %v7584_v8 = vld [vmem:[#allocation6 + $0x20] sm:$0xff] }
 0x653   :  { %3513 = vmatprep.subr.mxu1 %v7480_v5  ;;  %4977 = vmatprep.subr.mxu0 %v8069_v25  ;;  %8334 = vst [vmem:[#allocation32_spill] sm:$0xff] %v7505_v21  ;;  %8335 = vst [vmem:[#allocation33_spill] sm:$0xff] %v7507_v4  ;;  %v7580_v5 = vld [vmem:[#allocation6 + $0x40] sm:$0xff] }
 0x654   :  { %v3217_v3 = vadd.f32 %v3216_v27, %v8332_v54  ;;  %3514 = vmatpush1.msra.mxu1 %v7484_v52  ;;  %4978 = vmatpush3.msra.mxu0 %v7486_v50  ;;  %v7511_v54 = vld [vmem:[#allocation6 + $0xc8] sm:$0xff]  ;;  %v7515_v27 = vld [vmem:[#allocation6 + $0xc0] sm:$0xff]  ;;  %v7521_v50 = vld [vmem:[#allocation6 + $0xb0] sm:$0xff] }
 0x655   :  { %3515 = vmatprep.subr.mxu1 %v7490_v41  ;;  %4979 = vmatprep.subr.mxu0 %v8069_v25  ;;  %8336 = vst [vmem:[#allocation51_spill] sm:$0xff] %v7511_v54  ;;  %8337 = vst [vmem:[#allocation53_spill] sm:$0xff] %v7515_v27  ;;  %v7517_v41 = vld [vmem:[#allocation6 + $0xd0] sm:$0xff] }
 0x656   :  { %5202 = vtanh.f32 %v3217_v3  ;;  %3516 = vmatpush1.msra.mxu1 %v7494_v12  ;;  %4980 = vmatpush3.msra.mxu0 %v7496_v20  ;;  %8338 = vst [vmem:[#allocation63_spill] sm:$0xff] %v7517_v41  ;;  %8339 = vst [vmem:[#allocation23_spill] sm:$0xff] %v7521_v50  ;;  %v7525_v3 = vld [vmem:[#allocation6 + $0xa8] sm:$0xff]  ;;  %v7527_v20 = vld [vmem:[#allocation6 + $0xb8] sm:$0xff]  ;;  %v5201_v12 = vpop.eup %5200 }
 0x657   :  { %3517 = vmatprep.subr.mxu1 %v7501_v11  ;;  %4981 = vmatprep.subr.mxu0 %v8069_v25  ;;  %8340 = vst [vmem:[#allocation24_spill] sm:$0xff] %v7525_v3  ;;  %8341 = vst [vmem:[#allocation25_spill] sm:$0xff] %v7527_v20  ;;  %v7531_v11 = vld [vmem:[#allocation6 + $0x98] sm:$0xff] }
 0x658   :  { %3518 = vmatpush1.msra.mxu1 %v7505_v21  ;;  %4982 = vmatpush3.msra.mxu0 %v7507_v4  ;;  %8342 = vst [vmem:[#allocation38_spill] sm:$0xff] %v7531_v11  ;;  %v7535_v4 = vld [vmem:[#allocation6 + $0x90] sm:$0xff]  ;;  %v7537_v21 = vld [vmem:[#allocation6 + $0xa0] sm:$0xff] }
 0x659   :  { %3519 = vmatprep.subr.mxu1 %v7511_v54  ;;  %4983 = vmatprep.subr.mxu0 %v8069_v25  ;;  %8343 = vst [vmem:[#allocation40_spill] sm:$0xff] %v7535_v4  ;;  %8344 = vst [vmem:[#allocation57_spill] sm:$0xff] %v7537_v21  ;;  %v7541_v54 = vld [vmem:[#allocation6 + $0x80] sm:$0xff] }
 0x65a   :  { %3520 = vmatpush1.msra.mxu1 %v7515_v27  ;;  %4984 = vmatpush3.msra.mxu0 %v7517_v41  ;;  %8345 = vst [vmem:[#allocation48_spill] sm:$0xff] %v7541_v54  ;;  %v7545_v41 = vld [vmem:[#allocation6 + $0x78] sm:$0xff]  ;;  %v7547_v27 = vld [vmem:[#allocation6 + $0x88] sm:$0xff] }
 0x65b   :  { %3521 = vmatprep.subr.mxu1 %v7521_v50  ;;  %4985 = vmatprep.subr.mxu0 %v8069_v25  ;;  %8346 = vst [vmem:[#allocation64_spill] sm:$0xff] %v7545_v41  ;;  %8347 = vst [vmem:[#allocation67_spill] sm:$0xff] %v7547_v27  ;;  %v7551_v50 = vld [vmem:[#allocation6 + $0x68] sm:$0xff] }
 0x65c   :  { %3522 = vmatpush1.msra.mxu1 %v7525_v3  ;;  %4986 = vmatpush3.msra.mxu0 %v7527_v20  ;;  %8348 = vst [vmem:[#allocation26_spill] sm:$0xff] %v7551_v50  ;;  %v7555_v20 = vld [vmem:[#allocation6 + $0x60] sm:$0xff]  ;;  %v7561_v3 = vld [vmem:[#allocation6 + $0x50] sm:$0xff] }
 0x65d   :  { %3523 = vmatprep.subr.mxu1 %v7531_v11  ;;  %4987 = vmatprep.subr.mxu0 %v8069_v25  ;;  %8349 = vst [vmem:[#allocation27_spill] sm:$0xff] %v7555_v20  ;;  %v7557_v11 = vld [vmem:[#allocation6 + $0x70] sm:$0xff]  ;;  %8351 = vst [vmem:[#allocation29_spill] sm:$0xff] %v7561_v3 }
 0x65e   :  { %3524 = vmatpush1.msra.mxu1 %v7535_v4  ;;  %4988 = vmatpush3.msra.mxu0 %v7537_v21  ;;  %8350 = vst [vmem:[#allocation28_spill] sm:$0xff] %v7557_v11  ;;  %v7565_v21 = vld [vmem:[#allocation6 + $0x48] sm:$0xff]  ;;  %v7567_v4 = vld [vmem:[#allocation6 + $0x58] sm:$0xff] }
 0x65f   :  { %3525 = vmatprep.subr.mxu1 %v7541_v54  ;;  %4989 = vmatprep.subr.mxu0 %v8069_v25  ;;  %8352 = vst [vmem:[#allocation30_spill] sm:$0xff] %v7565_v21  ;;  %8353 = vst [vmem:[#allocation68_spill] sm:$0xff] %v7567_v4  ;;  %v4225_v54 = vld [vmem:[%s7825_s1 + $0x10] sm:$0xff] }
 0x660   :  { %3526 = vmatpush1.msra.mxu1 %v7545_v41  ;;  %4990 = vmatpush3.msra.mxu0 %v7547_v27  ;;  %v7574_v41 = vld [vmem:[#allocation6 + $0x38] sm:$0xff]  ;;  %v3219_v27 = vsub.f32 1.0, %v5201_v12  ;;  %v3234_v29 = vsub.f32 1.0, %v4225_v54 }
 0x661   :  { %3527 = vmatprep.subr.mxu1 %v7551_v50  ;;  %4991 = vmatprep.subr.mxu0 %v8069_v25  ;;  %v7578_v50 = vld [vmem:[#allocation6 + $0x30] sm:$0xff] }
 0x662   :  { %3528 = vmatpush1.msra.mxu1 %v7555_v20  ;;  %4992 = vmatpush3.msra.mxu0 %v7557_v11  ;;  %8354 = vst [vmem:[#allocation31_spill] sm:$0xff] %v7578_v50  ;;  %v3221_v11 = vmul.f32 %v5201_v12, %v7251_v30  ;;  %v7599_v12 = vld [vmem:[#allocation6] sm:$0xff] }
 0x663   :  { %v5203_v52 = vpop.eup %5202  ;;  %3529 = vmatprep.subr.mxu1 %v7561_v3  ;;  %4993 = vmatprep.subr.mxu0 %v8069_v25  ;;  %v7589_v3 = vld [vmem:[#allocation6 + $0x18] sm:$0xff] }
 0x664   :  { %3530 = vmatpush1.msra.mxu1 %v7565_v21  ;;  %4994 = vmatpush3.msra.mxu0 %v7567_v4  ;;  %v3220_v20 = vmul.f32 %v5203_v52, %v3219_v27  ;;  %v7595_v21 = vld [vmem:[#allocation6 + $0x8] sm:$0xff]  ;;  %v7603_v52 = vld [vmem:[#allocation6 + $0x10] sm:$0xff] }
 0x665   :  { %3531 = vmatprep.subr.mxu1 %v7574_v41  ;;  %4995 = vmatprep.subr.mxu0 %v8069_v25 }
 0x666   :  { %3532 = vmatpush1.msra.mxu1 %v7578_v50  ;;  %4996 = vmatpush3.msra.mxu0 %v7580_v5  ;;  %v3222_v4 = vadd.f32 %v3221_v11, %v3220_v20  ;;  %v3235_v50 = vmul.f32 %v3234_v29, %v7251_v30  ;;  %v8355_v30 = vld [vmem:[#allocation89_spill] sm:$0xff] }
 0x667   :  { %3533 = vmatprep.subr.mxu1 %v7584_v8  ;;  %4997 = vmatprep.subr.mxu0 %v8069_v25 }
 0x668   :  { %3534 = vmatpush1.msra.mxu1 %v7589_v3  ;;  %4998 = vmatpush3.msra.mxu0 %v7591_v26  ;;  %v3226_v27 = vmul.f32 %v4225_v54, %v3222_v4  ;;  %v8371_v4 = vld [vmem:[#allocation58_spill] sm:$0xff] }
 0x669   :  { %3535 = vmatprep.subr.mxu1 %v7595_v21  ;;  %4999 = vmatprep.subr.mxu0 %v8069_v25 }
 0x66a   :  { %3536 = vmatpush1.msra.mxu1 %v7599_v12  ;;  %3569 = vmatprep.mubr.f32.mxu1 %v8069_v25  ;;  %4227 = vst [vmem:[%s7833_s9 + $0x10] sm:$0xff] %v3226_v27  ;;  %v7613_v20 = vadd.f32 %v3235_v50, %v3226_v27  ;;  %v8372_v27 = vld [vmem:[#allocation52_spill] sm:$0xff] }
 0x66b   :  { %5000 = vmatpush3.msra.mxu0 %v7603_v52  ;;  %5001 = vmatprep.mubr.msk.f32.mxu0 %vm5293_vm1, %v8069_v25 }
 0x66c   :  { %3570 = vmatmul.mubr.f32.vlgmr.msra.gmra.mxu1 %v7613_v20  ;;  %5002 = vmatmul.mubr.f32.vlgmr.msra.gmra.mxu0 %v7613_v20 }
 0x66d   :  { %3739 = vmatprep.subr.mxu1 %v7262_v35  ;;  %5004 = vmatprep.subr.mxu0 %v8069_v25  ;;  %v8356_v35 = vld [vmem:[#allocation90_spill] sm:$0xff] }
 0x66e   :  { %3740 = vmatpush1.msra.mxu1 %v7265_v6  ;;  %5005 = vmatpush3.msra.mxu0 %v7267_v60  ;;  %v8357_v6 = vld [vmem:[#allocation91_spill] sm:$0xff]  ;;  %v8358_v60 = vld [vmem:[#allocation92_spill] sm:$0xff] }
 0x66f   :  { %3741 = vmatprep.subr.mxu1 %v7271_v34  ;;  %5006 = vmatprep.subr.mxu0 %v8069_v25  ;;  %v8359_v34 = vld [vmem:[#allocation93_spill] sm:$0xff] }
 0x670   :  { %3742 = vmatpush1.msra.mxu1 %v7275_v13  ;;  %5007 = vmatpush3.msra.mxu0 %v7277_v63  ;;  %v8360_v13 = vld [vmem:[#allocation94_spill] sm:$0xff]  ;;  %v8361_v63 = vld [vmem:[#allocation95_spill] sm:$0xff] }
 0x671   :  { %3743 = vmatprep.subr.mxu1 %v7281_v17  ;;  %5008 = vmatprep.subr.mxu0 %v8069_v25  ;;  %v8362_v17 = vld [vmem:[#allocation42_spill] sm:$0xff] }
 0x672   :  { %3744 = vmatpush1.msra.mxu1 %v7285_v56  ;;  %5009 = vmatpush3.msra.mxu0 %v7287_v42  ;;  %v8363_v56 = vld [vmem:[#allocation43_spill] sm:$0xff] }
 0x673   :  { %3745 = vmatprep.subr.mxu1 %v7291_v53  ;;  %5010 = vmatprep.subr.mxu0 %v8069_v25  ;;  %v8364_v42 = vld [vmem:[#allocation55_spill] sm:$0xff]  ;;  %v8365_v53 = vld [vmem:[#allocation50_spill] sm:$0xff] }
 0x674   :  { %3746 = vmatpush1.msra.mxu1 %v7295_v62  ;;  %5011 = vmatpush3.msra.mxu0 %v7297_v22  ;;  %v8366_v62 = vld [vmem:[#allocation65_spill] sm:$0xff] }
 0x675   :  { %3747 = vmatprep.subr.mxu1 %v7301_v49  ;;  %5012 = vmatprep.subr.mxu0 %v8069_v25 }
 0x676   :  { %3748 = vmatpush1.msra.mxu1 %v7305_v2  ;;  %5013 = vmatpush3.msra.mxu0 %v7307_v15 }
 0x677   :  { %3749 = vmatprep.subr.mxu1 %v7311_v55  ;;  %5014 = vmatprep.subr.mxu0 %v8069_v25 }
 0x678   :  { %3750 = vmatpush1.msra.mxu1 %v7315_v23  ;;  %5015 = vmatpush3.msra.mxu0 %v7317_v36  ;;  %v8367_v23 = vld [vmem:[#allocation36_spill] sm:$0xff] }
 0x679   :  { %3751 = vmatprep.subr.mxu1 %v7321_v45  ;;  %5016 = vmatprep.subr.mxu0 %v8069_v25 }
 0x67a   :  { %3752 = vmatpush1.msra.mxu1 %v7325_v24  ;;  %5017 = vmatpush3.msra.mxu0 %v7327_v18  ;;  %v8368_v24 = vld [vmem:[#allocation62_spill] sm:$0xff] }
 0x67b   :  { %3753 = vmatprep.subr.mxu1 %v7331_v43  ;;  %5018 = vmatprep.subr.mxu0 %v8069_v25  ;;  %v8369_v43 = vld [vmem:[#allocation37_spill] sm:$0xff] }
 0x67c   :  { %3754 = vmatpush1.msra.mxu1 %v7335_v9  ;;  %5019 = vmatpush3.msra.mxu0 %v7337_v7 }
 0x67d   :  { %3755 = vmatprep.subr.mxu1 %v7341_v39  ;;  %5020 = vmatprep.subr.mxu0 %v8069_v25 }
 0x67e   :  { %3756 = vmatpush1.msra.mxu1 %v7345_v28  ;;  %5021 = vmatpush3.msra.mxu0 %v7347_v46 }
 0x67f   :  { %3757 = vmatprep.subr.mxu1 %v7351_v48  ;;  %5022 = vmatprep.subr.mxu0 %v8069_v25 }
 0x680   :  { %3758 = vmatpush1.msra.mxu1 %v7355_v19  ;;  %5023 = vmatpush3.msra.mxu0 %v7357_v31 }
 0x681   :  { %3759 = vmatprep.subr.mxu1 %v7361_v32  ;;  %5024 = vmatprep.subr.mxu0 %v8069_v25 }
 0x682   :  { %3760 = vmatpush1.msra.mxu1 %v7365_v33  ;;  %5025 = vmatpush3.msra.mxu0 %v7367_v1 }
 0x683   :  { %3761 = vmatprep.subr.mxu1 %v7371_v61  ;;  %5026 = vmatprep.subr.mxu0 %v8069_v25 }
 0x684   :  { %3762 = vmatpush1.msra.mxu1 %v7375_v10  ;;  %5027 = vmatpush3.msra.mxu0 %v7377_v14  ;;  %v8370_v14 = vld [vmem:[#allocation47_spill] sm:$0xff] }
 0x685   :  { %3763 = vmatprep.subr.mxu1 %v7381_v47  ;;  %5028 = vmatprep.subr.mxu0 %v8069_v25 }
 0x686   :  { %3764 = vmatpush1.msra.mxu1 %v8355_v30  ;;  %5029 = vmatpush3.msra.mxu0 %v8356_v35 }
 0x687   :  { %3765 = vmatprep.subr.mxu1 %v8357_v6  ;;  %5030 = vmatprep.subr.mxu0 %v8069_v25 }
 0x688   :  { %3766 = vmatpush1.msra.mxu1 %v8358_v60  ;;  %5031 = vmatpush3.msra.mxu0 %v8359_v34  ;;  %v4232_v60 = vld [vmem:[%s7825_s1 + $0x30] sm:$0xff] }
 0x689   :  { %3767 = vmatprep.subr.mxu1 %v8360_v13  ;;  %5032 = vmatprep.subr.mxu0 %v8069_v25 }
 0x68a   :  { %3768 = vmatpush1.msra.mxu1 %v8361_v63  ;;  %5033 = vmatpush3.msra.mxu0 %v8362_v17 }
 0x68b   :  { %3769 = vmatprep.subr.mxu1 %v8363_v56  ;;  %5034 = vmatprep.subr.mxu0 %v8069_v25 }
 0x68c   :  { %3770 = vmatpush1.msra.mxu1 %v8364_v42  ;;  %5035 = vmatpush3.msra.mxu0 %v8365_v53  ;;  %v3675_v53 = vsub.f32 1.0, %v4232_v60 }
 0x68d   :  { %3803 = vmatprep.mubr.f32.mxu1 %v8069_v25  ;;  %5036 = vmatprep.mubr.msk.f32.mxu0 %vm5293_vm1, %v8069_v25 }
 0x68e   :  { %3949 = vmatprep.subr.mxu1 %v8366_v62  ;;  %5039 = vmatprep.subr.mxu0 %v8069_v25 }
 0x70b   :  { %v3361_v22 = vpop.f32.mrf.mxu1  ;;  %v3432_v49 = vpop.f32.mrf.mxu0 }
 0x70c   :  { %v3362_v2 = vadd.f32 %v3361_v22, %v6035_v16  ;;  %v3433_v33 = vadd.f32 %v3432_v49, %v6080_v38  ;;  %v3676_v49 = vmul.f32 %v3675_v53, %v7443_v40  ;;  %v8407_v53 = vld [vmem:[#allocation68_spill] sm:$0xff] }
 0x70d   :  { %v3363_v15 = vpop.f32.mrf.mxu1  ;;  %v4968_v55 = vpop.f32.mrf.mxu0 }
 0x70e   :  { %v3436_v36 = vadd.f32 %v3362_v2, %v8367_v23  ;;  %v3364_v18 = vadd.f32 %v3363_v15, %v8368_v24  ;;  %v8373_v55 = vld [vmem:[#allocation66_spill] sm:$0xff]  ;;  %v8374_v23 = vld [vmem:[#allocation69_spill] sm:$0xff] }
 0x710   :  { %v4228_v45 = vmul.f32 -1.442695, %v3436_v36  ;;  %v3443_v9 = vadd.f32 %v3364_v18, %v8369_v43  ;;  %v8377_v18 = vld [vmem:[#allocation12_spill] sm:$0xff]  ;;  %v8380_v43 = vld [vmem:[#allocation15_spill] sm:$0xff] }
 0x712   :  { %5204 = vpow2.f32 %v4228_v45  ;;  %v4229_v7 = vmul.f32 -1.442695, %v3443_v9  ;;  %v8375_v45 = vld [vmem:[#allocation10_spill] sm:$0xff] }
 0x713   :  { %v8381_v9 = vld [vmem:[#allocation54_spill] sm:$0xff] }
 0x714   :  { %5206 = vpow2.f32 %v4229_v7 }
 0x71f   :  { %v5205_v39 = vpop.eup %5204 }
 0x720   :  { %v3440_v28 = vadd.f32 1.0, %v5205_v39  ;;  %v8382_v39 = vld [vmem:[#allocation16_spill] sm:$0xff] }
 0x721   :  { %v5207_v46 = vpop.eup %5206 }
 0x722   :  { %5208 = vrcp.f32 %v3440_v28  ;;  %v3447_v48 = vadd.f32 1.0, %v5207_v46  ;;  %v8383_v28 = vld [vmem:[#allocation17_spill] sm:$0xff]  ;;  %v8384_v46 = vld [vmem:[#allocation18_spill] sm:$0xff] }
 0x724   :  { %5210 = vrcp.f32 %v3447_v48  ;;  %v8385_v48 = vld [vmem:[#allocation19_spill] sm:$0xff] }
 0x72c   :  { %v3571_v19 = vpop.f32.mrf.mxu1  ;;  %v3642_v31 = vpop.f32.mrf.mxu0 }
 0x72d   :  { %v3572_v32 = vadd.f32 %v3571_v19, %v6077_v57  ;;  %v3643_v36 = vadd.f32 %v3642_v31, %v8374_v23  ;;  %v8386_v19 = vld [vmem:[#allocation20_spill] sm:$0xff]  ;;  %v8387_v31 = vld [vmem:[#allocation21_spill] sm:$0xff] }
 0x72e   :  { %v3573_v1 = vpop.f32.mrf.mxu1  ;;  %v5003_v61 = vpop.f32.mrf.mxu0 }
 0x72f   :  { %v5209_v10 = vpop.eup %5208  ;;  %v3646_v47 = vadd.f32 %v3572_v32, %v8370_v14  ;;  %v3574_v11 = vadd.f32 %v3573_v1, %v6085_v58  ;;  %v8388_v32 = vld [vmem:[#allocation32_spill] sm:$0xff]  ;;  %v8390_v1 = vld [vmem:[#allocation51_spill] sm:$0xff]  ;;  %v8391_v61 = vld [vmem:[#allocation53_spill] sm:$0xff] }
 0x730   :  { %v3450_v29 = vmul.f32 %v5209_v10, %v3433_v33  ;;  %v8389_v33 = vld [vmem:[#allocation33_spill] sm:$0xff]  ;;  %v8392_v10 = vld [vmem:[#allocation63_spill] sm:$0xff] }
 0x731   :  { %v4230_v50 = vmul.f32 -1.442695, %v3646_v47  ;;  %v3653_v30 = vadd.f32 %v3574_v11, %v8372_v27  ;;  %v5211_v6 = vpop.eup %5210  ;;  %v8393_v14 = vld [vmem:[#allocation23_spill] sm:$0xff]  ;;  %v8394_v47 = vld [vmem:[#allocation24_spill] sm:$0xff] }
 0x732   :  { %v3451_v54 = vadd.f32 %v3450_v29, %v8371_v4  ;;  %v3453_v13 = vsub.f32 1.0, %v5211_v6  ;;  %v3455_v42 = vmul.f32 %v5211_v6, %v7443_v40  ;;  %v8395_v29 = vld [vmem:[#allocation25_spill] sm:$0xff]  ;;  %v8397_v11 = vld [vmem:[#allocation40_spill] sm:$0xff]  ;;  %v8402_v6 = vld [vmem:[#allocation26_spill] sm:$0xff] }
 0x733   :  { %5212 = vpow2.f32 %v4230_v50  ;;  %v4231_v35 = vmul.f32 -1.442695, %v3653_v30  ;;  %v8396_v50 = vld [vmem:[#allocation38_spill] sm:$0xff]  ;;  %v8398_v4 = vld [vmem:[#allocation57_spill] sm:$0xff]  ;;  %v8399_v27 = vld [vmem:[#allocation48_spill] sm:$0xff] }
 0x734   :  { %5214 = vtanh.f32 %v3451_v54  ;;  %v8400_v30 = vld [vmem:[#allocation64_spill] sm:$0xff] }
 0x735   :  { %5216 = vpow2.f32 %v4231_v35  ;;  %v8401_v35 = vld [vmem:[#allocation67_spill] sm:$0xff] }
 0x740   :  { %v5213_v34 = vpop.eup %5212 }
 0x741   :  { %v5215_v63 = vpop.eup %5214  ;;  %v3650_v17 = vadd.f32 1.0, %v5213_v34  ;;  %v8403_v34 = vld [vmem:[#allocation27_spill] sm:$0xff] }
 0x742   :  { %v3454_v56 = vmul.f32 %v5215_v63, %v3453_v13  ;;  %v5217_v15 = vpop.eup %5216  ;;  %v8404_v13 = vld [vmem:[#allocation28_spill] sm:$0xff] }
 0x743   :  { %5218 = vrcp.f32 %v3650_v17  ;;  %v3657_v40 = vadd.f32 1.0, %v5217_v15  ;;  %v8408_v15 = vld [vmem:[#allocation31_spill] sm:$0xff] }
 0x744   :  { %v3456_v62 = vadd.f32 %v3455_v42, %v3454_v56  ;;  %v8405_v56 = vld [vmem:[#allocation29_spill] sm:$0xff]  ;;  %v8406_v42 = vld [vmem:[#allocation30_spill] sm:$0xff] }
 0x745   :  { %5220 = vrcp.f32 %v3657_v40 }
 0x746   :  { %v3669_v22 = vmul.f32 %v4232_v60, %v3456_v62  ;;  %v4233_v60 = vld [vmem:[%s7825_s1 + $0x8] sm:$0xff] }
 0x748   :  { %4234 = vst [vmem:[%s7832_s8 + $0x30] sm:$0xff] %v3669_v22  ;;  %v7707_v2 = vadd.f32 %v3676_v49, %v3669_v22  ;;  %v3678_v49 = vsub.f32 1.0, %v4233_v60 }
 0x74a   :  { %3804 = vmatmul.mubr.f32.vlgmr.msra.gmra.mxu1 %v7707_v2  ;;  %5037 = vmatmul.mubr.f32.vlgmr.msra.gmra.mxu0 %v7707_v2 }
 0x74b   :  { %3950 = vmatpush1.msra.mxu1 %v7445_v44  ;;  %5040 = vmatpush3.msra.mxu0 %v7447_v51  ;;  %v8376_v44 = vld [vmem:[#allocation11_spill] sm:$0xff] }
 0x74c   :  { %3951 = vmatprep.subr.mxu1 %v7449_v37  ;;  %5041 = vmatprep.subr.mxu0 %v8069_v25 }
 0x74d   :  { %3952 = vmatpush1.msra.mxu1 %v7453_v0  ;;  %5042 = vmatpush3.msra.mxu0 %v7455_v59  ;;  %v8378_v0 = vld [vmem:[#allocation13_spill] sm:$0xff]  ;;  %v8379_v59 = vld [vmem:[#allocation14_spill] sm:$0xff] }
 0x74e   :  { %3953 = vmatprep.subr.mxu1 %v8373_v55  ;;  %5043 = vmatprep.subr.mxu0 %v8069_v25 }
 0x74f   :  { %3954 = vmatpush1.msra.mxu1 %v8375_v45  ;;  %5044 = vmatpush3.msra.mxu0 %v8376_v44 }
 0x750   :  { %v5219_v51 = vpop.eup %5218  ;;  %3955 = vmatprep.subr.mxu1 %v8377_v18  ;;  %5045 = vmatprep.subr.mxu0 %v8069_v25 }
 0x751   :  { %v3660_v37 = vmul.f32 %v5219_v51, %v3643_v36  ;;  %3956 = vmatpush1.msra.mxu1 %v8378_v0  ;;  %5046 = vmatpush3.msra.mxu0 %v8379_v59  ;;  %v3679_v36 = vmul.f32 %v3678_v49, %v7613_v20 }
 0x752   :  { %3957 = vmatprep.subr.mxu1 %v8380_v43  ;;  %5047 = vmatprep.subr.mxu0 %v8069_v25  ;;  %v5221_v54 = vpop.eup %5220 }
 0x753   :  { %v3661_v7 = vadd.f32 %v3660_v37, %v8381_v9  ;;  %3958 = vmatpush1.msra.mxu1 %v8382_v39  ;;  %5048 = vmatpush3.msra.mxu0 %v8383_v28  ;;  %v3663_v63 = vsub.f32 1.0, %v5221_v54  ;;  %v3665_v22 = vmul.f32 %v5221_v54, %v7613_v20 }
 0x754   :  { %3959 = vmatprep.subr.mxu1 %v8384_v46  ;;  %5049 = vmatprep.subr.mxu0 %v8069_v25 }
 0x755   :  { %5222 = vtanh.f32 %v3661_v7  ;;  %3960 = vmatpush1.msra.mxu1 %v8385_v48  ;;  %5050 = vmatpush3.msra.mxu0 %v8386_v19 }
 0x756   :  { %3961 = vmatprep.subr.mxu1 %v8387_v31  ;;  %5051 = vmatprep.subr.mxu0 %v8069_v25 }
 0x757   :  { %3962 = vmatpush1.msra.mxu1 %v8388_v32  ;;  %5052 = vmatpush3.msra.mxu0 %v8389_v33  ;;  %v8412_v33 = vld [vmem:[#allocation60_spill] sm:$0xff] }
 0x758   :  { %3963 = vmatprep.subr.mxu1 %v8390_v1  ;;  %5053 = vmatprep.subr.mxu0 %v8069_v25 }
 0x759   :  { %3964 = vmatpush1.msra.mxu1 %v8391_v61  ;;  %5054 = vmatpush3.msra.mxu0 %v8392_v10  ;;  %v8413_v61 = vld [vmem:[#allocation45_spill] sm:$0xff] }
 0x75a   :  { %3965 = vmatprep.subr.mxu1 %v8393_v14  ;;  %5055 = vmatprep.subr.mxu0 %v8069_v25 }
 0x75b   :  { %3966 = vmatpush1.msra.mxu1 %v8394_v47  ;;  %5056 = vmatpush3.msra.mxu0 %v8395_v29 }
 0x75c   :  { %3967 = vmatprep.subr.mxu1 %v8396_v50  ;;  %5057 = vmatprep.subr.mxu0 %v8069_v25 }
 0x75d   :  { %3968 = vmatpush1.msra.mxu1 %v8397_v11  ;;  %5058 = vmatpush3.msra.mxu0 %v8398_v4 }
 0x75e   :  { %3969 = vmatprep.subr.mxu1 %v8399_v27  ;;  %5059 = vmatprep.subr.mxu0 %v8069_v25 }
 0x75f   :  { %3970 = vmatpush1.msra.mxu1 %v8400_v30  ;;  %5060 = vmatpush3.msra.mxu0 %v8401_v35 }
 0x760   :  { %3971 = vmatprep.subr.mxu1 %v8402_v6  ;;  %5061 = vmatprep.subr.mxu0 %v8069_v25 }
 0x761   :  { %3972 = vmatpush1.msra.mxu1 %v8403_v34  ;;  %5062 = vmatpush3.msra.mxu0 %v8404_v13 }
 0x762   :  { %v5223_v17 = vpop.eup %5222  ;;  %3973 = vmatprep.subr.mxu1 %v8405_v56  ;;  %5063 = vmatprep.subr.mxu0 %v8069_v25  ;;  %v8414_v56 = vld [vmem:[#allocation46_spill] sm:$0xff] }
 0x763   :  { %3974 = vmatpush1.msra.mxu1 %v8406_v42  ;;  %5064 = vmatpush3.msra.mxu0 %v8407_v53  ;;  %v3664_v62 = vmul.f32 %v5223_v17, %v3663_v63  ;;  %v4112_v53 = vld [vmem:[%s7825_s1] sm:$0xff] }
 0x764   :  { %3975 = vmatprep.subr.mxu1 %v7574_v41  ;;  %5065 = vmatprep.subr.mxu0 %v8069_v25  ;;  %v4121_v49 = vsub.f32 1.0, %v4112_v53 }
 0x765   :  { %3976 = vmatpush1.msra.mxu1 %v8408_v15  ;;  %5066 = vmatpush3.msra.mxu0 %v7580_v5  ;;  %v3666_v40 = vadd.f32 %v3665_v22, %v3664_v62 }
 0x766   :  { %3977 = vmatprep.subr.mxu1 %v7584_v8  ;;  %5067 = vmatprep.subr.mxu0 %v8069_v25 }
 0x767   :  { %3978 = vmatpush1.msra.mxu1 %v7589_v3  ;;  %5068 = vmatpush3.msra.mxu0 %v7591_v26  ;;  %v3670_v55 = vmul.f32 %v4233_v60, %v3666_v40 }
 0x768   :  { %3979 = vmatprep.subr.mxu1 %v7595_v21  ;;  %5069 = vmatprep.subr.mxu0 %v8069_v25 }
 0x769   :  { %3980 = vmatpush1.msra.mxu1 %v7599_v12  ;;  %4013 = vmatprep.mubr.f32.mxu1 %v8069_v25  ;;  %4235 = vst [vmem:[%s7833_s9 + $0x8] sm:$0xff] %v3670_v55  ;;  %v7783_v8 = vadd.f32 %v3679_v36, %v3670_v55  ;;  %v8409_v12 = vld [vmem:[#allocation39_spill] sm:$0xff] }
 0x76a   :  { %5070 = vmatpush3.msra.mxu0 %v7603_v52  ;;  %5071 = vmatprep.mubr.msk.f32.mxu0 %vm5293_vm1, %v8069_v25  ;;  %v8410_v52 = vld [vmem:[#allocation41_spill] sm:$0xff] }
 0x76b   :  { %4014 = vmatmul.mubr.f32.vlgmr.msra.gmra.mxu1 %v7783_v8  ;;  %5072 = vmatmul.mubr.f32.vlgmr.msra.gmra.mxu0 %v7783_v8 }
 0x80a   :  { %v3805_v26 = vpop.f32.mrf.mxu1  ;;  %v3876_v5 = vpop.f32.mrf.mxu0 }
 0x80b   :  { %v3806_v41 = vadd.f32 %v3805_v26, %v6035_v16  ;;  %v3877_v7 = vadd.f32 %v3876_v5, %v6080_v38  ;;  %v4240_v38 = vld [vmem:[%s7825_s1 + $0x38] sm:$0xff] }
 0x80c   :  { %v3807_v21 = vpop.f32.mrf.mxu1  ;;  %v5038_v3 = vpop.f32.mrf.mxu0  ;;  %v4118_v4 = vsub.f32 1.0, %v4240_v38 }
 0x80d   :  { %v3880_v20 = vadd.f32 %v3806_v41, %v8409_v12  ;;  %v3808_v44 = vadd.f32 %v3807_v21, %v8368_v24  ;;  %v8411_v24 = vld [vmem:[#allocation44_spill] sm:$0xff] }
 0x80e   :  { %v4119_v30 = vmul.f32 %v4118_v4, %v7707_v2 }
 0x80f   :  { %v4236_v45 = vmul.f32 -1.442695, %v3880_v20  ;;  %v3887_v51 = vadd.f32 %v3808_v44, %v8410_v52 }
 0x811   :  { %5224 = vpow2.f32 %v4236_v45  ;;  %v4237_v18 = vmul.f32 -1.442695, %v3887_v51 }
 0x813   :  { %5226 = vpow2.f32 %v4237_v18 }
 0x81e   :  { %v5225_v25 = vpop.eup %5224 }
 0x81f   :  { %v3884_v37 = vadd.f32 1.0, %v5225_v25 }
 0x820   :  { %v5227_v0 = vpop.eup %5226 }
 0x821   :  { %5228 = vrcp.f32 %v3884_v37  ;;  %v3891_v59 = vadd.f32 1.0, %v5227_v0 }
 0x823   :  { %5230 = vrcp.f32 %v3891_v59 }
 0x82b   :  { %v4015_v43 = vpop.f32.mrf.mxu1  ;;  %v4086_v9 = vpop.f32.mrf.mxu0 }
 0x82c   :  { %v4016_v16 = vadd.f32 %v4015_v43, %v6077_v57  ;;  %v4087_v13 = vadd.f32 %v4086_v9, %v8374_v23  ;;  %v4122_v23 = vmul.f32 %v4121_v49, %v7783_v8 }
 0x82d   :  { %v4017_v39 = vpop.f32.mrf.mxu1  ;;  %v5073_v28 = vpop.f32.mrf.mxu0 }
 0x82e   :  { %v5229_v46 = vpop.eup %5228  ;;  %v4090_v48 = vadd.f32 %v4016_v16, %v8411_v24  ;;  %v4018_v32 = vadd.f32 %v4017_v39, %v6085_v58 }
 0x82f   :  { %v3894_v19 = vmul.f32 %v5229_v46, %v3877_v7 }
 0x830   :  { %v4238_v31 = vmul.f32 -1.442695, %v4090_v48  ;;  %v4097_v10 = vadd.f32 %v4018_v32, %v8413_v61  ;;  %v5231_v57 = vpop.eup %5230 }
 0x831   :  { %v3895_v1 = vadd.f32 %v3894_v19, %v8412_v33  ;;  %v3897_v29 = vsub.f32 1.0, %v5231_v57  ;;  %v3899_v58 = vmul.f32 %v5231_v57, %v7707_v2 }
 0x832   :  { %5232 = vpow2.f32 %v4238_v31  ;;  %v4239_v14 = vmul.f32 -1.442695, %v4097_v10 }
 0x833   :  { %5234 = vtanh.f32 %v3895_v1 }
 0x834   :  { %5236 = vpow2.f32 %v4239_v14 }
 0x83f   :  { %v5233_v47 = vpop.eup %5232 }
 0x840   :  { %v5235_v50 = vpop.eup %5234  ;;  %v4094_v11 = vadd.f32 1.0, %v5233_v47 }
 0x841   :  { %v3898_v54 = vmul.f32 %v5235_v50, %v3897_v29  ;;  %v5237_v60 = vpop.eup %5236 }
 0x842   :  { %5238 = vrcp.f32 %v4094_v11  ;;  %v4101_v34 = vadd.f32 1.0, %v5237_v60 }
 0x843   :  { %v3900_v27 = vadd.f32 %v3899_v58, %v3898_v54 }
 0x844   :  { %5240 = vrcp.f32 %v4101_v34 }
 0x845   :  { %v4113_v35 = vmul.f32 %v4240_v38, %v3900_v27 }
 0x847   :  { %4241 = vst [vmem:[%s7832_s8 + $0x38] sm:$0xff] %v4113_v35  ;;  %v4120_v6 = vadd.f32 %v4119_v30, %v4113_v35 }
 0x849   :  { %4124 = vst [vmem:[%s7834_s10] sm:$0xff] %v4120_v6 }
 0x84f   :  { %v5239_v63 = vpop.eup %5238 }
 0x850   :  { %v4104_v17 = vmul.f32 %v5239_v63, %v4087_v13 }
 0x851   :  { %v5241_v2 = vpop.eup %5240 }
 0x852   :  { %v4105_v42 = vadd.f32 %v4104_v17, %v8414_v56  ;;  %v4107_v62 = vsub.f32 1.0, %v5241_v2  ;;  %v4109_v40 = vmul.f32 %v5241_v2, %v7783_v8 }
 0x854   :  { %5242 = vtanh.f32 %v4105_v42 }
 0x861   :  { %v5243_v22 = vpop.eup %5242 }
 0x862   :  { %v4108_v15 = vmul.f32 %v5243_v22, %v4107_v62 }
 0x864   :  { %v4110_v55 = vadd.f32 %v4109_v40, %v4108_v15 }
 0x866   :  { %v4114_v36 = vmul.f32 %v4112_v53, %v4110_v55 }
 0x868   :  { %4117 = vst [vmem:[%s7833_s9] sm:$0xff] %v4114_v36  ;;  %v4123_v26 = vadd.f32 %v4122_v23, %v4114_v36 }
 0x86a   :  { %4125 = vst [vmem:[%s7835_s11] sm:$0xff] %v4123_v26 }
 0x86b   :  { %4142 = vsyncpa [#allocation5], 1 }
 0x86c   :  { %4143 = vsyncpa [#allocation7], 1 }

</bundles_post_ra>
